<compile_context>
chip_gen: v7x
topology: tpu7x:2x2x1
jax: 0.10.0
libtpu: 0.0.40
codegen_flags: <defaults>
</compile_context>

<pallas_src>
import numpy as np
import jax
import jax.numpy as jnp
from jax.experimental import pallas as pl
from jax.experimental.pallas import tpu as pltpu

# ---------------- configuration ----------------
EMB_IN     = 32      # opt.embedding_dim
RL_EMB     = 16      # opt.rl_embedding_dim
STATE_DIM  = 24
ACTION_DIM = 4
MAX_ACTION = 2.0
MORE_EMBEDDING = True   # packing below assumes True
BATCH      = 2
E = RL_EMB

# Logical (PyTorch) layer dims, (in_features, out_features), in forward order.
LOGICAL_DIMS = [
    # feature_fc
    (EMB_IN, 512), (512, 256), (256, 256), (256, 256),
    # nlp_fc
    (256, 128), (128, 64), (64, RL_EMB),
    # stn
    (256, 256), (256, 256), (256, RL_EMB * RL_EMB),
    # fc1
    (STATE_DIM + RL_EMB, 400),
    # fc2
    (400 + RL_EMB, 300), (300, 200),
    # fc3
    (200 + RL_EMB, 128), (128, 64), (64, 32), (32, ACTION_DIM),
]

# ---------------- packed-weight group layout (6 DMA groups) ----------------
NG = 6
# group 0 (512 lanes): feature_fc[0] rows [0:32]   | fc1 state-part rows [32:56]
# group 1 (256 lanes): feature_fc[1] [0:512] | [2] [512:768] | [3] [768:1024]
# group 2 (384 lanes): fused head (nlp0|stn0) [0:256] | fc2 a-part [256:768]
# group 3 (128 lanes): nlp1 [0:128] | nlp2 [128:256] | fc3 a-part [256:512]
#                      | fc3b [512:640] | fc3c [640:768] | fc3d [768:896]
# group 4 (256 lanes): stn1 [0:256] | stn2 [256:512] | fc2b [512:896]
# group 5 (1024 lanes): fused emb projection (fc1|fc2|fc3 emb rows) [0:16]
GROUP_SHAPES = [(56, 512), (1024, 256), (768, 384),
                (896, 128), (896, 256), (16, 1024)]

# ---------------- packed-bias layout: one (1, 4096) f32 row ----------------
_BIAS_WIDTHS = (512, 256, 256, 256, 384, 128, 128, 256,
                256, 512, 384, 256, 128, 128, 128, 128)
BIAS_SLOTS = []
_off = 0
for _w in _BIAS_WIDTHS:
    BIAS_SLOTS.append((_off, _w))
    _off += _w
BIAS_TOTAL = _off          # 4096 (all slot offsets are 128-lane aligned)
NB = len(BIAS_SLOTS)       # 16


# ---------------- kernel ----------------
def actor_kernel(*refs):
    ae_ref, st_ref, bias_ref = refs[0], refs[1], refs[2]
    g_hbm  = refs[3:3 + NG]                   # raw HBM refs (memory_space=ANY)
    out_ref = refs[3 + NG]
    g_vmem = refs[3 + NG + 1: 3 + NG + 1 + NG]  # bf16 VMEM scratch (per group)
    sem = refs[-1]                            # DMA semaphores, shape (NG,)

    # Kick off every grouped weight DMA immediately (in first-use order);
    # compute overlaps the copies and each layer only waits for its group.
    copies = []
    for i in range(NG):
        cp = pltpu.make_async_copy(g_hbm[i], g_vmem[i], sem.at[i])
        cp.start()
        copies.append(cp)

    waited = set()

    def W(gi, r0, r1):
        if gi not in waited:          # static Python: one wait per group
            copies[gi].wait()
            waited.add(gi)
        return g_vmem[gi][r0:r1, :]

    def b(i):
        off, w_ = BIAS_SLOTS[i]
        return bias_ref[:, off:off + w_]      # (1, w) f32, lane-aligned slice

    relu = lambda v: jnp.maximum(v, 0.0)

    def mm(x, gi, r0, r1):
        return jnp.dot(x.astype(jnp.bfloat16), W(gi, r0, r1),
                       preferred_element_type=jnp.float32)

    ae = ae_ref[...]                          # (B, EMB_IN) f32
    st = st_ref[...]                          # (B, STATE_DIM) f32

    # feature_fc: Linear-ReLU x3, Linear
    feat = relu(mm(ae, 0, 0, 32) + b(0))      # (B, 512)
    feat = relu(mm(feat, 1, 0, 512) + b(1))   # (B, 256)
    feat = relu(mm(feat, 1, 512, 768) + b(2))  # (B, 256)
    feat = mm(feat, 1, 768, 1024) + b(3)      # (B, 256)

    # fused first layers of nlp_fc (->128) and stn (->256): one 256->384 matmul
    head = relu(mm(feat, 2, 0, 256) + b(4))   # (B, 384)
    nlp = head[:, :128]
    stn = head[:, 128:]

    # nlp_fc tail -> action embedding (lane-padded to 128; extra lanes are 0)
    nlp = relu(mm(nlp, 3, 0, 128) + b(5))     # (B, 128)  real 64
    nlp = mm(nlp, 3, 128, 256) + b(6)         # (B, 128)  real 16
    emb = nlp[:, :E]                          # (B, 16)

    # stn tail -> (B, E*E) row-major over (i, j), as in .view(-1, E, E)
    stn = relu(mm(stn, 4, 0, 256) + b(7))     # (B, 256)
    stn = mm(stn, 4, 256, 512) + b(8)         # (B, 256) = E*E

    # bmm(emb.unsqueeze(1), stn.view(B,E,E)).squeeze(1), statically unrolled
    acc = jnp.zeros_like(emb)
    for i in range(E):
        acc = acc + emb[:, i:i + 1] * stn[:, i * E:(i + 1) * E]
    emb = acc                                 # (B, E) f32
    emb16 = emb.astype(jnp.bfloat16)

    # fused emb projection: one (16, 1024) matmul; lane-aligned slices feed
    # fc1 (0:512), fc2 (512:896) and fc3 (896:1024) off the critical path.
    proj = mm(emb16, 5, 0, 16)                # (B, 1024)
    p_fc1 = proj[:, :512]
    p_fc2 = proj[:, 512:896]
    p_fc3 = proj[:, 896:]

    # fc1: split matmul replaces cat([emb, state]) @ W   (400 padded to 512)
    a = relu(p_fc1 + mm(st, 0, 32, 56) + b(9))     # (B, 512)

    # fc2 (+ outer ReLU): split matmul replaces cat([emb, a]) @ W
    a = relu(p_fc2 + mm(a, 2, 256, 768) + b(10))   # (B, 384)  [300 padded]
    a = relu(mm(a, 4, 512, 896) + b(11))           # (B, 256)  [200 padded]

    # fc3 + tanh * max_action: split matmul replaces cat([emb, a]) @ W
    a = relu(p_fc3 + mm(a, 3, 256, 512) + b(12))   # (B, 128)
    a = relu(mm(a, 3, 512, 640) + b(13))           # (B, 128)  real 64
    a = relu(mm(a, 3, 640, 768) + b(14))           # (B, 128)  real 32
    a = mm(a, 3, 768, 896) + b(15)                 # (B, 128)  real 4

    out_ref[...] = jnp.tanh(a[:, :ACTION_DIM]) * MAX_ACTION


# ---------------- wrapper ----------------
@jax.jit
def actor_forward(action_embedding, state, weight_groups, bias_packed):
    ng = len(weight_groups)
    vmem = lambda: pl.BlockSpec(memory_space=pltpu.MemorySpace.VMEM)
    hbm  = lambda: pl.BlockSpec(memory_space=pl.ANY)
    scratch = ([pltpu.VMEM(g.shape, jnp.bfloat16) for g in weight_groups]
               + [pltpu.SemaphoreType.DMA((ng,))])
    return pl.pallas_call(
        actor_kernel,
        out_shape=jax.ShapeDtypeStruct((action_embedding.shape[0], ACTION_DIM),
                                       jnp.float32),
        in_specs=([vmem(), vmem(), vmem()] + [hbm() for _ in range(ng)]),
        out_specs=vmem(),
        scratch_shapes=scratch,
        compiler_params=pltpu.CompilerParams(vmem_limit_bytes=16 << 20),
    )(action_embedding, state, bias_packed, *weight_groups)


# ---------------- parameter init (PyTorch-style uniform, logical layout) ------
def init_logical(key):
    ws, bs = [], []
    for fi, fo in LOGICAL_DIMS:
        key, kw, kb = jax.random.split(key, 3)
        bound = 1.0 / np.sqrt(fi)
        ws.append(jax.random.uniform(kw, (fi, fo), jnp.float32, -bound, bound))
        bs.append(jax.random.uniform(kb, (1, fo), jnp.float32, -bound, bound))
    return ws, bs


# ---------------- pack logical params into the kernel's fused/padded layout ---
def pack_params(ws, bs):
    bf = lambda x: x.astype(jnp.bfloat16)
    padc = lambda x, n: jnp.pad(x, ((0, 0), (0, n - x.shape[1])))
    padr = lambda x, n: jnp.pad(x, ((0, n - x.shape[0]), (0, 0)))
    pad2 = lambda x, r, c: padr(padc(x, c), r)

    # per-layer padded weights (f32), zero padding keeps the math identical
    w_feat0 = ws[0]                                    # (32, 512)
    w_feat1, w_feat2, w_feat3 = ws[1], ws[2], ws[3]    # (512/256/256, 256)
    w_head  = jnp.concatenate([ws[4], ws[7]], axis=1)  # (256, 384) nlp0|stn0
    w_nlp1  = padc(ws[5], 128)                         # (128, 128)
    w_nlp2  = pad2(ws[6], 128, 128)                    # (128, 128)
    w_stn1, w_stn2 = ws[8], ws[9]                      # (256, 256) each
    w_fc1e  = padc(ws[10][:E], 512)                    # (16, 512)
    w_fc1s  = padc(ws[10][E:], 512)                    # (24, 512)
    w_fc2e  = padc(ws[11][:E], 384)                    # (16, 384)
    w_fc2a  = pad2(ws[11][E:], 512, 384)               # (512, 384)
    w_fc2b  = pad2(ws[12], 384, 256)                   # (384, 256)
    w_fc3e  = ws[13][:E]                               # (16, 128)
    w_fc3a  = padr(ws[13][E:], 256)                    # (256, 128)
    w_fc3b  = padc(ws[14], 128)                        # (128, 128)
    w_fc3c  = pad2(ws[15], 128, 128)                   # (128, 128)
    w_fc3d  = pad2(ws[16], 128, 128)                   # (128, 128)
    w_embp  = jnp.concatenate([w_fc1e, w_fc2e, w_fc3e], axis=1)   # (16, 1024)

    groups = [
        bf(jnp.concatenate([w_feat0, w_fc1s], axis=0)),            # (56, 512)
        bf(jnp.concatenate([w_feat1, w_feat2, w_feat3], axis=0)),  # (1024, 256)
        bf(jnp.concatenate([w_head, w_fc2a], axis=0)),             # (768, 384)
        bf(jnp.concatenate([w_nlp1, w_nlp2, w_fc3a, w_fc3b,
                            w_fc3c, w_fc3d], axis=0)),             # (896, 128)
        bf(jnp.concatenate([w_stn1, w_stn2, w_fc2b], axis=0)),     # (896, 256)
        bf(w_embp),                                                # (16, 1024)
    ]
    assert [g.shape for g in groups] == GROUP_SHAPES

    # packed bias: one (1, 4096) f32 row of 128-lane-aligned slots
    slots = [
        padc(bs[0], 512), bs[1], bs[2], bs[3],
        jnp.concatenate([bs[4], bs[7]], axis=1),        # fused head (1, 384)
        padc(bs[5], 128), padc(bs[6], 128),
        bs[8], bs[9],
        padc(bs[10], 512), padc(bs[11], 384), padc(bs[12], 256),
        bs[13], padc(bs[14], 128), padc(bs[15], 128), padc(bs[16], 128),
    ]
    assert len(slots) == NB
    bias_packed = jnp.concatenate(slots, axis=1)        # (1, BIAS_TOTAL)
    assert bias_packed.shape == (1, BIAS_TOTAL)
    return groups, bias_packed


# ---------------- plain-JAX reference (bf16-quantized weights, f32 math) ------
def actor_reference(ae, st, ws, bs):
    wq = [w.astype(jnp.bfloat16).astype(jnp.float32) for w in ws]

    def lin(x, i, act=False):
        y = x @ wq[i] + bs[i]
        return jnp.maximum(y, 0.0) if act else y

    feat = lin(ae, 0, True); feat = lin(feat, 1, True)
    feat = lin(feat, 2, True); feat = lin(feat, 3)
    emb = lin(feat, 4, True); emb = lin(emb, 5, True); emb = lin(emb, 6)
    stn = lin(feat, 7, True); stn = lin(stn, 8, True); stn = lin(stn, 9)
    stn3 = stn.reshape(-1, RL_EMB, RL_EMB)
    emb = jnp.einsum('be,bef->bf', emb, stn3)
    x = jnp.concatenate([emb, st], axis=1)
    a = jnp.maximum(lin(x, 10), 0.0)
    if MORE_EMBEDDING:
        a = jnp.concatenate([emb, a], axis=1)
    a = lin(a, 11, True); a = lin(a, 12); a = jnp.maximum(a, 0.0)
    if MORE_EMBEDDING:
        a = jnp.concatenate([emb, a], axis=1)
    a = lin(a, 13, True); a = lin(a, 14, True); a = lin(a, 15, True)
    a = lin(a, 16)
    return jnp.tanh(a) * MAX_ACTION


if __name__ == "__main__":
    key = jax.random.PRNGKey(0)
    kp, ka, ks = jax.random.split(key, 3)
    ws, bs = init_logical(kp)
    groups, bias_packed = pack_params(ws, bs)

    action_embedding = jax.random.normal(ka, (BATCH, EMB_IN), jnp.float32)
    state = jax.random.normal(ks, (BATCH, STATE_DIM), jnp.float32)

    out = actor_forward(action_embedding, state, groups, bias_packed)
    jax.block_until_ready(out)

    ref = actor_reference(action_embedding, state, ws, bs)
    assert out.shape == (BATCH, ACTION_DIM)
    np.testing.assert_allclose(np.asarray(out), np.asarray(ref),
                               rtol=2e-2, atol=2e-2)
    print("KERNEL_OK")
</pallas_src>

<mosaic_0001>
module attributes {stable_mosaic.version = 11 : i64} {
  func.func @actor_kernel(%arg0: memref<2x32xf32, #tpu.memory_space<vmem>>, %arg1: memref<2x24xf32, #tpu.memory_space<vmem>>, %arg2: memref<1x4096xf32, #tpu.memory_space<vmem>>, %arg3: memref<56x512xbf16, #tpu.memory_space<any>>, %arg4: memref<1024x256xbf16, #tpu.memory_space<any>>, %arg5: memref<768x384xbf16, #tpu.memory_space<any>>, %arg6: memref<896x128xbf16, #tpu.memory_space<any>>, %arg7: memref<896x256xbf16, #tpu.memory_space<any>>, %arg8: memref<16x1024xbf16, #tpu.memory_space<any>>, %arg9: memref<2x4xf32, #tpu.memory_space<vmem>>, %arg10: memref<56x512xbf16, #tpu.memory_space<vmem>>, %arg11: memref<1024x256xbf16, #tpu.memory_space<vmem>>, %arg12: memref<768x384xbf16, #tpu.memory_space<vmem>>, %arg13: memref<896x128xbf16, #tpu.memory_space<vmem>>, %arg14: memref<896x256xbf16, #tpu.memory_space<vmem>>, %arg15: memref<16x1024xbf16, #tpu.memory_space<vmem>>, %arg16: memref<6x!tpu.dma_semaphore, #tpu.memory_space<semaphore_mem>>) attributes {dimension_semantics = [], scalar_prefetch = 0 : i64, scratch_operands = 7 : i64, tpu.core_type = #tpu.core_type<tc>} {
    %c0_i32 = arith.constant 0 : i32
    %0 = tpu.memref_slice %arg16[%c0_i32] : memref<6x!tpu.dma_semaphore, #tpu.memory_space<semaphore_mem>> -> memref<1x!tpu.dma_semaphore, #tpu.memory_space<semaphore_mem>>
    %1 = tpu.memref_squeeze %0 : memref<1x!tpu.dma_semaphore, #tpu.memory_space<semaphore_mem>> -> memref<!tpu.dma_semaphore, #tpu.memory_space<semaphore_mem>>
    tpu.enqueue_dma source(%arg3 : memref<56x512xbf16, #tpu.memory_space<any>>) target(%arg10 : memref<56x512xbf16, #tpu.memory_space<vmem>>) target_semaphore(%1 : memref<!tpu.dma_semaphore, #tpu.memory_space<semaphore_mem>>)
    %c1_i32 = arith.constant 1 : i32
    %2 = tpu.memref_slice %arg16[%c1_i32] : memref<6x!tpu.dma_semaphore, #tpu.memory_space<semaphore_mem>> -> memref<1x!tpu.dma_semaphore, #tpu.memory_space<semaphore_mem>>
    %3 = tpu.memref_squeeze %2 : memref<1x!tpu.dma_semaphore, #tpu.memory_space<semaphore_mem>> -> memref<!tpu.dma_semaphore, #tpu.memory_space<semaphore_mem>>
    tpu.enqueue_dma source(%arg4 : memref<1024x256xbf16, #tpu.memory_space<any>>) target(%arg11 : memref<1024x256xbf16, #tpu.memory_space<vmem>>) target_semaphore(%3 : memref<!tpu.dma_semaphore, #tpu.memory_space<semaphore_mem>>)
    %c2_i32 = arith.constant 2 : i32
    %4 = tpu.memref_slice %arg16[%c2_i32] : memref<6x!tpu.dma_semaphore, #tpu.memory_space<semaphore_mem>> -> memref<1x!tpu.dma_semaphore, #tpu.memory_space<semaphore_mem>>
    %5 = tpu.memref_squeeze %4 : memref<1x!tpu.dma_semaphore, #tpu.memory_space<semaphore_mem>> -> memref<!tpu.dma_semaphore, #tpu.memory_space<semaphore_mem>>
    tpu.enqueue_dma source(%arg5 : memref<768x384xbf16, #tpu.memory_space<any>>) target(%arg12 : memref<768x384xbf16, #tpu.memory_space<vmem>>) target_semaphore(%5 : memref<!tpu.dma_semaphore, #tpu.memory_space<semaphore_mem>>)
    %c3_i32 = arith.constant 3 : i32
    %6 = tpu.memref_slice %arg16[%c3_i32] : memref<6x!tpu.dma_semaphore, #tpu.memory_space<semaphore_mem>> -> memref<1x!tpu.dma_semaphore, #tpu.memory_space<semaphore_mem>>
    %7 = tpu.memref_squeeze %6 : memref<1x!tpu.dma_semaphore, #tpu.memory_space<semaphore_mem>> -> memref<!tpu.dma_semaphore, #tpu.memory_space<semaphore_mem>>
    tpu.enqueue_dma source(%arg6 : memref<896x128xbf16, #tpu.memory_space<any>>) target(%arg13 : memref<896x128xbf16, #tpu.memory_space<vmem>>) target_semaphore(%7 : memref<!tpu.dma_semaphore, #tpu.memory_space<semaphore_mem>>)
    %c4_i32 = arith.constant 4 : i32
    %8 = tpu.memref_slice %arg16[%c4_i32] : memref<6x!tpu.dma_semaphore, #tpu.memory_space<semaphore_mem>> -> memref<1x!tpu.dma_semaphore, #tpu.memory_space<semaphore_mem>>
    %9 = tpu.memref_squeeze %8 : memref<1x!tpu.dma_semaphore, #tpu.memory_space<semaphore_mem>> -> memref<!tpu.dma_semaphore, #tpu.memory_space<semaphore_mem>>
    tpu.enqueue_dma source(%arg7 : memref<896x256xbf16, #tpu.memory_space<any>>) target(%arg14 : memref<896x256xbf16, #tpu.memory_space<vmem>>) target_semaphore(%9 : memref<!tpu.dma_semaphore, #tpu.memory_space<semaphore_mem>>)
    %c5_i32 = arith.constant 5 : i32
    %10 = tpu.memref_slice %arg16[%c5_i32] : memref<6x!tpu.dma_semaphore, #tpu.memory_space<semaphore_mem>> -> memref<1x!tpu.dma_semaphore, #tpu.memory_space<semaphore_mem>>
    %11 = tpu.memref_squeeze %10 : memref<1x!tpu.dma_semaphore, #tpu.memory_space<semaphore_mem>> -> memref<!tpu.dma_semaphore, #tpu.memory_space<semaphore_mem>>
    tpu.enqueue_dma source(%arg8 : memref<16x1024xbf16, #tpu.memory_space<any>>) target(%arg15 : memref<16x1024xbf16, #tpu.memory_space<vmem>>) target_semaphore(%11 : memref<!tpu.dma_semaphore, #tpu.memory_space<semaphore_mem>>)
    %c0 = arith.constant 0 : index
    %c0_0 = arith.constant 0 : index
    %12 = vector.load %arg0[%c0, %c0_0] : memref<2x32xf32, #tpu.memory_space<vmem>>, vector<2x32xf32>
    %c0_1 = arith.constant 0 : index
    %c0_2 = arith.constant 0 : index
    %13 = vector.load %arg1[%c0_1, %c0_2] : memref<2x24xf32, #tpu.memory_space<vmem>>, vector<2x24xf32>
    %14 = arith.truncf %12 : vector<2x32xf32> to vector<2x32xbf16>
    %c0_i32_3 = arith.constant 0 : i32
    %15 = tpu.memref_slice %arg16[%c0_i32_3] : memref<6x!tpu.dma_semaphore, #tpu.memory_space<semaphore_mem>> -> memref<1x!tpu.dma_semaphore, #tpu.memory_space<semaphore_mem>>
    %16 = tpu.memref_squeeze %15 : memref<1x!tpu.dma_semaphore, #tpu.memory_space<semaphore_mem>> -> memref<!tpu.dma_semaphore, #tpu.memory_space<semaphore_mem>>
    tpu.wait_dma2 semaphore(%16 : memref<!tpu.dma_semaphore, #tpu.memory_space<semaphore_mem>>) src(%arg3 : memref<56x512xbf16, #tpu.memory_space<any>>) dst(%arg10 : memref<56x512xbf16, #tpu.memory_space<vmem>>)
    %c0_4 = arith.constant 0 : index
    %c0_5 = arith.constant 0 : index
    %17 = vector.load %arg10[%c0_4, %c0_5] : memref<56x512xbf16, #tpu.memory_space<vmem>>, vector<32x512xbf16>
    %cst = arith.constant dense<0.000000e+00> : vector<2x512xf32>
    %18 = tpu.matmul %14, %17, %cst {dimension_numbers = #tpu.dot_dimension_numbers<[1], [0], [0], [1], [0, 0, 1, 1], [], []>} : vector<2x32xbf16>, vector<32x512xbf16>, vector<2x512xf32> -> vector<2x512xf32>
    %c0_6 = arith.constant 0 : index
    %c0_7 = arith.constant 0 : index
    %19 = vector.load %arg2[%c0_6, %c0_7] : memref<1x4096xf32, #tpu.memory_space<vmem>>, vector<1x512xf32>
    %20 = vector.broadcast %19 : vector<1x512xf32> to vector<2x512xf32>
    %21 = arith.addf %18, %20 : vector<2x512xf32>
    %cst_8 = arith.constant 0.000000e+00 : f32
    %22 = vector.broadcast %cst_8 : f32 to vector<2x512xf32>
    %23 = arith.maximumf %21, %22 : vector<2x512xf32>
    %24 = arith.truncf %23 : vector<2x512xf32> to vector<2x512xbf16>
    %c1_i32_9 = arith.constant 1 : i32
    %25 = tpu.memref_slice %arg16[%c1_i32_9] : memref<6x!tpu.dma_semaphore, #tpu.memory_space<semaphore_mem>> -> memref<1x!tpu.dma_semaphore, #tpu.memory_space<semaphore_mem>>
    %26 = tpu.memref_squeeze %25 : memref<1x!tpu.dma_semaphore, #tpu.memory_space<semaphore_mem>> -> memref<!tpu.dma_semaphore, #tpu.memory_space<semaphore_mem>>
    tpu.wait_dma2 semaphore(%26 : memref<!tpu.dma_semaphore, #tpu.memory_space<semaphore_mem>>) src(%arg4 : memref<1024x256xbf16, #tpu.memory_space<any>>) dst(%arg11 : memref<1024x256xbf16, #tpu.memory_space<vmem>>)
    %c0_10 = arith.constant 0 : index
    %c0_11 = arith.constant 0 : index
    %27 = vector.load %arg11[%c0_10, %c0_11] : memref<1024x256xbf16, #tpu.memory_space<vmem>>, vector<512x256xbf16>
    %cst_12 = arith.constant dense<0.000000e+00> : vector<2x256xf32>
    %28 = tpu.matmul %24, %27, %cst_12 {dimension_numbers = #tpu.dot_dimension_numbers<[1], [0], [0], [1], [0, 0, 1, 1], [], []>} : vector<2x512xbf16>, vector<512x256xbf16>, vector<2x256xf32> -> vector<2x256xf32>
    %c0_13 = arith.constant 0 : index
    %c512 = arith.constant 512 : index
    %29 = vector.load %arg2[%c0_13, %c512] : memref<1x4096xf32, #tpu.memory_space<vmem>>, vector<1x256xf32>
    %30 = vector.broadcast %29 : vector<1x256xf32> to vector<2x256xf32>
    %31 = arith.addf %28, %30 : vector<2x256xf32>
    %cst_14 = arith.constant 0.000000e+00 : f32
    %32 = vector.broadcast %cst_14 : f32 to vector<2x256xf32>
    %33 = arith.maximumf %31, %32 : vector<2x256xf32>
    %34 = arith.truncf %33 : vector<2x256xf32> to vector<2x256xbf16>
    %c512_15 = arith.constant 512 : index
    %c0_16 = arith.constant 0 : index
    %35 = vector.load %arg11[%c512_15, %c0_16] : memref<1024x256xbf16, #tpu.memory_space<vmem>>, vector<256x256xbf16>
    %cst_17 = arith.constant dense<0.000000e+00> : vector<2x256xf32>
    %36 = tpu.matmul %34, %35, %cst_17 {dimension_numbers = #tpu.dot_dimension_numbers<[1], [0], [0], [1], [0, 0, 1, 1], [], []>} : vector<2x256xbf16>, vector<256x256xbf16>, vector<2x256xf32> -> vector<2x256xf32>
    %c0_18 = arith.constant 0 : index
    %c768 = arith.constant 768 : index
    %37 = vector.load %arg2[%c0_18, %c768] : memref<1x4096xf32, #tpu.memory_space<vmem>>, vector<1x256xf32>
    %38 = vector.broadcast %37 : vector<1x256xf32> to vector<2x256xf32>
    %39 = arith.addf %36, %38 : vector<2x256xf32>
    %cst_19 = arith.constant 0.000000e+00 : f32
    %40 = vector.broadcast %cst_19 : f32 to vector<2x256xf32>
    %41 = arith.maximumf %39, %40 : vector<2x256xf32>
    %42 = arith.truncf %41 : vector<2x256xf32> to vector<2x256xbf16>
    %c768_20 = arith.constant 768 : index
    %c0_21 = arith.constant 0 : index
    %43 = vector.load %arg11[%c768_20, %c0_21] : memref<1024x256xbf16, #tpu.memory_space<vmem>>, vector<256x256xbf16>
    %cst_22 = arith.constant dense<0.000000e+00> : vector<2x256xf32>
    %44 = tpu.matmul %42, %43, %cst_22 {dimension_numbers = #tpu.dot_dimension_numbers<[1], [0], [0], [1], [0, 0, 1, 1], [], []>} : vector<2x256xbf16>, vector<256x256xbf16>, vector<2x256xf32> -> vector<2x256xf32>
    %c0_23 = arith.constant 0 : index
    %c1024 = arith.constant 1024 : index
    %45 = vector.load %arg2[%c0_23, %c1024] : memref<1x4096xf32, #tpu.memory_space<vmem>>, vector<1x256xf32>
    %46 = vector.broadcast %45 : vector<1x256xf32> to vector<2x256xf32>
    %47 = arith.addf %44, %46 : vector<2x256xf32>
    %48 = arith.truncf %47 : vector<2x256xf32> to vector<2x256xbf16>
    %c2_i32_24 = arith.constant 2 : i32
    %49 = tpu.memref_slice %arg16[%c2_i32_24] : memref<6x!tpu.dma_semaphore, #tpu.memory_space<semaphore_mem>> -> memref<1x!tpu.dma_semaphore, #tpu.memory_space<semaphore_mem>>
    %50 = tpu.memref_squeeze %49 : memref<1x!tpu.dma_semaphore, #tpu.memory_space<semaphore_mem>> -> memref<!tpu.dma_semaphore, #tpu.memory_space<semaphore_mem>>
    tpu.wait_dma2 semaphore(%50 : memref<!tpu.dma_semaphore, #tpu.memory_space<semaphore_mem>>) src(%arg5 : memref<768x384xbf16, #tpu.memory_space<any>>) dst(%arg12 : memref<768x384xbf16, #tpu.memory_space<vmem>>)
    %c0_25 = arith.constant 0 : index
    %c0_26 = arith.constant 0 : index
    %51 = vector.load %arg12[%c0_25, %c0_26] : memref<768x384xbf16, #tpu.memory_space<vmem>>, vector<256x384xbf16>
    %cst_27 = arith.constant dense<0.000000e+00> : vector<2x384xf32>
    %52 = tpu.matmul %48, %51, %cst_27 {dimension_numbers = #tpu.dot_dimension_numbers<[1], [0], [0], [1], [0, 0, 1, 1], [], []>} : vector<2x256xbf16>, vector<256x384xbf16>, vector<2x384xf32> -> vector<2x384xf32>
    %c0_28 = arith.constant 0 : index
    %c1280 = arith.constant 1280 : index
    %53 = vector.load %arg2[%c0_28, %c1280] : memref<1x4096xf32, #tpu.memory_space<vmem>>, vector<1x384xf32>
    %54 = vector.broadcast %53 : vector<1x384xf32> to vector<2x384xf32>
    %55 = arith.addf %52, %54 : vector<2x384xf32>
    %cst_29 = arith.constant 0.000000e+00 : f32
    %56 = vector.broadcast %cst_29 : f32 to vector<2x384xf32>
    %57 = arith.maximumf %55, %56 : vector<2x384xf32>
    %58 = vector.extract_strided_slice %57 {offsets = [0, 0], sizes = [2, 128], strides = [1, 1]} : vector<2x384xf32> to vector<2x128xf32>
    %59 = vector.extract_strided_slice %57 {offsets = [0, 128], sizes = [2, 256], strides = [1, 1]} : vector<2x384xf32> to vector<2x256xf32>
    %60 = arith.truncf %58 : vector<2x128xf32> to vector<2x128xbf16>
    %c3_i32_30 = arith.constant 3 : i32
    %61 = tpu.memref_slice %arg16[%c3_i32_30] : memref<6x!tpu.dma_semaphore, #tpu.memory_space<semaphore_mem>> -> memref<1x!tpu.dma_semaphore, #tpu.memory_space<semaphore_mem>>
    %62 = tpu.memref_squeeze %61 : memref<1x!tpu.dma_semaphore, #tpu.memory_space<semaphore_mem>> -> memref<!tpu.dma_semaphore, #tpu.memory_space<semaphore_mem>>
    tpu.wait_dma2 semaphore(%62 : memref<!tpu.dma_semaphore, #tpu.memory_space<semaphore_mem>>) src(%arg6 : memref<896x128xbf16, #tpu.memory_space<any>>) dst(%arg13 : memref<896x128xbf16, #tpu.memory_space<vmem>>)
    %c0_31 = arith.constant 0 : index
    %c0_32 = arith.constant 0 : index
    %63 = vector.load %arg13[%c0_31, %c0_32] : memref<896x128xbf16, #tpu.memory_space<vmem>>, vector<128x128xbf16>
    %cst_33 = arith.constant dense<0.000000e+00> : vector<2x128xf32>
    %64 = tpu.matmul %60, %63, %cst_33 {dimension_numbers = #tpu.dot_dimension_numbers<[1], [0], [0], [1], [0, 0, 1, 1], [], []>} : vector<2x128xbf16>, vector<128x128xbf16>, vector<2x128xf32> -> vector<2x128xf32>
    %c0_34 = arith.constant 0 : index
    %c1664 = arith.constant 1664 : index
    %65 = vector.load %arg2[%c0_34, %c1664] : memref<1x4096xf32, #tpu.memory_space<vmem>>, vector<1x128xf32>
    %66 = vector.broadcast %65 : vector<1x128xf32> to vector<2x128xf32>
    %67 = arith.addf %64, %66 : vector<2x128xf32>
    %cst_35 = arith.constant 0.000000e+00 : f32
    %68 = vector.broadcast %cst_35 : f32 to vector<2x128xf32>
    %69 = arith.maximumf %67, %68 : vector<2x128xf32>
    %70 = arith.truncf %69 : vector<2x128xf32> to vector<2x128xbf16>
    %c128 = arith.constant 128 : index
    %c0_36 = arith.constant 0 : index
    %71 = vector.load %arg13[%c128, %c0_36] : memref<896x128xbf16, #tpu.memory_space<vmem>>, vector<128x128xbf16>
    %cst_37 = arith.constant dense<0.000000e+00> : vector<2x128xf32>
    %72 = tpu.matmul %70, %71, %cst_37 {dimension_numbers = #tpu.dot_dimension_numbers<[1], [0], [0], [1], [0, 0, 1, 1], [], []>} : vector<2x128xbf16>, vector<128x128xbf16>, vector<2x128xf32> -> vector<2x128xf32>
    %c0_38 = arith.constant 0 : index
    %c1792 = arith.constant 1792 : index
    %73 = vector.load %arg2[%c0_38, %c1792] : memref<1x4096xf32, #tpu.memory_space<vmem>>, vector<1x128xf32>
    %74 = vector.broadcast %73 : vector<1x128xf32> to vector<2x128xf32>
    %75 = arith.addf %72, %74 : vector<2x128xf32>
    %76 = vector.extract_strided_slice %75 {offsets = [0, 0], sizes = [2, 16], strides = [1, 1]} : vector<2x128xf32> to vector<2x16xf32>
    %77 = arith.truncf %59 : vector<2x256xf32> to vector<2x256xbf16>
    %c4_i32_39 = arith.constant 4 : i32
    %78 = tpu.memref_slice %arg16[%c4_i32_39] : memref<6x!tpu.dma_semaphore, #tpu.memory_space<semaphore_mem>> -> memref<1x!tpu.dma_semaphore, #tpu.memory_space<semaphore_mem>>
    %79 = tpu.memref_squeeze %78 : memref<1x!tpu.dma_semaphore, #tpu.memory_space<semaphore_mem>> -> memref<!tpu.dma_semaphore, #tpu.memory_space<semaphore_mem>>
    tpu.wait_dma2 semaphore(%79 : memref<!tpu.dma_semaphore, #tpu.memory_space<semaphore_mem>>) src(%arg7 : memref<896x256xbf16, #tpu.memory_space<any>>) dst(%arg14 : memref<896x256xbf16, #tpu.memory_space<vmem>>)
    %c0_40 = arith.constant 0 : index
    %c0_41 = arith.constant 0 : index
    %80 = vector.load %arg14[%c0_40, %c0_41] : memref<896x256xbf16, #tpu.memory_space<vmem>>, vector<256x256xbf16>
    %cst_42 = arith.constant dense<0.000000e+00> : vector<2x256xf32>
    %81 = tpu.matmul %77, %80, %cst_42 {dimension_numbers = #tpu.dot_dimension_numbers<[1], [0], [0], [1], [0, 0, 1, 1], [], []>} : vector<2x256xbf16>, vector<256x256xbf16>, vector<2x256xf32> -> vector<2x256xf32>
    %c0_43 = arith.constant 0 : index
    %c1920 = arith.constant 1920 : index
    %82 = vector.load %arg2[%c0_43, %c1920] : memref<1x4096xf32, #tpu.memory_space<vmem>>, vector<1x256xf32>
    %83 = vector.broadcast %82 : vector<1x256xf32> to vector<2x256xf32>
    %84 = arith.addf %81, %83 : vector<2x256xf32>
    %cst_44 = arith.constant 0.000000e+00 : f32
    %85 = vector.broadcast %cst_44 : f32 to vector<2x256xf32>
    %86 = arith.maximumf %84, %85 : vector<2x256xf32>
    %87 = arith.truncf %86 : vector<2x256xf32> to vector<2x256xbf16>
    %c256 = arith.constant 256 : index
    %c0_45 = arith.constant 0 : index
    %88 = vector.load %arg14[%c256, %c0_45] : memref<896x256xbf16, #tpu.memory_space<vmem>>, vector<256x256xbf16>
    %cst_46 = arith.constant dense<0.000000e+00> : vector<2x256xf32>
    %89 = tpu.matmul %87, %88, %cst_46 {dimension_numbers = #tpu.dot_dimension_numbers<[1], [0], [0], [1], [0, 0, 1, 1], [], []>} : vector<2x256xbf16>, vector<256x256xbf16>, vector<2x256xf32> -> vector<2x256xf32>
    %c0_47 = arith.constant 0 : index
    %c2176 = arith.constant 2176 : index
    %90 = vector.load %arg2[%c0_47, %c2176] : memref<1x4096xf32, #tpu.memory_space<vmem>>, vector<1x256xf32>
    %91 = vector.broadcast %90 : vector<1x256xf32> to vector<2x256xf32>
    %92 = arith.addf %89, %91 : vector<2x256xf32>
    %cst_48 = arith.constant 0.000000e+00 : f32
    %93 = vector.broadcast %cst_48 : f32 to vector<2x16xf32>
    %94 = vector.extract_strided_slice %76 {offsets = [0, 0], sizes = [2, 1], strides = [1, 1]} : vector<2x16xf32> to vector<2x1xf32>
    %95 = vector.extract_strided_slice %92 {offsets = [0, 0], sizes = [2, 16], strides = [1, 1]} : vector<2x256xf32> to vector<2x16xf32>
    %96 = vector.broadcast %94 : vector<2x1xf32> to vector<2x16xf32>
    %97 = arith.mulf %96, %95 : vector<2x16xf32>
    %98 = arith.addf %93, %97 : vector<2x16xf32>
    %99 = vector.extract_strided_slice %76 {offsets = [0, 1], sizes = [2, 1], strides = [1, 1]} : vector<2x16xf32> to vector<2x1xf32>
    %100 = vector.extract_strided_slice %92 {offsets = [0, 16], sizes = [2, 16], strides = [1, 1]} : vector<2x256xf32> to vector<2x16xf32>
    %101 = vector.broadcast %99 : vector<2x1xf32> to vector<2x16xf32>
    %102 = arith.mulf %101, %100 : vector<2x16xf32>
    %103 = arith.addf %98, %102 : vector<2x16xf32>
    %104 = vector.extract_strided_slice %76 {offsets = [0, 2], sizes = [2, 1], strides = [1, 1]} : vector<2x16xf32> to vector<2x1xf32>
    %105 = vector.extract_strided_slice %92 {offsets = [0, 32], sizes = [2, 16], strides = [1, 1]} : vector<2x256xf32> to vector<2x16xf32>
    %106 = vector.broadcast %104 : vector<2x1xf32> to vector<2x16xf32>
    %107 = arith.mulf %106, %105 : vector<2x16xf32>
    %108 = arith.addf %103, %107 : vector<2x16xf32>
    %109 = vector.extract_strided_slice %76 {offsets = [0, 3], sizes = [2, 1], strides = [1, 1]} : vector<2x16xf32> to vector<2x1xf32>
    %110 = vector.extract_strided_slice %92 {offsets = [0, 48], sizes = [2, 16], strides = [1, 1]} : vector<2x256xf32> to vector<2x16xf32>
    %111 = vector.broadcast %109 : vector<2x1xf32> to vector<2x16xf32>
    %112 = arith.mulf %111, %110 : vector<2x16xf32>
    %113 = arith.addf %108, %112 : vector<2x16xf32>
    %114 = vector.extract_strided_slice %76 {offsets = [0, 4], sizes = [2, 1], strides = [1, 1]} : vector<2x16xf32> to vector<2x1xf32>
    %115 = vector.extract_strided_slice %92 {offsets = [0, 64], sizes = [2, 16], strides = [1, 1]} : vector<2x256xf32> to vector<2x16xf32>
    %116 = vector.broadcast %114 : vector<2x1xf32> to vector<2x16xf32>
    %117 = arith.mulf %116, %115 : vector<2x16xf32>
    %118 = arith.addf %113, %117 : vector<2x16xf32>
    %119 = vector.extract_strided_slice %76 {offsets = [0, 5], sizes = [2, 1], strides = [1, 1]} : vector<2x16xf32> to vector<2x1xf32>
    %120 = vector.extract_strided_slice %92 {offsets = [0, 80], sizes = [2, 16], strides = [1, 1]} : vector<2x256xf32> to vector<2x16xf32>
    %121 = vector.broadcast %119 : vector<2x1xf32> to vector<2x16xf32>
    %122 = arith.mulf %121, %120 : vector<2x16xf32>
    %123 = arith.addf %118, %122 : vector<2x16xf32>
    %124 = vector.extract_strided_slice %76 {offsets = [0, 6], sizes = [2, 1], strides = [1, 1]} : vector<2x16xf32> to vector<2x1xf32>
    %125 = vector.extract_strided_slice %92 {offsets = [0, 96], sizes = [2, 16], strides = [1, 1]} : vector<2x256xf32> to vector<2x16xf32>
    %126 = vector.broadcast %124 : vector<2x1xf32> to vector<2x16xf32>
    %127 = arith.mulf %126, %125 : vector<2x16xf32>
    %128 = arith.addf %123, %127 : vector<2x16xf32>
    %129 = vector.extract_strided_slice %76 {offsets = [0, 7], sizes = [2, 1], strides = [1, 1]} : vector<2x16xf32> to vector<2x1xf32>
    %130 = vector.extract_strided_slice %92 {offsets = [0, 112], sizes = [2, 16], strides = [1, 1]} : vector<2x256xf32> to vector<2x16xf32>
    %131 = vector.broadcast %129 : vector<2x1xf32> to vector<2x16xf32>
    %132 = arith.mulf %131, %130 : vector<2x16xf32>
    %133 = arith.addf %128, %132 : vector<2x16xf32>
    %134 = vector.extract_strided_slice %76 {offsets = [0, 8], sizes = [2, 1], strides = [1, 1]} : vector<2x16xf32> to vector<2x1xf32>
    %135 = vector.extract_strided_slice %92 {offsets = [0, 128], sizes = [2, 16], strides = [1, 1]} : vector<2x256xf32> to vector<2x16xf32>
    %136 = vector.broadcast %134 : vector<2x1xf32> to vector<2x16xf32>
    %137 = arith.mulf %136, %135 : vector<2x16xf32>
    %138 = arith.addf %133, %137 : vector<2x16xf32>
    %139 = vector.extract_strided_slice %76 {offsets = [0, 9], sizes = [2, 1], strides = [1, 1]} : vector<2x16xf32> to vector<2x1xf32>
    %140 = vector.extract_strided_slice %92 {offsets = [0, 144], sizes = [2, 16], strides = [1, 1]} : vector<2x256xf32> to vector<2x16xf32>
    %141 = vector.broadcast %139 : vector<2x1xf32> to vector<2x16xf32>
    %142 = arith.mulf %141, %140 : vector<2x16xf32>
    %143 = arith.addf %138, %142 : vector<2x16xf32>
    %144 = vector.extract_strided_slice %76 {offsets = [0, 10], sizes = [2, 1], strides = [1, 1]} : vector<2x16xf32> to vector<2x1xf32>
    %145 = vector.extract_strided_slice %92 {offsets = [0, 160], sizes = [2, 16], strides = [1, 1]} : vector<2x256xf32> to vector<2x16xf32>
    %146 = vector.broadcast %144 : vector<2x1xf32> to vector<2x16xf32>
    %147 = arith.mulf %146, %145 : vector<2x16xf32>
    %148 = arith.addf %143, %147 : vector<2x16xf32>
    %149 = vector.extract_strided_slice %76 {offsets = [0, 11], sizes = [2, 1], strides = [1, 1]} : vector<2x16xf32> to vector<2x1xf32>
    %150 = vector.extract_strided_slice %92 {offsets = [0, 176], sizes = [2, 16], strides = [1, 1]} : vector<2x256xf32> to vector<2x16xf32>
    %151 = vector.broadcast %149 : vector<2x1xf32> to vector<2x16xf32>
    %152 = arith.mulf %151, %150 : vector<2x16xf32>
    %153 = arith.addf %148, %152 : vector<2x16xf32>
    %154 = vector.extract_strided_slice %76 {offsets = [0, 12], sizes = [2, 1], strides = [1, 1]} : vector<2x16xf32> to vector<2x1xf32>
    %155 = vector.extract_strided_slice %92 {offsets = [0, 192], sizes = [2, 16], strides = [1, 1]} : vector<2x256xf32> to vector<2x16xf32>
    %156 = vector.broadcast %154 : vector<2x1xf32> to vector<2x16xf32>
    %157 = arith.mulf %156, %155 : vector<2x16xf32>
    %158 = arith.addf %153, %157 : vector<2x16xf32>
    %159 = vector.extract_strided_slice %76 {offsets = [0, 13], sizes = [2, 1], strides = [1, 1]} : vector<2x16xf32> to vector<2x1xf32>
    %160 = vector.extract_strided_slice %92 {offsets = [0, 208], sizes = [2, 16], strides = [1, 1]} : vector<2x256xf32> to vector<2x16xf32>
    %161 = vector.broadcast %159 : vector<2x1xf32> to vector<2x16xf32>
    %162 = arith.mulf %161, %160 : vector<2x16xf32>
    %163 = arith.addf %158, %162 : vector<2x16xf32>
    %164 = vector.extract_strided_slice %76 {offsets = [0, 14], sizes = [2, 1], strides = [1, 1]} : vector<2x16xf32> to vector<2x1xf32>
    %165 = vector.extract_strided_slice %92 {offsets = [0, 224], sizes = [2, 16], strides = [1, 1]} : vector<2x256xf32> to vector<2x16xf32>
    %166 = vector.broadcast %164 : vector<2x1xf32> to vector<2x16xf32>
    %167 = arith.mulf %166, %165 : vector<2x16xf32>
    %168 = arith.addf %163, %167 : vector<2x16xf32>
    %169 = vector.extract_strided_slice %76 {offsets = [0, 15], sizes = [2, 1], strides = [1, 1]} : vector<2x16xf32> to vector<2x1xf32>
    %170 = vector.extract_strided_slice %92 {offsets = [0, 240], sizes = [2, 16], strides = [1, 1]} : vector<2x256xf32> to vector<2x16xf32>
    %171 = vector.broadcast %169 : vector<2x1xf32> to vector<2x16xf32>
    %172 = arith.mulf %171, %170 : vector<2x16xf32>
    %173 = arith.addf %168, %172 : vector<2x16xf32>
    %174 = arith.truncf %173 : vector<2x16xf32> to vector<2x16xbf16>
    %c5_i32_49 = arith.constant 5 : i32
    %175 = tpu.memref_slice %arg16[%c5_i32_49] : memref<6x!tpu.dma_semaphore, #tpu.memory_space<semaphore_mem>> -> memref<1x!tpu.dma_semaphore, #tpu.memory_space<semaphore_mem>>
    %176 = tpu.memref_squeeze %175 : memref<1x!tpu.dma_semaphore, #tpu.memory_space<semaphore_mem>> -> memref<!tpu.dma_semaphore, #tpu.memory_space<semaphore_mem>>
    tpu.wait_dma2 semaphore(%176 : memref<!tpu.dma_semaphore, #tpu.memory_space<semaphore_mem>>) src(%arg8 : memref<16x1024xbf16, #tpu.memory_space<any>>) dst(%arg15 : memref<16x1024xbf16, #tpu.memory_space<vmem>>)
    %c0_50 = arith.constant 0 : index
    %c0_51 = arith.constant 0 : index
    %177 = vector.load %arg15[%c0_50, %c0_51] : memref<16x1024xbf16, #tpu.memory_space<vmem>>, vector<16x1024xbf16>
    %cst_52 = arith.constant dense<0.000000e+00> : vector<2x1024xf32>
    %178 = tpu.matmul %174, %177, %cst_52 {dimension_numbers = #tpu.dot_dimension_numbers<[1], [0], [0], [1], [0, 0, 1, 1], [], []>} : vector<2x16xbf16>, vector<16x1024xbf16>, vector<2x1024xf32> -> vector<2x1024xf32>
    %179 = vector.extract_strided_slice %178 {offsets = [0, 0], sizes = [2, 512], strides = [1, 1]} : vector<2x1024xf32> to vector<2x512xf32>
    %180 = vector.extract_strided_slice %178 {offsets = [0, 512], sizes = [2, 384], strides = [1, 1]} : vector<2x1024xf32> to vector<2x384xf32>
    %181 = vector.extract_strided_slice %178 {offsets = [0, 896], sizes = [2, 128], strides = [1, 1]} : vector<2x1024xf32> to vector<2x128xf32>
    %182 = arith.truncf %13 : vector<2x24xf32> to vector<2x24xbf16>
    %c32 = arith.constant 32 : index
    %c0_53 = arith.constant 0 : index
    %183 = vector.load %arg10[%c32, %c0_53] : memref<56x512xbf16, #tpu.memory_space<vmem>>, vector<24x512xbf16>
    %cst_54 = arith.constant dense<0.000000e+00> : vector<2x512xf32>
    %184 = tpu.matmul %182, %183, %cst_54 {dimension_numbers = #tpu.dot_dimension_numbers<[1], [0], [0], [1], [0, 0, 1, 1], [], []>} : vector<2x24xbf16>, vector<24x512xbf16>, vector<2x512xf32> -> vector<2x512xf32>
    %185 = arith.addf %179, %184 : vector<2x512xf32>
    %c0_55 = arith.constant 0 : index
    %c2432 = arith.constant 2432 : index
    %186 = vector.load %arg2[%c0_55, %c2432] : memref<1x4096xf32, #tpu.memory_space<vmem>>, vector<1x512xf32>
    %187 = vector.broadcast %186 : vector<1x512xf32> to vector<2x512xf32>
    %188 = arith.addf %185, %187 : vector<2x512xf32>
    %cst_56 = arith.constant 0.000000e+00 : f32
    %189 = vector.broadcast %cst_56 : f32 to vector<2x512xf32>
    %190 = arith.maximumf %188, %189 : vector<2x512xf32>
    %191 = arith.truncf %190 : vector<2x512xf32> to vector<2x512xbf16>
    %c256_57 = arith.constant 256 : index
    %c0_58 = arith.constant 0 : index
    %192 = vector.load %arg12[%c256_57, %c0_58] : memref<768x384xbf16, #tpu.memory_space<vmem>>, vector<512x384xbf16>
    %cst_59 = arith.constant dense<0.000000e+00> : vector<2x384xf32>
    %193 = tpu.matmul %191, %192, %cst_59 {dimension_numbers = #tpu.dot_dimension_numbers<[1], [0], [0], [1], [0, 0, 1, 1], [], []>} : vector<2x512xbf16>, vector<512x384xbf16>, vector<2x384xf32> -> vector<2x384xf32>
    %194 = arith.addf %180, %193 : vector<2x384xf32>
    %c0_60 = arith.constant 0 : index
    %c2944 = arith.constant 2944 : index
    %195 = vector.load %arg2[%c0_60, %c2944] : memref<1x4096xf32, #tpu.memory_space<vmem>>, vector<1x384xf32>
    %196 = vector.broadcast %195 : vector<1x384xf32> to vector<2x384xf32>
    %197 = arith.addf %194, %196 : vector<2x384xf32>
    %cst_61 = arith.constant 0.000000e+00 : f32
    %198 = vector.broadcast %cst_61 : f32 to vector<2x384xf32>
    %199 = arith.maximumf %197, %198 : vector<2x384xf32>
    %200 = arith.truncf %199 : vector<2x384xf32> to vector<2x384xbf16>
    %c512_62 = arith.constant 512 : index
    %c0_63 = arith.constant 0 : index
    %201 = vector.load %arg14[%c512_62, %c0_63] : memref<896x256xbf16, #tpu.memory_space<vmem>>, vector<384x256xbf16>
    %cst_64 = arith.constant dense<0.000000e+00> : vector<2x256xf32>
    %202 = tpu.matmul %200, %201, %cst_64 {dimension_numbers = #tpu.dot_dimension_numbers<[1], [0], [0], [1], [0, 0, 1, 1], [], []>} : vector<2x384xbf16>, vector<384x256xbf16>, vector<2x256xf32> -> vector<2x256xf32>
    %c0_65 = arith.constant 0 : index
    %c3328 = arith.constant 3328 : index
    %203 = vector.load %arg2[%c0_65, %c3328] : memref<1x4096xf32, #tpu.memory_space<vmem>>, vector<1x256xf32>
    %204 = vector.broadcast %203 : vector<1x256xf32> to vector<2x256xf32>
    %205 = arith.addf %202, %204 : vector<2x256xf32>
    %cst_66 = arith.constant 0.000000e+00 : f32
    %206 = vector.broadcast %cst_66 : f32 to vector<2x256xf32>
    %207 = arith.maximumf %205, %206 : vector<2x256xf32>
    %208 = arith.truncf %207 : vector<2x256xf32> to vector<2x256xbf16>
    %c256_67 = arith.constant 256 : index
    %c0_68 = arith.constant 0 : index
    %209 = vector.load %arg13[%c256_67, %c0_68] : memref<896x128xbf16, #tpu.memory_space<vmem>>, vector<256x128xbf16>
    %cst_69 = arith.constant dense<0.000000e+00> : vector<2x128xf32>
    %210 = tpu.matmul %208, %209, %cst_69 {dimension_numbers = #tpu.dot_dimension_numbers<[1], [0], [0], [1], [0, 0, 1, 1], [], []>} : vector<2x256xbf16>, vector<256x128xbf16>, vector<2x128xf32> -> vector<2x128xf32>
    %211 = arith.addf %181, %210 : vector<2x128xf32>
    %c0_70 = arith.constant 0 : index
    %c3584 = arith.constant 3584 : index
    %212 = vector.load %arg2[%c0_70, %c3584] : memref<1x4096xf32, #tpu.memory_space<vmem>>, vector<1x128xf32>
    %213 = vector.broadcast %212 : vector<1x128xf32> to vector<2x128xf32>
    %214 = arith.addf %211, %213 : vector<2x128xf32>
    %cst_71 = arith.constant 0.000000e+00 : f32
    %215 = vector.broadcast %cst_71 : f32 to vector<2x128xf32>
    %216 = arith.maximumf %214, %215 : vector<2x128xf32>
    %217 = arith.truncf %216 : vector<2x128xf32> to vector<2x128xbf16>
    %c512_72 = arith.constant 512 : index
    %c0_73 = arith.constant 0 : index
    %218 = vector.load %arg13[%c512_72, %c0_73] : memref<896x128xbf16, #tpu.memory_space<vmem>>, vector<128x128xbf16>
    %cst_74 = arith.constant dense<0.000000e+00> : vector<2x128xf32>
    %219 = tpu.matmul %217, %218, %cst_74 {dimension_numbers = #tpu.dot_dimension_numbers<[1], [0], [0], [1], [0, 0, 1, 1], [], []>} : vector<2x128xbf16>, vector<128x128xbf16>, vector<2x128xf32> -> vector<2x128xf32>
    %c0_75 = arith.constant 0 : index
    %c3712 = arith.constant 3712 : index
    %220 = vector.load %arg2[%c0_75, %c3712] : memref<1x4096xf32, #tpu.memory_space<vmem>>, vector<1x128xf32>
    %221 = vector.broadcast %220 : vector<1x128xf32> to vector<2x128xf32>
    %222 = arith.addf %219, %221 : vector<2x128xf32>
    %cst_76 = arith.constant 0.000000e+00 : f32
    %223 = vector.broadcast %cst_76 : f32 to vector<2x128xf32>
    %224 = arith.maximumf %222, %223 : vector<2x128xf32>
    %225 = arith.truncf %224 : vector<2x128xf32> to vector<2x128xbf16>
    %c640 = arith.constant 640 : index
    %c0_77 = arith.constant 0 : index
    %226 = vector.load %arg13[%c640, %c0_77] : memref<896x128xbf16, #tpu.memory_space<vmem>>, vector<128x128xbf16>
    %cst_78 = arith.constant dense<0.000000e+00> : vector<2x128xf32>
    %227 = tpu.matmul %225, %226, %cst_78 {dimension_numbers = #tpu.dot_dimension_numbers<[1], [0], [0], [1], [0, 0, 1, 1], [], []>} : vector<2x128xbf16>, vector<128x128xbf16>, vector<2x128xf32> -> vector<2x128xf32>
    %c0_79 = arith.constant 0 : index
    %c3840 = arith.constant 3840 : index
    %228 = vector.load %arg2[%c0_79, %c3840] : memref<1x4096xf32, #tpu.memory_space<vmem>>, vector<1x128xf32>
    %229 = vector.broadcast %228 : vector<1x128xf32> to vector<2x128xf32>
    %230 = arith.addf %227, %229 : vector<2x128xf32>
    %cst_80 = arith.constant 0.000000e+00 : f32
    %231 = vector.broadcast %cst_80 : f32 to vector<2x128xf32>
    %232 = arith.maximumf %230, %231 : vector<2x128xf32>
    %233 = arith.truncf %232 : vector<2x128xf32> to vector<2x128xbf16>
    %c768_81 = arith.constant 768 : index
    %c0_82 = arith.constant 0 : index
    %234 = vector.load %arg13[%c768_81, %c0_82] : memref<896x128xbf16, #tpu.memory_space<vmem>>, vector<128x128xbf16>
    %cst_83 = arith.constant dense<0.000000e+00> : vector<2x128xf32>
    %235 = tpu.matmul %233, %234, %cst_83 {dimension_numbers = #tpu.dot_dimension_numbers<[1], [0], [0], [1], [0, 0, 1, 1], [], []>} : vector<2x128xbf16>, vector<128x128xbf16>, vector<2x128xf32> -> vector<2x128xf32>
    %c0_84 = arith.constant 0 : index
    %c3968 = arith.constant 3968 : index
    %236 = vector.load %arg2[%c0_84, %c3968] : memref<1x4096xf32, #tpu.memory_space<vmem>>, vector<1x128xf32>
    %237 = vector.broadcast %236 : vector<1x128xf32> to vector<2x128xf32>
    %238 = arith.addf %235, %237 : vector<2x128xf32>
    %239 = vector.extract_strided_slice %238 {offsets = [0, 0], sizes = [2, 4], strides = [1, 1]} : vector<2x128xf32> to vector<2x4xf32>
    %240 = math.tanh %239 : vector<2x4xf32>
    %cst_85 = arith.constant 2.000000e+00 : f32
    %241 = vector.broadcast %cst_85 : f32 to vector<2x4xf32>
    %242 = arith.mulf %240, %241 : vector<2x4xf32>
    %c0_86 = arith.constant 0 : index
    %c0_87 = arith.constant 0 : index
    %243 = vector.load %arg9[%c0_86, %c0_87] : memref<2x4xf32, #tpu.memory_space<vmem>>, vector<2x4xf32>
    tpu.vector_store %arg9[%c0_86, %c0_87], %242 {strides = array<i32>} : memref<2x4xf32, #tpu.memory_space<vmem>>, vector<2x4xf32>,
    return
  }
}

</mosaic_0001>

<bundles_post_ra>
// kernel: actor_forward.1
= control target key start
LH: loop header
LB: loop body
LE: loop exit
PB: predicated region body
PF: predicated region fallthrough
CT: control target
= control target key end

     0   :  { %14 = vsyncpa [#allocation10], 0  ;;  %s3314_s0 = inlined_call_operand.hbm [shape: f32[2,32], index: 0, kind: input, shape index: {}]   ;;  %s3315_s1 = inlined_call_operand.vmem [shape: f32[2,24], index: 1, kind: input, shape index: {}]   ;;  %s3316_s2 = inlined_call_operand.hbm [shape: f32[1,4096], index: 2, kind: input, shape index: {}]   ;;  %s3317_s3 = inlined_call_operand.hbm [shape: bf16[56,512], index: 3, kind: input, shape index: {}]   ;;  %s3318_s4 = inlined_call_operand.hbm [shape: bf16[1024,256], index: 4, kind: input, shape index: {}]   ;;  %s3319_s5 = inlined_call_operand.hbm [shape: bf16[768,384], index: 5, kind: input, shape index: {}]   ;;  %s3320_s6 = inlined_call_operand.hbm [shape: bf16[896,128], index: 6, kind: input, shape index: {}]   ;;  %s3321_s7 = inlined_call_operand.hbm [shape: bf16[896,256], index: 7, kind: input, shape index: {}]   ;;  %s3322_s8 = inlined_call_operand.hbm [shape: bf16[16,1024], index: 8, kind: input, shape index: {}]   ;;  %s3323_s9 = inlined_call_operand.hbm [shape: f32[2,4], index: 9, kind: output, shape index: {}]  }
   0x1   :  { %15 = vsyncpa [#allocation13], 0 }
   0x2   :  { %16 = vsyncpa [#allocation11], 0  ;;  %s2914_s30 = smov [#allocation9]   ;;  %s2915_s11 = smov [#allocation12]  }
   0x3   :  { %s23_s10 = sshll.u32 %s2914_s30, 4  ;;  %s35_s12 = sshll.u32 %s2915_s11, 4  ;;  %s24_s10 = int_to_ptr.vmem [resolvable:$true] %s23_s10  ;;  %s36_s12 = int_to_ptr.vmem [resolvable:$true] %s35_s12 }
   0x4   :  { %s2786_s15 = scalar_lea.hbm %s3314_s0, 32 }
   0x5   :  { %p2787_p0 = scmp.ne.s32.totalorder %s3314_s0, %s2786_s15  ;;  %p2790_p1 = scmp.lt.u32.totalorder %s2786_s15, %s3314_s0 }
   0x7   :  { %p2792_p2 = pnand %p2790_p1, %p2787_p0 }
   0x9   :  { %2795 = shalt.err (!%p2792_p2)
}
   0xa   :  { %s2796_s20 = scalar_lea.vmem %s24_s10, 32  ;;  %p2801_p4 = scmp.lt.s32.totalorder %s24_s10, %s24_s10 }
   0xb   :  { %p2797_p3 = scmp.ne.s32.totalorder %s24_s10, %s2796_s20  ;;  %p2802_p5 = scmp.lt.s32.totalorder %s2796_s20, %s2796_s20 }
   0xd   :  { %p2803_p6 = por %p2802_p5, %p2801_p4 }
   0xf   :  { %p2804_p7 = pnand %p2803_p6, %p2797_p3 }
  0x11   :  { %2807 = shalt.err (!%p2804_p7)
}
  0x12   :  { %26 = dma.hbm_to_vmem [thread:$0]  %s3314_s0, 32, %s24_s10, [#allocation10]  }
  0x13   :  { %s2808_s25 = scalar_lea.hbm %s3316_s2, 512 }
  0x14   :  { %p2809_p8 = scmp.ne.s32.totalorder %s3316_s2, %s2808_s25  ;;  %p2812_p9 = scmp.lt.u32.totalorder %s2808_s25, %s3316_s2 }
  0x16   :  { %p2814_p10 = pnand %p2812_p9, %p2809_p8 }
  0x18   :  { %2817 = shalt.err (!%p2814_p10)
}
  0x19   :  { %s2818_s30 = scalar_lea.vmem %s36_s12, 512  ;;  %p2823_p12 = scmp.lt.s32.totalorder %s36_s12, %s36_s12 }
  0x1a   :  { %p2819_p11 = scmp.ne.s32.totalorder %s36_s12, %s2818_s30  ;;  %p2824_p13 = scmp.lt.s32.totalorder %s2818_s30, %s2818_s30 }
  0x1c   :  { %p2825_p0 = por %p2824_p13, %p2823_p12 }
  0x1e   :  { %p2826_p1 = pnand %p2825_p0, %p2819_p11 }
  0x20   :  { %2829 = shalt.err (!%p2826_p1)
}
  0x21   :  { %38 = dma.hbm_to_vmem [thread:$0]  %s3316_s2, 512, %s36_s12, [#allocation13]  }
  0x22   :  { %2896 = dma.done.wait [#allocation10], 32  }
  0x23   :  { %2897 = vsyncadd [#allocation10], 4294967264 }
  0x24   :  { %2898 = dma.done.wait [#allocation13], 512  }
  0x25   :  { %2899 = vsyncadd [#allocation13], 4294966784  ;;  %s62_s11 = sld [smem:[#allocation0]]   ;;  %s2916_s13 = smov 256  }
  0x26   :  { %74 = sst [smem:[#allocation20]] %s2916_s13  ;;  %s2917_s14 = smov 64  }
  0x27   :  { %76 = sst [smem:[#allocation20 + $0x1]] %s2916_s13  ;;  %s2918_s15 = smov [#allocation2]  }
  0x28   :  { %80 = sst [smem:[#allocation20 + $0x3]] %s2917_s14  ;;  %s53_s16 = sshll.u32 %s2918_s15, 4  ;;  %s54_s16 = int_to_ptr.vmem [resolvable:$true] %s53_s16 }
  0x29   :  { %88 = sst [smem:[#allocation20 + $0x7]] %s2917_s14  ;;  %s2830_s12 = scalar_lea.hbm %s3317_s3, 1792 }
  0x2a   :  { %p2831_p2 = scmp.ne.s32.totalorder %s3317_s3, %s2830_s12  ;;  %p2834_p3 = scmp.lt.u32.totalorder %s2830_s12, %s3317_s3 }
  0x2c   :  { %p2836_p4 = pnand %p2834_p3, %p2831_p2 }
  0x2e   :  { %2839 = shalt.err (!%p2836_p4)  }
  0x2f   :  { %s2840_s22 = scalar_lea.vmem %s54_s16, 1792  ;;  %p2845_p6 = scmp.lt.s32.totalorder %s54_s16, %s54_s16 }
  0x30   :  { %p2841_p5 = scmp.ne.s32.totalorder %s54_s16, %s2840_s22  ;;  %p2846_p7 = scmp.lt.s32.totalorder %s2840_s22, %s2840_s22 }
  0x32   :  { %p2847_p8 = por %p2846_p7, %p2845_p6 }
  0x34   :  { %p2848_p9 = pnand %p2847_p8, %p2841_p5 }
  0x36   :  { %2851 = shalt.err (!%p2848_p9)  }
  0x37   :  { %56 = dma.hbm_to_vmem [thread:$0]  %s3317_s3, 1792, %s54_s16, [#allocation8] }
  0x38   :  { %s2404_s25 = sshll.u32 %s62_s11, 26  ;;  %s2919_s26 = smov [#allocation3]  }
  0x39   :  { %s70_s27 = sshll.u32 %s2919_s26, 4  ;;  %s3054_s28 = sadd.s32 134217728, %s2404_s25  ;;  %s71_s27 = int_to_ptr.vmem [resolvable:$true] %s70_s27 }
  0x3a   :  { %s2920_s29 = smov 2   ;;  %s2921_s30 = smov 128  }
  0x3b   :  { %78 = sst [smem:[#allocation20 + $0x2]] %s2920_s29  ;;  %s2922_s0 = smov 4  }
  0x3c   :  { %82 = sst [smem:[#allocation20 + $0x4]] %s2921_s30  ;;  %s2923_s3 = smov [#allocation8 + $0x1]  }
  0x3d   :  { %84 = sst [smem:[#allocation20 + $0x5]] %s2920_s29  ;;  %s2924_s10 = smov [#allocation19]  }
  0x3e   :  { %86 = sst [smem:[#allocation20 + $0x6]] %s2921_s30  ;;  %s2925_s16 = smov 384  }
  0x3f   :  { %90 = sst [smem:[#allocation20 + $0x8]] %s2922_s0  ;;  %s2926_s17 = smov 3  }
  0x40   :  { %92 = dma.general %s3318_s4, 16384, %s71_s27, %s2923_s3, %s2924_s10, [#allocation20], %s3054_s28, 0  }
  0x41   :  { %109 = sst [smem:[#allocation22]] %s2925_s16  ;;  %s2927_s2 = smov [#allocation4]  }
  0x42   :  { %111 = sst [smem:[#allocation22 + $0x1]] %s2925_s16  ;;  %s105_s12 = sshll.u32 %s2927_s2, 4  ;;  %s106_s12 = int_to_ptr.vmem [resolvable:$true] %s105_s12 }
  0x43   :  { %113 = sst [smem:[#allocation22 + $0x2]] %s2926_s17  ;;  %s2928_s18 = smov 192  }
  0x44   :  { %115 = sst [smem:[#allocation22 + $0x3]] %s2917_s14  ;;  %s2929_s4 = smov [#allocation8 + $0x2]  }
  0x45   :  { %117 = sst [smem:[#allocation22 + $0x4]] %s2921_s30  ;;  %s2930_s19 = smov [#allocation21]  }
  0x46   :  { %119 = sst [smem:[#allocation22 + $0x5]] %s2920_s29  ;;  %s2931_s22 = smov [#allocation5]  }
  0x47   :  { %121 = sst [smem:[#allocation22 + $0x6]] %s2928_s18  ;;  %s136_s23 = sshll.u32 %s2931_s22, 4  ;;  %s137_s23 = int_to_ptr.vmem [resolvable:$true] %s136_s23 }
  0x48   :  { %123 = sst [smem:[#allocation22 + $0x7]] %s2917_s14  ;;  %s2932_s24 = smov [#allocation6]  }
  0x49   :  { %125 = sst [smem:[#allocation22 + $0x8]] %s2922_s0  ;;  %s3077_s25 = sshll.u32 %s2932_s24, 4  ;;  %s153_s25 = int_to_ptr.vmem [resolvable:$true] %s3077_s25 }
  0x4a   :  { %127 = dma.general %s3319_s5, 18432, %s106_s12, %s2929_s4, %s2930_s19, [#allocation22], %s3054_s28, 0  }
  0x4b   :  { %156 = sst [smem:[#allocation26]] %s2916_s13  ;;  %s2933_s5 = smov [#allocation7]  }
  0x4c   :  { %158 = sst [smem:[#allocation26 + $0x1]] %s2916_s13  ;;  %s3086_s13 = sshll.u32 %s2933_s5, 4  ;;  %s188_s13 = int_to_ptr.vmem [resolvable:$true] %s3086_s13 }
  0x4d   :  { %160 = sst [smem:[#allocation26 + $0x2]] %s2920_s29  ;;  %s2852_s3 = scalar_lea.hbm %s3320_s6, 7168 }
  0x4e   :  { %162 = sst [smem:[#allocation26 + $0x3]] %s2917_s14  ;;  %p2853_p10 = scmp.ne.s32.totalorder %s3320_s6, %s2852_s3 }
  0x4f   :  { %164 = sst [smem:[#allocation26 + $0x4]] %s2921_s30  ;;  %p2856_p11 = scmp.lt.u32.totalorder %s2852_s3, %s3320_s6 }
  0x50   :  { %166 = sst [smem:[#allocation26 + $0x5]] %s2920_s29 }
  0x51   :  { %168 = sst [smem:[#allocation26 + $0x6]] %s2921_s30  ;;  %p2858_p12 = pnand %p2856_p11, %p2853_p10 }
  0x52   :  { %170 = sst [smem:[#allocation26 + $0x7]] %s2917_s14 }
  0x53   :  { %172 = sst [smem:[#allocation26 + $0x8]] %s2922_s0 }
  0x54   :  { %2861 = shalt.err (!%p2858_p12)  }
  0x55   :  { %s2862_s17 = scalar_lea.vmem %s137_s23, 7168  ;;  %p2867_p0 = scmp.lt.s32.totalorder %s137_s23, %s137_s23 }
  0x56   :  { %p2863_p13 = scmp.ne.s32.totalorder %s137_s23, %s2862_s17  ;;  %p2868_p1 = scmp.lt.s32.totalorder %s2862_s17, %s2862_s17 }
  0x58   :  { %p2869_p2 = por %p2868_p1, %p2867_p0 }
  0x5a   :  { %p2870_p3 = pnand %p2869_p2, %p2863_p13 }
  0x5c   :  { %2873 = shalt.err (!%p2870_p3)  }
  0x5d   :  { %139 = dma.hbm_to_vmem [thread:$0]  %s3320_s6, 7168, %s137_s23, [#allocation8 + $0x3] }
  0x5e   :  { %s2934_s18 = smov [#allocation8 + $0x4]   ;;  %s2935_s4 = smov [#allocation25]  }
  0x5f   :  { %174 = dma.general %s3321_s7, 14336, %s153_s25, %s2934_s18, %s2935_s4, [#allocation26], %s3054_s28, 0  }
  0x60   :  { %191 = sst [smem:[#allocation28]] %s2917_s14  ;;  %s2936_s21 = smov 512  }
  0x61   :  { %193 = sst [smem:[#allocation28 + $0x1]] %s2921_s30  ;;  %s2937_s6 = smov [#allocation8 + $0x5]  }
  0x62   :  { %195 = sst [smem:[#allocation28 + $0x2]] %s2920_s29  ;;  %s2938_s22 = smov [#allocation27]  }
  0x63   :  { %197 = sst [smem:[#allocation28 + $0x3]] %s2936_s21 }
  0x64   :  { %199 = sst [smem:[#allocation28 + $0x4]] %s2917_s14 }
  0x65   :  { %201 = sst [smem:[#allocation28 + $0x5]] %s2922_s0 }
  0x66   :  { %203 = dma.general %s3322_s8, 1024, %s188_s13, %s2937_s6, %s2938_s22, [#allocation28], %s3054_s28, 0  }
  0x67   :  { %v204_v0 = vld [vmem:[#allocation9] sm:$0x3]  ;;  %v3117_v1 = vld [vmem:[%s3315_s1] sm:$0x3] }
  0x68   :  { %v206_v2 = vpack.c.bf16 %v204_v0, %v204_v0 }
  0x69   :  { %2900 = dma.done.wait [#allocation8], 1792 }
  0x6a   :  { %2901 = vsyncadd [#allocation8], 4294965504  ;;  %v2939_v3 = vmov 0   ;;  %v2745_v4 = vld [vmem:[#allocation2 + $0x4] ss:$16 sps:$4 sm:$0xff]   ;;  %vm281_vm0 = vcmask 261120   ;;  %v221_v12 = vlaneseq }
  0x6b   :  { %317 = vmatprep.mubr.bf16.mxu1 %v2939_v3  ;;  %v2747_v5 = vld [vmem:[#allocation2] ss:$16 sps:$4 sm:$0xff]   ;;  %285 = vmatprep.subr.bf16.mxu1 %v2745_v4  ;;  %v2748_v6 = vld [vmem:[#allocation2 + $0x24] ss:$16 sps:$4 sm:$0xff]   ;;  %v2753_v8 = vld [vmem:[#allocation2 + $0xc] ss:$16 sps:$4 sm:$0xff]  }
  0x6c   :  { %286 = vmatpush1.bf16.msra.mxu1 %v2747_v5  ;;  %v2750_v7 = vld [vmem:[#allocation2 + $0x20] ss:$16 sps:$4 sm:$0xff]   ;;  %v2751_v9 = vld [vmem:[#allocation2 + $0x8] ss:$16 sps:$4 sm:$0xff]   ;;  %v2756_v10 = vld [vmem:[#allocation2 + $0x2c] ss:$16 sps:$4 sm:$0xff]  }
  0x6d   :  { %287 = vmatprep.subr.bf16.mxu1 %v2748_v6  ;;  %v2754_v11 = vld [vmem:[#allocation2 + $0x28] ss:$16 sps:$4 sm:$0xff]   ;;  %v3121_v13 = vshrl.u32 %v221_v12, 7  ;;  %v219_v15 = vld [vmem:[#allocation12] sm:$0xf] }
  0x6f   :  { %v3124_v14 = vsub.s32 0, %v3121_v13  ;;  %v3127_v16 = vsub.s32 1, %v3121_v13  ;;  %v3132_v22 = vsub.s32 2, %v3121_v13  ;;  %v235_v25 = vsub.s32 3, %v3121_v13 }
  0x70   :  { %288 = vmatpush1.bf16.msra.mxu1 %v2750_v7 }
  0x71   :  { %326 = vmatprep.subr.bf16.mxu1 %v2753_v8  ;;  %v224_v17 = vrot.slane %v219_v15, %v3124_v14  ;;  %v228_v18 = vrot.slane %v219_v15, %v3127_v16  ;;  %v232_v30 = vrot.slane %v219_v15, %v3132_v22  ;;  %v236_v32 = vrot.slane %v219_v15, %v235_v25 }
  0x73   :  { %2420 = vmatmul.mubr.msk.bf16.vlgmr.msra.gmra.mrb[0].mxu1 %vm281_vm0, %v206_v2 }
  0x74   :  { %327 = vmatpush1.bf16.msra.mxu1 %v2751_v9  ;;  %358 = vmatprep.mubr.bf16.mxu1 %v2939_v3 }
  0x75   :  { %328 = vmatprep.subr.bf16.mxu1 %v2756_v10 }
  0x78   :  { %329 = vmatpush1.bf16.msra.mxu1 %v2754_v11 }
  0x7b   :  { %2421 = vmatmul.mubr.msk.bf16.vlgmr.msra.gmra.mrb[4].mxu1 %vm281_vm0, %v206_v2 }
 0x146   :  { %v319_v19 = vpop.f32.mrb[0].mxu1 }
 0x147   :  { %v320_v20 = vadd.f32 %v319_v19, %v224_v17  ;;  %v321_v21 = vpop.f32.mrb[1].mxu1 }
 0x148   :  { %v322_v23 = vadd.f32 %v321_v21, %v228_v18  ;;  %v323_v24 = vpop.f32.mrb[2].mxu1 }
 0x149   :  { %v367_v26 = vmax.f32 %v320_v20, 0.0  ;;  %v324_v27 = vpop.f32.mrb[3].mxu1 }
 0x14a   :  { %v368_v28 = vmax.f32 %v322_v23, 0.0 }
 0x14b   :  { %v3135_v29 = vpack.c.bf16 %v367_v26, %v367_v26 }
 0x14c   :  { %v372_v31 = vpack.c.bf16 %v368_v28, %v368_v28 }
 0x14e   :  { %v360_v33 = vpop.f32.mrb[4].mxu1 }
 0x14f   :  { %v361_v34 = vadd.f32 %v360_v33, %v232_v30  ;;  %v362_v35 = vpop.f32.mrb[5].mxu1 }
 0x150   :  { %v363_v36 = vadd.f32 %v362_v35, %v236_v32  ;;  %v364_v37 = vpop.f32.mrb[6].mxu1 }
 0x151   :  { %v369_v38 = vmax.f32 %v361_v34, 0.0  ;;  %v365_v39 = vpop.f32.mrb[7].mxu1 }
 0x152   :  { %v370_v40 = vmax.f32 %v363_v36, 0.0 }
 0x153   :  { %v3140_v41 = vpack.c.bf16 %v369_v38, %v369_v38 }
 0x154   :  { %v3142_v42 = vpack.c.bf16 %v370_v40, %v370_v40 }
 0x155   :  { %2902 = dma.done.wait [#allocation8 + $0x1], 16384 }
 0x156   :  { %2903 = vsyncadd [#allocation8 + $0x1], 4294950912  ;;  %487 = vmatprep.mubr.bf16.mxu0 %v372_v31  ;;  %v380_v43 = vld [vmem:[#allocation3 + $0x8] sm:$0xff]  ;;  %v379_v44 = vld [vmem:[#allocation3] sm:$0xff] }
 0x157   :  { %v382_v45 = vld [vmem:[#allocation3 + $0x18] sm:$0xff]  ;;  %455 = vmatprep.subr.bf16.mxu0 %v380_v43  ;;  %v381_v46 = vld [vmem:[#allocation3 + $0x10] sm:$0xff]  ;;  %v384_v47 = vld [vmem:[#allocation3 + $0x28] sm:$0xff] }
 0x158   :  { %456 = vmatpush1.bf16.msra.mxu0 %v379_v44  ;;  %v383_v48 = vld [vmem:[#allocation3 + $0x20] sm:$0xff]  ;;  %v386_v49 = vld [vmem:[#allocation3 + $0x38] sm:$0xff]  ;;  %v385_v50 = vld [vmem:[#allocation3 + $0x30] sm:$0xff] }
 0x159   :  { %457 = vmatprep.subr.bf16.mxu0 %v382_v45  ;;  %v388_v51 = vld [vmem:[#allocation3 + $0x48] sm:$0xff]  ;;  %v387_v52 = vld [vmem:[#allocation3 + $0x40] sm:$0xff]  ;;  %v390_v53 = vld [vmem:[#allocation3 + $0x58] sm:$0xff] }
 0x15a   :  { %v389_v54 = vld [vmem:[#allocation3 + $0x50] sm:$0xff]  ;;  %v392_v55 = vld [vmem:[#allocation3 + $0x68] sm:$0xff]  ;;  %v541_v57 = vld [vmem:[#allocation3 + $0x200] sm:$0xff] }
 0x15b   :  { %v542_v56 = vld [vmem:[#allocation3 + $0x208] sm:$0xff]  ;;  %v544_v58 = vld [vmem:[#allocation3 + $0x218] sm:$0xff]  ;;  %v391_v59 = vld [vmem:[#allocation3 + $0x60] sm:$0xff] }
 0x15c   :  { %458 = vmatpush1.bf16.msra.mxu0 %v381_v46  ;;  %585 = vmatprep.subr.bf16.mxu1 %v542_v56  ;;  %v394_v60 = vld [vmem:[#allocation3 + $0x78] sm:$0xff]  ;;  %v543_v61 = vld [vmem:[#allocation3 + $0x210] sm:$0xff]  ;;  %v546_v62 = vld [vmem:[#allocation3 + $0x228] sm:$0xff] }
 0x15d   :  { %459 = vmatprep.subr.bf16.mxu0 %v384_v47  ;;  %586 = vmatpush1.bf16.msra.mxu1 %v541_v57  ;;  %v393_v63 = vld [vmem:[#allocation3 + $0x70] sm:$0xff]  ;;  %v396_v0 = vld [vmem:[#allocation3 + $0x88] sm:$0xff]  ;;  %v545_v2 = vld [vmem:[#allocation3 + $0x220] sm:$0xff] }
 0x15e   :  { %587 = vmatprep.subr.bf16.mxu1 %v544_v58  ;;  %v548_v4 = vld [vmem:[#allocation3 + $0x238] sm:$0xff]  ;;  %v395_v5 = vld [vmem:[#allocation3 + $0x80] sm:$0xff]  ;;  %v547_v7 = vld [vmem:[#allocation3 + $0x230] sm:$0xff] }
 0x15f   :  { %v398_v6 = vld [vmem:[#allocation3 + $0x98] sm:$0xff]  ;;  %v550_v8 = vld [vmem:[#allocation3 + $0x248] sm:$0xff]  ;;  %v397_v9 = vld [vmem:[#allocation3 + $0x90] sm:$0xff] }
 0x160   :  { %460 = vmatpush1.bf16.msra.mxu0 %v383_v48  ;;  %v400_v10 = vld [vmem:[#allocation3 + $0xa8] sm:$0xff]  ;;  %v549_v11 = vld [vmem:[#allocation3 + $0x240] sm:$0xff]  ;;  %v552_v12 = vld [vmem:[#allocation3 + $0x258] sm:$0xff] }
 0x161   :  { %461 = vmatprep.subr.bf16.mxu0 %v386_v49  ;;  %588 = vmatpush1.bf16.msra.mxu1 %v543_v61  ;;  %v399_v15 = vld [vmem:[#allocation3 + $0xa0] sm:$0xff]  ;;  %v402_v17 = vld [vmem:[#allocation3 + $0xb8] sm:$0xff]  ;;  %v551_v18 = vld [vmem:[#allocation3 + $0x250] sm:$0xff] }
 0x162   :  { %589 = vmatprep.subr.bf16.mxu1 %v546_v62  ;;  %v554_v19 = vld [vmem:[#allocation3 + $0x268] sm:$0xff]  ;;  %v401_v20 = vld [vmem:[#allocation3 + $0xb0] sm:$0xff]  ;;  %v553_v23 = vld [vmem:[#allocation3 + $0x260] sm:$0xff] }
 0x163   :  { %v404_v21 = vld [vmem:[#allocation3 + $0xc8] sm:$0xff]  ;;  %v556_v24 = vld [vmem:[#allocation3 + $0x278] sm:$0xff]  ;;  %v403_v26 = vld [vmem:[#allocation3 + $0xc0] sm:$0xff] }
 0x164   :  { %462 = vmatpush1.bf16.msra.mxu0 %v385_v50  ;;  %v406_v27 = vld [vmem:[#allocation3 + $0xd8] sm:$0xff]  ;;  %v555_v28 = vld [vmem:[#allocation3 + $0x270] sm:$0xff]  ;;  %v558_v30 = vld [vmem:[#allocation3 + $0x288] sm:$0xff] }
 0x165   :  { %463 = vmatprep.subr.bf16.mxu0 %v388_v51  ;;  %590 = vmatpush1.bf16.msra.mxu1 %v545_v2  ;;  %v405_v31 = vld [vmem:[#allocation3 + $0xd0] sm:$0xff]  ;;  %v408_v32 = vld [vmem:[#allocation3 + $0xe8] sm:$0xff]  ;;  %v557_v33 = vld [vmem:[#allocation3 + $0x280] sm:$0xff] }
 0x166   :  { %591 = vmatprep.subr.bf16.mxu1 %v548_v4  ;;  %v560_v34 = vld [vmem:[#allocation3 + $0x298] sm:$0xff]  ;;  %v407_v35 = vld [vmem:[#allocation3 + $0xe0] sm:$0xff]  ;;  %v559_v37 = vld [vmem:[#allocation3 + $0x290] sm:$0xff] }
 0x167   :  { %v410_v36 = vld [vmem:[#allocation3 + $0xf8] sm:$0xff]  ;;  %v562_v38 = vld [vmem:[#allocation3 + $0x2a8] sm:$0xff]  ;;  %v409_v39 = vld [vmem:[#allocation3 + $0xf0] sm:$0xff] }
 0x168   :  { %464 = vmatpush1.bf16.msra.mxu0 %v387_v52  ;;  %v412_v40 = vld [vmem:[#allocation3 + $0x108] sm:$0xff]  ;;  %v561_v43 = vld [vmem:[#allocation3 + $0x2a0] sm:$0xff]  ;;  %v564_v44 = vld [vmem:[#allocation3 + $0x2b8] sm:$0xff] }
 0x169   :  { %465 = vmatprep.subr.bf16.mxu0 %v390_v53  ;;  %592 = vmatpush1.bf16.msra.mxu1 %v547_v7  ;;  %v411_v45 = vld [vmem:[#allocation3 + $0x100] sm:$0xff]  ;;  %v414_v46 = vld [vmem:[#allocation3 + $0x118] sm:$0xff]  ;;  %v563_v47 = vld [vmem:[#allocation3 + $0x2b0] sm:$0xff] }
 0x16a   :  { %593 = vmatprep.subr.bf16.mxu1 %v550_v8  ;;  %v566_v48 = vld [vmem:[#allocation3 + $0x2c8] sm:$0xff]  ;;  %v413_v49 = vld [vmem:[#allocation3 + $0x110] sm:$0xff]  ;;  %v565_v51 = vld [vmem:[#allocation3 + $0x2c0] sm:$0xff] }
 0x16b   :  { %v416_v50 = vld [vmem:[#allocation3 + $0x128] sm:$0xff]  ;;  %v568_v52 = vld [vmem:[#allocation3 + $0x2d8] sm:$0xff]  ;;  %v415_v53 = vld [vmem:[#allocation3 + $0x120] sm:$0xff] }
 0x16c   :  { %466 = vmatpush1.bf16.msra.mxu0 %v389_v54  ;;  %v418_v54 = vld [vmem:[#allocation3 + $0x138] sm:$0xff]  ;;  %v420_v56 = vld [vmem:[#allocation3 + $0x148] sm:$0xff]  ;;  %v421_v58 = vld [vmem:[#allocation3 + $0x150] sm:$0xff] }
 0x16d   :  { %467 = vmatprep.subr.bf16.mxu0 %v392_v55  ;;  %594 = vmatpush1.bf16.msra.mxu1 %v549_v11  ;;  %v567_v55 = vld [vmem:[#allocation3 + $0x2d0] sm:$0xff]  ;;  %v422_v57 = vld [vmem:[#allocation3 + $0x158] sm:$0xff] }
 0x16e   :  { %595 = vmatprep.subr.bf16.mxu1 %v552_v12  ;;  %v426_v61 = vld [vmem:[#allocation3 + $0x178] sm:$0xff]  ;;  %v425_v62 = vld [vmem:[#allocation3 + $0x170] sm:$0xff] }
 0x16f   :  { %v430_v2 = vld [vmem:[#allocation3 + $0x198] sm:$0xff]  ;;  %v429_v4 = vld [vmem:[#allocation3 + $0x190] sm:$0xff] }
 0x170   :  { %468 = vmatpush1.bf16.msra.mxu0 %v391_v59  ;;  %v424_v59 = vld [vmem:[#allocation3 + $0x168] sm:$0xff]  ;;  %v434_v7 = vld [vmem:[#allocation3 + $0x1b8] sm:$0xff]  ;;  %v433_v8 = vld [vmem:[#allocation3 + $0x1b0] sm:$0xff] }
 0x171   :  { %469 = vmatprep.subr.bf16.mxu0 %v394_v60  ;;  %596 = vmatpush1.bf16.msra.mxu1 %v551_v18  ;;  %v423_v60 = vld [vmem:[#allocation3 + $0x160] sm:$0xff]  ;;  %v438_v11 = vld [vmem:[#allocation3 + $0x1d8] sm:$0xff]  ;;  %v437_v12 = vld [vmem:[#allocation3 + $0x1d0] sm:$0xff] }
 0x172   :  { %597 = vmatprep.subr.bf16.mxu1 %v554_v19  ;;  %v442_v18 = vld [vmem:[#allocation3 + $0x1f8] sm:$0xff]  ;;  %v441_v19 = vld [vmem:[#allocation3 + $0x1f0] sm:$0xff] }
 0x174   :  { %470 = vmatpush1.bf16.msra.mxu0 %v393_v63  ;;  %v428_v63 = vld [vmem:[#allocation3 + $0x188] sm:$0xff] }
 0x175   :  { %471 = vmatprep.subr.bf16.mxu0 %v396_v0  ;;  %598 = vmatpush1.bf16.msra.mxu1 %v553_v23  ;;  %v427_v0 = vld [vmem:[#allocation3 + $0x180] sm:$0xff]  ;;  %v572_v23 = vld [vmem:[#allocation3 + $0x2f8] sm:$0xff] }
 0x176   :  { %599 = vmatprep.subr.bf16.mxu1 %v556_v24  ;;  %v571_v24 = vld [vmem:[#allocation3 + $0x2f0] sm:$0xff] }
 0x178   :  { %472 = vmatpush1.bf16.msra.mxu0 %v395_v5  ;;  %v432_v5 = vld [vmem:[#allocation3 + $0x1a8] sm:$0xff] }
 0x179   :  { %473 = vmatprep.subr.bf16.mxu0 %v398_v6  ;;  %600 = vmatpush1.bf16.msra.mxu1 %v555_v28  ;;  %v431_v6 = vld [vmem:[#allocation3 + $0x1a0] sm:$0xff] }
 0x17a   :  { %601 = vmatprep.subr.bf16.mxu1 %v558_v30 }
 0x17c   :  { %474 = vmatpush1.bf16.msra.mxu0 %v397_v9  ;;  %v436_v9 = vld [vmem:[#allocation3 + $0x1c8] sm:$0xff] }
 0x17d   :  { %475 = vmatprep.subr.bf16.mxu0 %v400_v10  ;;  %602 = vmatpush1.bf16.msra.mxu1 %v557_v33  ;;  %v435_v10 = vld [vmem:[#allocation3 + $0x1c0] sm:$0xff] }
 0x17e   :  { %603 = vmatprep.subr.bf16.mxu1 %v560_v34 }
 0x180   :  { %476 = vmatpush1.bf16.msra.mxu0 %v399_v15  ;;  %v440_v15 = vld [vmem:[#allocation3 + $0x1e8] sm:$0xff] }
 0x181   :  { %477 = vmatprep.subr.bf16.mxu0 %v402_v17  ;;  %604 = vmatpush1.bf16.msra.mxu1 %v559_v37  ;;  %v439_v17 = vld [vmem:[#allocation3 + $0x1e0] sm:$0xff] }
 0x182   :  { %605 = vmatprep.subr.bf16.mxu1 %v562_v38 }
 0x184   :  { %478 = vmatpush1.bf16.msra.mxu0 %v401_v20  ;;  %v570_v20 = vld [vmem:[#allocation3 + $0x2e8] sm:$0xff] }
 0x185   :  { %479 = vmatprep.subr.bf16.mxu0 %v404_v21  ;;  %606 = vmatpush1.bf16.msra.mxu1 %v561_v43  ;;  %v569_v21 = vld [vmem:[#allocation3 + $0x2e0] sm:$0xff]  ;;  %v633_v43 = vld [vmem:[#allocation3 + $0x318] sm:$0xff] }
 0x186   :  { %607 = vmatprep.subr.bf16.mxu1 %v564_v44  ;;  %v632_v44 = vld [vmem:[#allocation3 + $0x310] sm:$0xff] }
 0x188   :  { %480 = vmatpush1.bf16.msra.mxu0 %v403_v26  ;;  %v631_v26 = vld [vmem:[#allocation3 + $0x308] sm:$0xff] }
 0x189   :  { %481 = vmatprep.subr.bf16.mxu0 %v406_v27  ;;  %608 = vmatpush1.bf16.msra.mxu1 %v563_v47  ;;  %v443_v27 = vld [vmem:[#allocation12 + $0x4] sm:$0x3]  ;;  %v637_v47 = vld [vmem:[#allocation3 + $0x338] sm:$0xff] }
 0x18a   :  { %609 = vmatprep.subr.bf16.mxu1 %v566_v48  ;;  %v448_v28 = vrot.slane %v443_v27, %v3124_v14  ;;  %v452_v30 = vrot.slane %v443_v27, %v3127_v16  ;;  %v636_v48 = vld [vmem:[#allocation3 + $0x330] sm:$0xff]  ;;  %v662_v27 = vld [vmem:[#allocation12 + $0x8] sm:$0x3] }
 0x18c   :  { %482 = vmatpush1.bf16.msra.mxu0 %v405_v31 }
 0x18d   :  { %483 = vmatprep.subr.bf16.mxu0 %v408_v32  ;;  %610 = vmatpush1.bf16.msra.mxu1 %v565_v51  ;;  %v641_v51 = vld [vmem:[#allocation3 + $0x358] sm:$0xff] }
 0x18e   :  { %611 = vmatprep.subr.bf16.mxu1 %v568_v52  ;;  %v640_v52 = vld [vmem:[#allocation3 + $0x350] sm:$0xff] }
 0x190   :  { %484 = vmatpush1.bf16.msra.mxu0 %v407_v35 }
 0x191   :  { %485 = vmatprep.subr.bf16.mxu0 %v410_v36  ;;  %612 = vmatpush1.bf16.msra.mxu1 %v567_v55  ;;  %v645_v55 = vld [vmem:[#allocation3 + $0x378] sm:$0xff] }
 0x192   :  { %613 = vmatprep.subr.bf16.mxu1 %v570_v20 }
 0x194   :  { %486 = vmatpush1.bf16.msra.mxu0 %v409_v39 }
 0x195   :  { %496 = vmatprep.subr.bf16.mxu0 %v412_v40  ;;  %614 = vmatpush1.bf16.msra.mxu1 %v569_v21  ;;  %v630_v40 = vld [vmem:[#allocation3 + $0x300] sm:$0xff] }
 0x196   :  { %615 = vmatprep.subr.bf16.mxu1 %v572_v23 }
 0x197   :  { %488 = vmatmul.mubr.bf16.vlgmr.msra.gmra.mrb[0].mxu0 %v3135_v29  ;;  %v417_v29 = vld [vmem:[#allocation3 + $0x130] sm:$0xff] }
 0x198   :  { %497 = vmatpush1.bf16.msra.mxu0 %v411_v45  ;;  %528 = vmatprep.mubr.bf16.mxu0 %v3142_v42  ;;  %v419_v42 = vld [vmem:[#allocation3 + $0x140] sm:$0xff]  ;;  %v635_v45 = vld [vmem:[#allocation3 + $0x328] sm:$0xff] }
 0x199   :  { %498 = vmatprep.subr.bf16.mxu0 %v414_v46  ;;  %616 = vmatpush1.bf16.msra.mxu1 %v571_v24  ;;  %v634_v46 = vld [vmem:[#allocation3 + $0x320] sm:$0xff] }
 0x19a   :  { %674 = vmatprep.subr.bf16.mxu1 %v631_v26 }
 0x19c   :  { %499 = vmatpush1.bf16.msra.mxu0 %v413_v49  ;;  %v639_v49 = vld [vmem:[#allocation3 + $0x348] sm:$0xff] }
 0x19d   :  { %500 = vmatprep.subr.bf16.mxu0 %v416_v50  ;;  %v638_v50 = vld [vmem:[#allocation3 + $0x340] sm:$0xff] }
 0x1a0   :  { %501 = vmatpush1.bf16.msra.mxu0 %v415_v53  ;;  %v643_v53 = vld [vmem:[#allocation3 + $0x368] sm:$0xff] }
 0x1a1   :  { %502 = vmatprep.subr.bf16.mxu0 %v418_v54  ;;  %v642_v54 = vld [vmem:[#allocation3 + $0x360] sm:$0xff] }
 0x1a4   :  { %503 = vmatpush1.bf16.msra.mxu0 %v417_v29  ;;  %v644_v29 = vld [vmem:[#allocation3 + $0x370] sm:$0xff] }
 0x1a5   :  { %504 = vmatprep.subr.bf16.mxu0 %v420_v56  ;;  %v647_v56 = vld [vmem:[#allocation3 + $0x388] sm:$0xff] }
 0x1a8   :  { %505 = vmatpush1.bf16.msra.mxu0 %v419_v42  ;;  %v646_v42 = vld [vmem:[#allocation3 + $0x380] sm:$0xff] }
 0x1a9   :  { %506 = vmatprep.subr.bf16.mxu0 %v422_v57  ;;  %v649_v57 = vld [vmem:[#allocation3 + $0x398] sm:$0xff] }
 0x1ac   :  { %507 = vmatpush1.bf16.msra.mxu0 %v421_v58  ;;  %v648_v58 = vld [vmem:[#allocation3 + $0x390] sm:$0xff] }
 0x1ad   :  { %508 = vmatprep.subr.bf16.mxu0 %v424_v59  ;;  %v651_v59 = vld [vmem:[#allocation3 + $0x3a8] sm:$0xff] }
 0x1b0   :  { %509 = vmatpush1.bf16.msra.mxu0 %v423_v60  ;;  %v650_v60 = vld [vmem:[#allocation3 + $0x3a0] sm:$0xff] }
 0x1b1   :  { %510 = vmatprep.subr.bf16.mxu0 %v426_v61  ;;  %v653_v61 = vld [vmem:[#allocation3 + $0x3b8] sm:$0xff] }
 0x1b4   :  { %511 = vmatpush1.bf16.msra.mxu0 %v425_v62  ;;  %v652_v62 = vld [vmem:[#allocation3 + $0x3b0] sm:$0xff] }
 0x1b5   :  { %512 = vmatprep.subr.bf16.mxu0 %v428_v63  ;;  %v655_v63 = vld [vmem:[#allocation3 + $0x3c8] sm:$0xff] }
 0x1b8   :  { %513 = vmatpush1.bf16.msra.mxu0 %v427_v0  ;;  %v654_v0 = vld [vmem:[#allocation3 + $0x3c0] sm:$0xff] }
 0x1b9   :  { %514 = vmatprep.subr.bf16.mxu0 %v430_v2  ;;  %v657_v2 = vld [vmem:[#allocation3 + $0x3d8] sm:$0xff] }
 0x1bc   :  { %515 = vmatpush1.bf16.msra.mxu0 %v429_v4  ;;  %v656_v4 = vld [vmem:[#allocation3 + $0x3d0] sm:$0xff] }
 0x1bd   :  { %516 = vmatprep.subr.bf16.mxu0 %v432_v5  ;;  %v659_v5 = vld [vmem:[#allocation3 + $0x3e8] sm:$0xff] }
 0x1c0   :  { %517 = vmatpush1.bf16.msra.mxu0 %v431_v6  ;;  %v658_v6 = vld [vmem:[#allocation3 + $0x3e0] sm:$0xff] }
 0x1c1   :  { %518 = vmatprep.subr.bf16.mxu0 %v434_v7  ;;  %v661_v7 = vld [vmem:[#allocation3 + $0x3f8] sm:$0xff] }
 0x1c4   :  { %519 = vmatpush1.bf16.msra.mxu0 %v433_v8  ;;  %v660_v8 = vld [vmem:[#allocation3 + $0x3f0] sm:$0xff] }
 0x1c5   :  { %520 = vmatprep.subr.bf16.mxu0 %v436_v9  ;;  %v573_v9 = vld [vmem:[#allocation12 + $0x6] sm:$0x3] }
 0x1c8   :  { %521 = vmatpush1.bf16.msra.mxu0 %v435_v10  ;;  %v578_v10 = vrot.slane %v573_v9, %v3124_v14 }
 0x1c9   :  { %522 = vmatprep.subr.bf16.mxu0 %v438_v11  ;;  %v582_v11 = vrot.slane %v573_v9, %v3127_v16 }
 0x1cc   :  { %523 = vmatpush1.bf16.msra.mxu0 %v437_v12 }
 0x1cd   :  { %524 = vmatprep.subr.bf16.mxu0 %v440_v15 }
 0x1d0   :  { %525 = vmatpush1.bf16.msra.mxu0 %v439_v17 }
 0x1d1   :  { %526 = vmatprep.subr.bf16.mxu0 %v442_v18 }
 0x1d4   :  { %527 = vmatpush1.bf16.msra.mxu0 %v441_v19 }
 0x1d7   :  { %529 = vmatmul.mubr.bf16.vlgmr.msra.gmra.mrb[0].mxu0 %v3140_v41 }
 0x2aa   :  { %v530_v31 = vpop.f32.mrb[0].mxu0 }
 0x2ab   :  { %v2683_v32 = vadd.f32 %v530_v31, %v448_v28  ;;  %v532_v33 = vpop.f32.mrb[1].mxu0  ;;  %v667_v28 = vrot.slane %v662_v27, %v3124_v14 }
 0x2ac   :  { %v2684_v34 = vadd.f32 %v532_v33, %v452_v30  ;;  %v534_v41 = vpop.f32.mrb[2].mxu0  ;;  %v671_v30 = vrot.slane %v662_v27, %v3127_v16 }
 0x2ad   :  { %v537_v35 = vmax.f32 %v2683_v32, 0.0  ;;  %v535_v36 = vpop.f32.mrb[3].mxu0 }
 0x2ae   :  { %v538_v37 = vmax.f32 %v2684_v34, 0.0 }
 0x2af   :  { %v539_v39 = vpack.c.bf16 %v537_v35, %v537_v35 }
 0x2b0   :  { %v540_v38 = vpack.c.bf16 %v538_v37, %v538_v37 }
 0x2b2   :  { %617 = vmatprep.mubr.bf16.mxu1 %v540_v38 }
 0x2b3   :  { %618 = vmatmul.mubr.bf16.vlgmr.msra.gmra.mrb[8].mxu1 %v539_v39 }
 0x2b4   :  { %675 = vmatpush1.bf16.msra.mxu1 %v630_v40 }
 0x2b5   :  { %676 = vmatprep.subr.bf16.mxu1 %v633_v43 }
 0x2b8   :  { %677 = vmatpush1.bf16.msra.mxu1 %v632_v44 }
 0x2b9   :  { %678 = vmatprep.subr.bf16.mxu1 %v635_v45 }
 0x2bc   :  { %679 = vmatpush1.bf16.msra.mxu1 %v634_v46 }
 0x2bd   :  { %680 = vmatprep.subr.bf16.mxu1 %v637_v47 }
 0x2c0   :  { %681 = vmatpush1.bf16.msra.mxu1 %v636_v48 }
 0x2c1   :  { %682 = vmatprep.subr.bf16.mxu1 %v639_v49 }
 0x2c4   :  { %683 = vmatpush1.bf16.msra.mxu1 %v638_v50 }
 0x2c5   :  { %684 = vmatprep.subr.bf16.mxu1 %v641_v51 }
 0x2c8   :  { %685 = vmatpush1.bf16.msra.mxu1 %v640_v52 }
 0x2c9   :  { %686 = vmatprep.subr.bf16.mxu1 %v643_v53 }
 0x2cc   :  { %687 = vmatpush1.bf16.msra.mxu1 %v642_v54 }
 0x2cd   :  { %688 = vmatprep.subr.bf16.mxu1 %v645_v55 }
 0x2d0   :  { %689 = vmatpush1.bf16.msra.mxu1 %v644_v29 }
 0x2d1   :  { %690 = vmatprep.subr.bf16.mxu1 %v647_v56 }
 0x2d4   :  { %691 = vmatpush1.bf16.msra.mxu1 %v646_v42 }
 0x2d5   :  { %692 = vmatprep.subr.bf16.mxu1 %v649_v57 }
 0x2d8   :  { %693 = vmatpush1.bf16.msra.mxu1 %v648_v58 }
 0x2d9   :  { %694 = vmatprep.subr.bf16.mxu1 %v651_v59 }
 0x2dc   :  { %695 = vmatpush1.bf16.msra.mxu1 %v650_v60 }
 0x2dd   :  { %696 = vmatprep.subr.bf16.mxu1 %v653_v61 }
 0x2e0   :  { %697 = vmatpush1.bf16.msra.mxu1 %v652_v62 }
 0x2e1   :  { %698 = vmatprep.subr.bf16.mxu1 %v655_v63 }
 0x2e4   :  { %699 = vmatpush1.bf16.msra.mxu1 %v654_v0 }
 0x2e5   :  { %700 = vmatprep.subr.bf16.mxu1 %v657_v2 }
 0x2e8   :  { %701 = vmatpush1.bf16.msra.mxu1 %v656_v4 }
 0x2e9   :  { %702 = vmatprep.subr.bf16.mxu1 %v659_v5 }
 0x2ec   :  { %703 = vmatpush1.bf16.msra.mxu1 %v658_v6 }
 0x2ed   :  { %704 = vmatprep.subr.bf16.mxu1 %v661_v7 }
 0x2f0   :  { %705 = vmatpush1.bf16.msra.mxu1 %v660_v8 }
 0x386   :  { %v619_v12 = vpop.f32.mrb[8].mxu1 }
 0x387   :  { %v620_v15 = vadd.f32 %v619_v12, %v578_v10  ;;  %v621_v17 = vpop.f32.mrb[9].mxu1 }
 0x388   :  { %v622_v18 = vadd.f32 %v621_v17, %v582_v11  ;;  %v623_v19 = vpop.f32.mrb[10].mxu1 }
 0x389   :  { %v626_v20 = vmax.f32 %v620_v15, 0.0  ;;  %v624_v21 = vpop.f32.mrb[11].mxu1 }
 0x38a   :  { %v627_v23 = vmax.f32 %v622_v18, 0.0 }
 0x38b   :  { %v628_v26 = vpack.c.bf16 %v626_v20, %v626_v20 }
 0x38c   :  { %v629_v24 = vpack.c.bf16 %v627_v23, %v627_v23 }
 0x38e   :  { %706 = vmatprep.mubr.bf16.mxu1 %v629_v24 }
 0x38f   :  { %707 = vmatmul.mubr.bf16.vlgmr.msra.gmra.mrb[12].mxu1 %v628_v26 }
 0x462   :  { %v708_v31 = vpop.f32.mrb[12].mxu1 }
 0x463   :  { %v709_v32 = vadd.f32 %v708_v31, %v667_v28  ;;  %v710_v33 = vpop.f32.mrb[13].mxu1 }
 0x464   :  { %v711_v34 = vadd.f32 %v710_v33, %v671_v30  ;;  %v712_v41 = vpop.f32.mrb[14].mxu1 }
 0x465   :  { %v3153_v35 = vpack.c.bf16 %v709_v32, %v709_v32  ;;  %v713_v36 = vpop.f32.mrb[15].mxu1 }
 0x466   :  { %v716_v37 = vpack.c.bf16 %v711_v34, %v711_v34 }
 0x467   :  { %2904 = dma.done.wait [#allocation8 + $0x2], 18432 }
 0x468   :  { %2905 = vsyncadd [#allocation8 + $0x2], 4294948864  ;;  %859 = vmatprep.mubr.bf16.mxu1 %v716_v37  ;;  %818 = vmatprep.mubr.bf16.mxu0 %v716_v37  ;;  %v722_v38 = vld [vmem:[#allocation4 + $0x8] sm:$0xff]  ;;  %v721_v39 = vld [vmem:[#allocation4] sm:$0xff] }
 0x469   :  { %v725_v40 = vld [vmem:[#allocation4 + $0x20] sm:$0xff]  ;;  %786 = vmatprep.subr.bf16.mxu0 %v722_v38  ;;  %v724_v43 = vld [vmem:[#allocation4 + $0x18] sm:$0xff]  ;;  %v747_v45 = vld [vmem:[#allocation4 + $0xd0] sm:$0xff] }
 0x46a   :  { %787 = vmatpush1.bf16.msra.mxu0 %v721_v39  ;;  %v728_v44 = vld [vmem:[#allocation4 + $0x38] sm:$0xff]  ;;  %v723_v46 = vld [vmem:[#allocation4 + $0x10] sm:$0xff]  ;;  %2450 = vmatprep.subr.bf16.mxu1 %v747_v45  ;;  %v750_v47 = vld [vmem:[#allocation4 + $0xe8] sm:$0xff] }
 0x46b   :  { %788 = vmatprep.subr.bf16.mxu0 %v725_v40  ;;  %v727_v48 = vld [vmem:[#allocation4 + $0x30] sm:$0xff]  ;;  %2451 = vmatpush3.bf16.msra.mxu1 %v723_v46  ;;  %v726_v50 = vld [vmem:[#allocation4 + $0x28] sm:$0xff]  ;;  %v753_v51 = vld [vmem:[#allocation4 + $0x100] sm:$0xff] }
 0x46c   :  { %v731_v49 = vld [vmem:[#allocation4 + $0x50] sm:$0xff]  ;;  %2452 = vmatprep.subr.bf16.mxu1 %v750_v47  ;;  %v730_v52 = vld [vmem:[#allocation4 + $0x48] sm:$0xff]  ;;  %v729_v54 = vld [vmem:[#allocation4 + $0x40] sm:$0xff] }
 0x46d   :  { %v734_v53 = vld [vmem:[#allocation4 + $0x68] sm:$0xff]  ;;  %v756_v55 = vld [vmem:[#allocation4 + $0x118] sm:$0xff]  ;;  %v733_v29 = vld [vmem:[#allocation4 + $0x60] sm:$0xff] }
 0x46e   :  { %789 = vmatpush1.bf16.msra.mxu0 %v724_v43  ;;  %v737_v56 = vld [vmem:[#allocation4 + $0x80] sm:$0xff]  ;;  %v732_v42 = vld [vmem:[#allocation4 + $0x58] sm:$0xff]  ;;  %v759_v57 = vld [vmem:[#allocation4 + $0x130] sm:$0xff] }
 0x46f   :  { %790 = vmatprep.subr.bf16.mxu0 %v728_v44  ;;  %2453 = vmatpush3.bf16.msra.mxu1 %v726_v50  ;;  %v736_v58 = vld [vmem:[#allocation4 + $0x78] sm:$0xff]  ;;  %v735_v60 = vld [vmem:[#allocation4 + $0x70] sm:$0xff]  ;;  %v762_v61 = vld [vmem:[#allocation4 + $0x148] sm:$0xff] }
 0x470   :  { %2454 = vmatprep.subr.bf16.mxu1 %v753_v51  ;;  %v740_v59 = vld [vmem:[#allocation4 + $0x98] sm:$0xff]  ;;  %v739_v62 = vld [vmem:[#allocation4 + $0x90] sm:$0xff]  ;;  %v738_v0 = vld [vmem:[#allocation4 + $0x88] sm:$0xff] }
 0x471   :  { %v743_v63 = vld [vmem:[#allocation4 + $0xb0] sm:$0xff]  ;;  %v765_v2 = vld [vmem:[#allocation4 + $0x160] sm:$0xff]  ;;  %v742_v4 = vld [vmem:[#allocation4 + $0xa8] sm:$0xff] }
 0x472   :  { %791 = vmatpush1.bf16.msra.mxu0 %v727_v48  ;;  %v746_v5 = vld [vmem:[#allocation4 + $0xc8] sm:$0xff]  ;;  %v741_v6 = vld [vmem:[#allocation4 + $0xa0] sm:$0xff]  ;;  %v768_v7 = vld [vmem:[#allocation4 + $0x178] sm:$0xff] }
 0x473   :  { %792 = vmatprep.subr.bf16.mxu0 %v731_v49  ;;  %2455 = vmatpush3.bf16.msra.mxu1 %v729_v54  ;;  %v745_v8 = vld [vmem:[#allocation4 + $0xc0] sm:$0xff]  ;;  %v744_v10 = vld [vmem:[#allocation4 + $0xb8] sm:$0xff]  ;;  %v751_v15 = vld [vmem:[#allocation4 + $0xf0] sm:$0xff] }
 0x474   :  { %2456 = vmatprep.subr.bf16.mxu1 %v756_v55  ;;  %v749_v9 = vld [vmem:[#allocation4 + $0xe0] sm:$0xff]  ;;  %v748_v11 = vld [vmem:[#allocation4 + $0xd8] sm:$0xff]  ;;  %v755_v17 = vld [vmem:[#allocation4 + $0x110] sm:$0xff] }
 0x475   :  { %v752_v12 = vld [vmem:[#allocation4 + $0xf8] sm:$0xff]  ;;  %v754_v18 = vld [vmem:[#allocation4 + $0x108] sm:$0xff]  ;;  %v757_v20 = vld [vmem:[#allocation4 + $0x120] sm:$0xff] }
 0x476   :  { %793 = vmatpush1.bf16.msra.mxu0 %v730_v52  ;;  %v758_v19 = vld [vmem:[#allocation4 + $0x128] sm:$0xff]  ;;  %v761_v21 = vld [vmem:[#allocation4 + $0x140] sm:$0xff]  ;;  %v760_v23 = vld [vmem:[#allocation4 + $0x138] sm:$0xff] }
 0x477   :  { %794 = vmatprep.subr.bf16.mxu0 %v734_v53  ;;  %2457 = vmatpush3.bf16.msra.mxu1 %v732_v42  ;;  %v764_v24 = vld [vmem:[#allocation4 + $0x158] sm:$0xff]  ;;  %v763_v26 = vld [vmem:[#allocation4 + $0x150] sm:$0xff]  ;;  %v766_v28 = vld [vmem:[#allocation4 + $0x168] sm:$0xff] }
 0x478   :  { %2458 = vmatprep.subr.bf16.mxu1 %v759_v57  ;;  %v767_v27 = vld [vmem:[#allocation4 + $0x170] sm:$0xff]  ;;  %v769_v30 = vld [vmem:[#allocation12 + $0xa] sm:$0x7] }
 0x479   :  { %v782_v32 = vrot.slane %v769_v30, %v3132_v22  ;;  %v774_v39 = vrot.slane %v769_v30, %v3124_v14  ;;  %v778_v40 = vrot.slane %v769_v30, %v3127_v16 }
 0x47a   :  { %795 = vmatpush1.bf16.msra.mxu0 %v733_v29 }
 0x47b   :  { %796 = vmatprep.subr.bf16.mxu0 %v737_v56  ;;  %2459 = vmatpush3.bf16.msra.mxu1 %v735_v60 }
 0x47c   :  { %2460 = vmatprep.subr.bf16.mxu1 %v762_v61 }
 0x47e   :  { %797 = vmatpush1.bf16.msra.mxu0 %v736_v58 }
 0x47f   :  { %798 = vmatprep.subr.bf16.mxu0 %v740_v59  ;;  %2461 = vmatpush3.bf16.msra.mxu1 %v738_v0 }
 0x480   :  { %2462 = vmatprep.subr.bf16.mxu1 %v765_v2 }
 0x482   :  { %799 = vmatpush1.bf16.msra.mxu0 %v739_v62 }
 0x483   :  { %800 = vmatprep.subr.bf16.mxu0 %v743_v63  ;;  %2463 = vmatpush3.bf16.msra.mxu1 %v741_v6 }
 0x484   :  { %2464 = vmatprep.subr.bf16.mxu1 %v768_v7 }
 0x486   :  { %801 = vmatpush1.bf16.msra.mxu0 %v742_v4 }
 0x487   :  { %802 = vmatprep.subr.bf16.mxu0 %v746_v5  ;;  %2465 = vmatpush3.bf16.msra.mxu1 %v744_v10 }
 0x48a   :  { %803 = vmatpush1.bf16.msra.mxu0 %v745_v8  ;;  %860 = vmatmul.mubr.bf16.vlgmr.msra.gmra.mrb[16].mxu1 %v3153_v35 }
 0x48b   :  { %804 = vmatprep.subr.bf16.mxu0 %v749_v9 }
 0x48e   :  { %805 = vmatpush1.bf16.msra.mxu0 %v748_v11 }
 0x48f   :  { %806 = vmatprep.subr.bf16.mxu0 %v752_v12 }
 0x492   :  { %807 = vmatpush1.bf16.msra.mxu0 %v751_v15 }
 0x493   :  { %808 = vmatprep.subr.bf16.mxu0 %v755_v17 }
 0x496   :  { %809 = vmatpush1.bf16.msra.mxu0 %v754_v18 }
 0x497   :  { %810 = vmatprep.subr.bf16.mxu0 %v758_v19 }
 0x49a   :  { %811 = vmatpush1.bf16.msra.mxu0 %v757_v20 }
 0x49b   :  { %812 = vmatprep.subr.bf16.mxu0 %v761_v21 }
 0x49e   :  { %813 = vmatpush1.bf16.msra.mxu0 %v760_v23 }
 0x49f   :  { %814 = vmatprep.subr.bf16.mxu0 %v764_v24 }
 0x4a2   :  { %815 = vmatpush1.bf16.msra.mxu0 %v763_v26 }
 0x4a3   :  { %816 = vmatprep.subr.bf16.mxu0 %v767_v27 }
 0x4a6   :  { %817 = vmatpush1.bf16.msra.mxu0 %v766_v28 }
 0x4a9   :  { %819 = vmatmul.mubr.bf16.vlgmr.msra.gmra.mrb[4].mxu0 %v3153_v35 }
 0x55d   :  { %v2466_v31 = vpop.f32.mrb[16].mxu1 }
 0x55e   :  { %v2467_v33 = vpop.f32.mrb[17].mxu1 }
 0x55f   :  { %v2468_v34 = vadd.f32 %v2467_v33, %v2466_v31  ;;  %v2469_v41 = vpop.f32.mrb[18].mxu1 }
 0x560   :  { %v2470_v36 = vpop.f32.mrb[19].mxu1 }
 0x561   :  { %v3158_v37 = vadd.f32 %v2468_v34, %v782_v32 }
 0x563   :  { %v869_v38 = vmax.f32 %v3158_v37, 0.0 }
 0x57c   :  { %v820_v43 = vpop.f32.mrb[4].mxu0 }
 0x57d   :  { %v821_v44 = vadd.f32 %v820_v43, %v774_v39  ;;  %v822_v45 = vpop.f32.mrb[5].mxu0 }
 0x57e   :  { %v3163_v35 = vadd.f32 %v822_v45, %v778_v40  ;;  %v824_v46 = vpop.f32.mrb[6].mxu0 }
 0x57f   :  { %v867_v47 = vmax.f32 %v821_v44, 0.0  ;;  %v825_v48 = vpop.f32.mrb[7].mxu0 }
 0x580   :  { %v868_v49 = vmax.f32 %v3163_v35, 0.0 }
 0x581   :  { %v870_v50 = vpack.c.bf16 %v867_v47, %v867_v47 }
 0x582   :  { %2906 = dma.done.wait [#allocation8 + $0x3], 7168 }
 0x583   :  { %2907 = vsyncadd [#allocation8 + $0x3], 4294960128  ;;  %v2940_v51 = vmov 0.0   ;;  %vm2941_vm1 = vmmov 0   ;;  %v875_v52 = vld [vmem:[#allocation5] sm:$0xff]  ;;  %v876_v53 = vld [vmem:[#allocation5 + $0x8] sm:$0xff]  ;;  %v3189_v12 = vpack.c.bf16 %v868_v49, %v868_v49  ;;  %v988_v15 = vpack.c.bf16 %v869_v38, %v869_v38 }
 0x584   :  { %2583 = vmatprep.subr.bf16.mxu1 %v2940_v51  ;;  %2599 = vmatprep.mubr.msk.bf16.mxu1 %vm2941_vm1, %v2940_v51  ;;  %v932_v54 = vld [vmem:[#allocation5 + $0x40] sm:$0xff]  ;;  %v933_v55 = vld [vmem:[#allocation5 + $0x48] sm:$0xff]  ;;  %v877_v29 = vld [vmem:[#allocation5 + $0x10] sm:$0xff] }
 0x585   :  { %2603 = vmatprep.subr.bf16.mxu0 %v2940_v51  ;;  %2619 = vmatprep.mubr.msk.bf16.mxu0 %vm2941_vm1, %v2940_v51  ;;  %v934_v56 = vld [vmem:[#allocation5 + $0x50] sm:$0xff]  ;;  %v878_v42 = vld [vmem:[#allocation5 + $0x18] sm:$0xff]  ;;  %v879_v58 = vld [vmem:[#allocation5 + $0x20] sm:$0xff] }
 0x586   :  { %2584 = vmatpush3.bf16.msra.mxu1 %v875_v52  ;;  %2604 = vmatpush3.bf16.msra.mxu0 %v932_v54  ;;  %v935_v57 = vld [vmem:[#allocation5 + $0x58] sm:$0xff]  ;;  %v936_v59 = vld [vmem:[#allocation5 + $0x60] sm:$0xff]  ;;  %v880_v60 = vld [vmem:[#allocation5 + $0x28] sm:$0xff] }
 0x587   :  { %2585 = vmatprep.subr.bf16.mxu1 %v2940_v51  ;;  %2605 = vmatprep.subr.bf16.mxu0 %v2940_v51  ;;  %v937_v61 = vld [vmem:[#allocation5 + $0x68] sm:$0xff]  ;;  %v881_v62 = vld [vmem:[#allocation5 + $0x30] sm:$0xff]  ;;  %v882_v63 = vld [vmem:[#allocation5 + $0x38] sm:$0xff] }
 0x588   :  { %v938_v0 = vld [vmem:[#allocation5 + $0x70] sm:$0xff]  ;;  %v939_v2 = vld [vmem:[#allocation5 + $0x78] sm:$0xff]  ;;  %v2422_v4 = vld [vmem:[#allocation12 + $0xd] ss:$0 sm:$0xff] }
 0x589   :  { %v2423_v17 = vld [vmem:[#allocation12 + $0xe] ss:$0 sm:$0xff] }
 0x58a   :  { %2586 = vmatpush3.bf16.msra.mxu1 %v876_v53  ;;  %2606 = vmatpush3.bf16.msra.mxu0 %v933_v55 }
 0x58b   :  { %2587 = vmatprep.subr.bf16.mxu1 %v2940_v51  ;;  %2607 = vmatprep.subr.bf16.mxu0 %v2940_v51 }
 0x58e   :  { %2588 = vmatpush3.bf16.msra.mxu1 %v877_v29  ;;  %2608 = vmatpush3.bf16.msra.mxu0 %v934_v56 }
 0x58f   :  { %2589 = vmatprep.subr.bf16.mxu1 %v2940_v51  ;;  %2609 = vmatprep.subr.bf16.mxu0 %v2940_v51 }
 0x592   :  { %2590 = vmatpush3.bf16.msra.mxu1 %v878_v42  ;;  %2610 = vmatpush3.bf16.msra.mxu0 %v935_v57 }
 0x593   :  { %2591 = vmatprep.subr.bf16.mxu1 %v2940_v51  ;;  %2611 = vmatprep.subr.bf16.mxu0 %v2940_v51 }
 0x596   :  { %2592 = vmatpush3.bf16.msra.mxu1 %v879_v58  ;;  %2612 = vmatpush3.bf16.msra.mxu0 %v936_v59 }
 0x597   :  { %2593 = vmatprep.subr.bf16.mxu1 %v2940_v51  ;;  %2613 = vmatprep.subr.bf16.mxu0 %v2940_v51 }
 0x59a   :  { %2594 = vmatpush3.bf16.msra.mxu1 %v880_v60  ;;  %2614 = vmatpush3.bf16.msra.mxu0 %v937_v61 }
 0x59b   :  { %2595 = vmatprep.subr.bf16.mxu1 %v2940_v51  ;;  %2615 = vmatprep.subr.bf16.mxu0 %v2940_v51 }
 0x59e   :  { %2596 = vmatpush3.bf16.msra.mxu1 %v881_v62  ;;  %2616 = vmatpush3.bf16.msra.mxu0 %v938_v0 }
 0x59f   :  { %2597 = vmatprep.subr.bf16.mxu1 %v2940_v51  ;;  %2617 = vmatprep.subr.bf16.mxu0 %v2940_v51 }
 0x5a2   :  { %2598 = vmatpush3.bf16.msra.mxu1 %v882_v63  ;;  %2618 = vmatpush3.bf16.msra.mxu0 %v939_v2 }
 0x5a5   :  { %2600 = vmatmul.mubr.bf16.vlgmr.msra.gmra.mrb[20].mxu1 %v870_v50 }
 0x678   :  { %v924_v5 = vpop.f32.mrb[20].mxu1 }
 0x679   :  { %v925_v6 = vadd.f32 %v2422_v4, %v924_v5  ;;  %v2601_v7 = vpop.f32.mrb[21].mxu1 }
 0x67a   :  { %v927_v8 = vpop.f32.mrb[22].mxu1 }
 0x67b   :  { %v930_v9 = vmax.f32 %v925_v6, 0.0  ;;  %v2602_v10 = vpop.f32.mrb[23].mxu1 }
 0x67d   :  { %v931_v11 = vpack.c.bf16 %v930_v9, %v930_v9 }
 0x67f   :  { %2620 = vmatmul.mubr.bf16.vlgmr.msra.gmra.mrb[8].mxu0 %v931_v11 }
 0x752   :  { %v981_v18 = vpop.f32.mrb[8].mxu0 }
 0x753   :  { %v3194_v19 = vadd.f32 %v2423_v17, %v981_v18  ;;  %v2621_v20 = vpop.f32.mrb[9].mxu0 }
 0x754   :  { %v984_v21 = vpop.f32.mrb[10].mxu0 }
 0x755   :  { %v2622_v23 = vpop.f32.mrb[11].mxu0 }
 0x756   :  { %2908 = dma.done.wait [#allocation8 + $0x4], 14336 }
 0x757   :  { %2909 = vsyncadd [#allocation8 + $0x4], 4294952960  ;;  %1068 = vmatprep.mubr.bf16.mxu1 %v988_v15  ;;  %v993_v24 = vld [vmem:[#allocation6 + $0x8] sm:$0xff]  ;;  %v992_v26 = vld [vmem:[#allocation6] sm:$0xff]  ;;  %s2957_s1 = smov 80   ;;  %s2958_s8 = smov 112  }
 0x758   :  { %v995_v27 = vld [vmem:[#allocation6 + $0x18] sm:$0xff]  ;;  %1036 = vmatprep.subr.bf16.mxu1 %v993_v24  ;;  %v994_v28 = vld [vmem:[#allocation6 + $0x10] sm:$0xff]  ;;  %v997_v30 = vld [vmem:[#allocation6 + $0x28] sm:$0xff]  ;;  %s2959_s28 = smov 96   ;;  %s2960_s29 = smov 32  }
 0x759   :  { %1037 = vmatpush1.bf16.msra.mxu1 %v992_v26  ;;  %v996_v31 = vld [vmem:[#allocation6 + $0x20] sm:$0xff]  ;;  %v999_v32 = vld [vmem:[#allocation6 + $0x38] sm:$0xff]  ;;  %v1082_v33 = vld [vmem:[#allocation6 + $0x108] sm:$0xff]  ;;  %s2961_s30 = smov 48   ;;  %s2962_s0 = smov 16  }
 0x75a   :  { %1038 = vmatprep.subr.bf16.mxu1 %v995_v27  ;;  %v998_v34 = vld [vmem:[#allocation6 + $0x30] sm:$0xff]  ;;  %1125 = vmatprep.subr.bf16.mxu0 %v1082_v33  ;;  %v1081_v41 = vld [vmem:[#allocation6 + $0x100] sm:$0xff]  ;;  %v1084_v36 = vld [vmem:[#allocation6 + $0x118] sm:$0xff] }
 0x75b   :  { %v1001_v37 = vld [vmem:[#allocation6 + $0x48] sm:$0xff]  ;;  %1126 = vmatpush1.bf16.msra.mxu0 %v1081_v41  ;;  %v1083_v38 = vld [vmem:[#allocation6 + $0x110] sm:$0xff]  ;;  %v1000_v40 = vld [vmem:[#allocation6 + $0x40] sm:$0xff] }
 0x75c   :  { %1127 = vmatprep.subr.bf16.mxu0 %v1084_v36  ;;  %v1086_v39 = vld [vmem:[#allocation6 + $0x128] sm:$0xff]  ;;  %v1003_v43 = vld [vmem:[#allocation6 + $0x58] sm:$0xff]  ;;  %v1085_v44 = vld [vmem:[#allocation6 + $0x120] sm:$0xff]  ;;  %v2942_v36 = vmov 3  }
 0x75d   :  { %1039 = vmatpush1.bf16.msra.mxu1 %v994_v28  ;;  %v1088_v45 = vld [vmem:[#allocation6 + $0x138] sm:$0xff]  ;;  %v1002_v35 = vld [vmem:[#allocation6 + $0x50] sm:$0xff]  ;;  %v1005_v46 = vld [vmem:[#allocation6 + $0x68] sm:$0xff]  ;;  %2759 = vset.pattern.permute.xlu1 %v2942_v36 }
 0x75e   :  { %1040 = vmatprep.subr.bf16.mxu1 %v997_v30  ;;  %v1087_v47 = vld [vmem:[#allocation6 + $0x130] sm:$0xff]  ;;  %v1090_v48 = vld [vmem:[#allocation6 + $0x148] sm:$0xff]  ;;  %v1004_v49 = vld [vmem:[#allocation6 + $0x60] sm:$0xff]  ;;  %1194 = vperm.xlu1 %2759, %v3194_v19  }
 0x75f   :  { %1128 = vmatpush1.bf16.msra.mxu0 %v1083_v38  ;;  %v1007_v50 = vld [vmem:[#allocation6 + $0x78] sm:$0xff]  ;;  %v1089_v52 = vld [vmem:[#allocation6 + $0x140] sm:$0xff]  ;;  %v1006_v54 = vld [vmem:[#allocation6 + $0x70] sm:$0xff]  ;;  %v2944_v38 = vmov 4  }
 0x760   :  { %1129 = vmatprep.subr.bf16.mxu0 %v1086_v39  ;;  %v1092_v53 = vld [vmem:[#allocation6 + $0x158] sm:$0xff]  ;;  %v1009_v55 = vld [vmem:[#allocation6 + $0x88] sm:$0xff]  ;;  %v1091_v29 = vld [vmem:[#allocation6 + $0x150] sm:$0xff]  ;;  %v2945_v39 = vmov 2  }
 0x761   :  { %1041 = vmatpush1.bf16.msra.mxu1 %v996_v31  ;;  %v1094_v56 = vld [vmem:[#allocation6 + $0x168] sm:$0xff]  ;;  %v1008_v42 = vld [vmem:[#allocation6 + $0x80] sm:$0xff]  ;;  %v1011_v57 = vld [vmem:[#allocation6 + $0x98] sm:$0xff] }
 0x762   :  { %1042 = vmatprep.subr.bf16.mxu1 %v999_v32  ;;  %v1093_v58 = vld [vmem:[#allocation6 + $0x160] sm:$0xff]  ;;  %v1096_v59 = vld [vmem:[#allocation6 + $0x178] sm:$0xff]  ;;  %v1010_v60 = vld [vmem:[#allocation6 + $0x90] sm:$0xff]  ;;  %2760 = vset.pattern.permute.xlu1 %v2944_v38 }
 0x763   :  { %1130 = vmatpush1.bf16.msra.mxu0 %v1085_v44  ;;  %v1013_v61 = vld [vmem:[#allocation6 + $0xa8] sm:$0xff]  ;;  %v1095_v62 = vld [vmem:[#allocation6 + $0x170] sm:$0xff]  ;;  %v1012_v0 = vld [vmem:[#allocation6 + $0xa0] sm:$0xff]  ;;  %1204 = vperm.xlu1 %2760, %v3194_v19   ;;  %v2949_v44 = vmov 10  }
 0x764   :  { %1131 = vmatprep.subr.bf16.mxu0 %v1088_v45  ;;  %v1098_v63 = vld [vmem:[#allocation6 + $0x188] sm:$0xff]  ;;  %v1015_v2 = vld [vmem:[#allocation6 + $0xb8] sm:$0xff]  ;;  %v1097_v4 = vld [vmem:[#allocation6 + $0x180] sm:$0xff]  ;;  %v2950_v45 = vmov 9  }
 0x765   :  { %1043 = vmatpush1.bf16.msra.mxu1 %v998_v34  ;;  %v1100_v5 = vld [vmem:[#allocation6 + $0x198] sm:$0xff]  ;;  %v1014_v6 = vld [vmem:[#allocation6 + $0xb0] sm:$0xff]  ;;  %v1017_v7 = vld [vmem:[#allocation6 + $0xc8] sm:$0xff] }
 0x766   :  { %1044 = vmatprep.subr.bf16.mxu1 %v1001_v37  ;;  %v1099_v8 = vld [vmem:[#allocation6 + $0x190] sm:$0xff]  ;;  %v1102_v9 = vld [vmem:[#allocation6 + $0x1a8] sm:$0xff]  ;;  %v1016_v10 = vld [vmem:[#allocation6 + $0xc0] sm:$0xff]  ;;  %v2943_v37 = vmov 1  }
 0x767   :  { %1132 = vmatpush1.bf16.msra.mxu0 %v1087_v47  ;;  %v1019_v11 = vld [vmem:[#allocation6 + $0xd8] sm:$0xff]  ;;  %v1101_v15 = vld [vmem:[#allocation6 + $0x1a0] sm:$0xff]  ;;  %v1018_v18 = vld [vmem:[#allocation6 + $0xd0] sm:$0xff]  ;;  %2757 = vset.pattern.permute.xlu0 %v2943_v37  ;;  %v2953_v47 = vmov 12  }
 0x768   :  { %1133 = vmatprep.subr.bf16.mxu0 %v1090_v48  ;;  %v1104_v17 = vld [vmem:[#allocation6 + $0x1b8] sm:$0xff]  ;;  %v1021_v20 = vld [vmem:[#allocation6 + $0xe8] sm:$0xff]  ;;  %v1103_v21 = vld [vmem:[#allocation6 + $0x1b0] sm:$0xff]  ;;  %1174 = vperm.xlu0 %2757, %v3194_v19   ;;  %v2954_v48 = vmov 15  }
 0x769   :  { %1045 = vmatpush1.bf16.msra.mxu1 %v1000_v40  ;;  %v1106_v23 = vld [vmem:[#allocation6 + $0x1c8] sm:$0xff]  ;;  %v1020_v24 = vld [vmem:[#allocation6 + $0xe0] sm:$0xff]  ;;  %v1023_v26 = vld [vmem:[#allocation6 + $0xf8] sm:$0xff]  ;;  %v2947_v40 = vmov 6  }
 0x76a   :  { %1046 = vmatprep.subr.bf16.mxu1 %v1003_v43  ;;  %v1105_v27 = vld [vmem:[#allocation6 + $0x1c0] sm:$0xff]  ;;  %v1108_v28 = vld [vmem:[#allocation6 + $0x1d8] sm:$0xff]  ;;  %v1022_v30 = vld [vmem:[#allocation6 + $0xf0] sm:$0xff]  ;;  %v2948_v43 = vmov 7  }
 0x76b   :  { %1134 = vmatpush1.bf16.msra.mxu0 %v1089_v52  ;;  %v1107_v31 = vld [vmem:[#allocation6 + $0x1d0] sm:$0xff]  ;;  %v1110_v32 = vld [vmem:[#allocation6 + $0x1e8] sm:$0xff]  ;;  %v1109_v33 = vld [vmem:[#allocation6 + $0x1e0] sm:$0xff] }
 0x76c   :  { %1135 = vmatprep.subr.bf16.mxu0 %v1092_v53  ;;  %v1112_v34 = vld [vmem:[#allocation6 + $0x1f8] sm:$0xff]  ;;  %v1111_v41 = vld [vmem:[#allocation6 + $0x1f0] sm:$0xff]  ;;  %2758 = vset.pattern.permute.xlu0 %v2945_v39 }
 0x76d   :  { %1047 = vmatpush1.bf16.msra.mxu1 %v1002_v35  ;;  %1184 = vperm.xlu0 %2758, %v3194_v19   ;;  %v2951_v35 = vmov 13  }
 0x76e   :  { %1048 = vmatprep.subr.bf16.mxu1 %v1005_v46  ;;  %v2952_v46 = vmov 11  }
 0x76f   :  { %1136 = vmatpush1.bf16.msra.mxu0 %v1091_v29 }
 0x770   :  { %1137 = vmatprep.subr.bf16.mxu0 %v1094_v56 }
 0x771   :  { %1049 = vmatpush1.bf16.msra.mxu1 %v1004_v49  ;;  %2762 = vset.pattern.permute.xlu0 %v2947_v40  ;;  %v2955_v49 = vmov 14  }
 0x772   :  { %1050 = vmatprep.subr.bf16.mxu1 %v1007_v50  ;;  %1224 = vperm.xlu0 %2762, %v3194_v19   ;;  %v1024_v50 = vld [vmem:[#allocation12 + $0xf] sm:$0x3] }
 0x773   :  { %1138 = vmatpush1.bf16.msra.mxu0 %v1093_v58  ;;  %v1029_v52 = vrot.slane %v1024_v50, %v3124_v14  ;;  %v1033_v53 = vrot.slane %v1024_v50, %v3127_v16 }
 0x774   :  { %1139 = vmatprep.subr.bf16.mxu0 %v1096_v59 }
 0x775   :  { %1051 = vmatpush1.bf16.msra.mxu1 %v1006_v54 }
 0x776   :  { %1052 = vmatprep.subr.bf16.mxu1 %v1009_v55  ;;  %2765 = vset.pattern.permute.xlu0 %v2949_v44 }
 0x777   :  { %1140 = vmatpush1.bf16.msra.mxu0 %v1095_v62  ;;  %1260 = vperm.xlu0 %2765, %v3194_v19   ;;  %v2956_v62 = vmov 8  }
 0x778   :  { %1141 = vmatprep.subr.bf16.mxu0 %v1098_v63 }
 0x779   :  { %1053 = vmatpush1.bf16.msra.mxu1 %v1008_v42 }
 0x77a   :  { %1054 = vmatprep.subr.bf16.mxu1 %v1011_v57 }
 0x77b   :  { %1142 = vmatpush1.bf16.msra.mxu0 %v1097_v4  ;;  %2768 = vset.pattern.permute.xlu0 %v2951_v35 }
 0x77c   :  { %1143 = vmatprep.subr.bf16.mxu0 %v1100_v5  ;;  %1290 = vperm.xlu0 %2768, %v3194_v19   ;;  %v1113_v5 = vld [vmem:[#allocation12 + $0x11] sm:$0x3] }
 0x77d   :  { %1055 = vmatpush1.bf16.msra.mxu1 %v1010_v60 }
 0x77e   :  { %1056 = vmatprep.subr.bf16.mxu1 %v1013_v61 }
 0x77f   :  { %1144 = vmatpush1.bf16.msra.mxu0 %v1099_v8 }
 0x780   :  { %1145 = vmatprep.subr.bf16.mxu0 %v1102_v9  ;;  %2771 = vset.pattern.permute.xlu0 %v2939_v3 }
 0x781   :  { %1057 = vmatpush1.bf16.msra.mxu1 %v1012_v0  ;;  %1168 = vperm.xlu0 %2771, %v3194_v19  }
 0x782   :  { %1058 = vmatprep.subr.bf16.mxu1 %v1015_v2 }
 0x783   :  { %1146 = vmatpush1.bf16.msra.mxu0 %v1101_v15 }
 0x784   :  { %1147 = vmatprep.subr.bf16.mxu0 %v1104_v17 }
 0x785   :  { %1059 = vmatpush1.bf16.msra.mxu1 %v1014_v6  ;;  %2773 = vset.pattern.permute.xlu0 %v2954_v48  ;;  %v1118_v6 = vrot.slane %v1113_v5, %v3124_v14 }
 0x786   :  { %1060 = vmatprep.subr.bf16.mxu1 %v1017_v7 }
 0x787   :  { %1148 = vmatpush1.bf16.msra.mxu0 %v1103_v21 }
 0x788   :  { %1149 = vmatprep.subr.bf16.mxu0 %v1106_v23 }
 0x789   :  { %1061 = vmatpush1.bf16.msra.mxu1 %v1016_v10 }
 0x78a   :  { %1062 = vmatprep.subr.bf16.mxu1 %v1019_v11 }
 0x78b   :  { %1150 = vmatpush1.bf16.msra.mxu0 %v1105_v27 }
 0x78c   :  { %1151 = vmatprep.subr.bf16.mxu0 %v1108_v28 }
 0x78d   :  { %1063 = vmatpush1.bf16.msra.mxu1 %v1018_v18 }
 0x78e   :  { %1064 = vmatprep.subr.bf16.mxu1 %v1021_v20 }
 0x78f   :  { %1152 = vmatpush1.bf16.msra.mxu0 %v1107_v31 }
 0x790   :  { %1153 = vmatprep.subr.bf16.mxu0 %v1110_v32 }
 0x791   :  { %1065 = vmatpush1.bf16.msra.mxu1 %v1020_v24  ;;  %v1122_v24 = vrot.slane %v1113_v5, %v3127_v16 }
 0x792   :  { %1066 = vmatprep.subr.bf16.mxu1 %v1023_v26 }
 0x793   :  { %1154 = vmatpush1.bf16.msra.mxu0 %v1109_v33 }
 0x794   :  { %1155 = vmatprep.subr.bf16.mxu0 %v1112_v34 }
 0x795   :  { %1067 = vmatpush1.bf16.msra.mxu1 %v1022_v30 }
 0x797   :  { %1156 = vmatpush1.bf16.msra.mxu0 %v1111_v41 }
 0x798   :  { %1069 = vmatmul.mubr.bf16.vlgmr.msra.gmra.mrb[24].mxu1 %v3189_v12  ;;  %v2946_v12 = vmov 5  }
 0x799   :  { %2761 = vset.pattern.permute.xlu1 %v2946_v12 }
 0x79a   :  { %1214 = vperm.xlu1 %2761, %v3194_v19  }
 0x79e   :  { %2763 = vset.pattern.permute.xlu1 %v2948_v43 }
 0x79f   :  { %1234 = vperm.xlu1 %2763, %v3194_v19  }
 0x7a3   :  { %2764 = vset.pattern.permute.xlu1 %v2950_v45 }
 0x7a4   :  { %1250 = vperm.xlu1 %2764, %v3194_v19  }
 0x7a8   :  { %2766 = vset.pattern.permute.xlu1 %v2952_v46 }
 0x7a9   :  { %1270 = vperm.xlu1 %2766, %v3194_v19  }
 0x7ad   :  { %2767 = vset.pattern.permute.xlu1 %v2953_v47 }
 0x7ae   :  { %1280 = vperm.xlu1 %2767, %v3194_v19  }
 0x7b2   :  { %2769 = vset.pattern.permute.xlu1 %v2955_v49 }
 0x7b3   :  { %1300 = vperm.xlu1 %2769, %v3194_v19  }
 0x7b7   :  { %2770 = vset.pattern.permute.xlu1 %v2954_v48 }
 0x7b8   :  { %1310 = vperm.xlu1 %2770, %v3194_v19  }
 0x7bc   :  { %2772 = vset.pattern.permute.xlu1 %v2956_v62 }
 0x7dd   :  { %v1195_v63 = vpop.permute.xlu1 %1194 }
 0x7e2   :  { %v1205_v0 = vpop.permute.xlu1 %1204 }
 0x7e7   :  { %v1175_v7 = vpop.permute.xlu0 %1174 }
 0x7ec   :  { %v1185_v21 = vpop.permute.xlu0 %1184 }
 0x7f1   :  { %v1225_v28 = vpop.permute.xlu0 %1224 }
 0x7f6   :  { %v1261_v41 = vpop.permute.xlu0 %1260 }
 0x7fb   :  { %v1291_v39 = vpop.permute.xlu0 %1290 }
 0x800   :  { %v1169_v35 = vpop.permute.xlu0 %1168 }
 0x819   :  { %v1215_v2 = vpop.permute.xlu1 %1214 }
 0x81e   :  { %v1235_v4 = vpop.permute.xlu1 %1234 }
 0x823   :  { %v1251_v8 = vpop.permute.xlu1 %1250 }
 0x828   :  { %v1271_v23 = vpop.permute.xlu1 %1270 }
 0x82d   :  { %v1281_v32 = vpop.permute.xlu1 %1280 }
 0x832   :  { %v1301_v36 = vpop.permute.xlu1 %1300 }
 0x837   :  { %v1311_v43 = vpop.permute.xlu1 %1310 }
 0x86b   :  { %v1070_v54 = vpop.f32.mrb[24].mxu1 }
 0x86c   :  { %v1071_v55 = vadd.f32 %v1070_v54, %v1029_v52  ;;  %v1072_v29 = vpop.f32.mrb[25].mxu1 }
 0x86d   :  { %v1073_v56 = vadd.f32 %v1072_v29, %v1033_v53  ;;  %v1074_v42 = vpop.f32.mrb[26].mxu1 }
 0x86e   :  { %v1077_v57 = vmax.f32 %v1071_v55, 0.0  ;;  %v1075_v58 = vpop.f32.mrb[27].mxu1 }
 0x86f   :  { %v1078_v59 = vmax.f32 %v1073_v56, 0.0 }
 0x870   :  { %v1079_v61 = vpack.c.bf16 %v1077_v57, %v1077_v57 }
 0x871   :  { %v1080_v60 = vpack.c.bf16 %v1078_v59, %v1078_v59 }
 0x873   :  { %1157 = vmatprep.mubr.bf16.mxu0 %v1080_v60 }
 0x874   :  { %1158 = vmatmul.mubr.bf16.vlgmr.msra.gmra.mrb[12].mxu0 %v1079_v61 }
 0x947   :  { %v1159_v9 = vpop.f32.mrb[12].mxu0 }
 0x948   :  { %v1160_v10 = vadd.f32 %v1159_v9, %v1118_v6  ;;  %v1161_v11 = vpop.f32.mrb[13].mxu0 }
 0x949   :  { %v1163_v15 = vpop.f32.mrb[14].mxu0  ;;  %v1162_v30 = vadd.f32 %v1161_v11, %v1122_v24 }
 0x94a   :  { %v1164_v17 = vpop.f32.mrb[15].mxu0  ;;  %v1197_v18 = vmul.f32 %v1195_v63, %v1160_v10  ;;  %v1177_v20 = vmul.f32 %v1175_v7, %v1160_v10  ;;  %v1207_v26 = vmul.f32 %v1205_v0, %v1160_v10  ;;  %v1187_v27 = vmul.f32 %v1185_v21, %v1160_v10 }
 0x94b   :  { %v1227_v31 = vmul.f32 %v1225_v28, %v1160_v10  ;;  %v1253_v33 = vmul.f32 %v1251_v8, %v1162_v30  ;;  %v1217_v34 = vmul.f32 %v1215_v2, %v1160_v10  ;;  %v1273_v37 = vmul.f32 %v1271_v23, %v1162_v30 }
 0x94c   :  { %1199 = vrot.lane.b32.xlu0 %v1197_v18, %s2957_s1  ;;  %1179 = vrot.lane.b32.xlu1 %v1177_v20, %s2958_s8  ;;  %v1237_v38 = vmul.f32 %v1235_v4, %v1160_v10  ;;  %v1293_v12 = vmul.f32 %v1291_v39, %v1162_v30  ;;  %v1263_v40 = vmul.f32 %v1261_v41, %v1162_v30 }
 0x94d   :  { %v1313_v44 = vmul.f32 %v1311_v43, %v1162_v30  ;;  %v1303_v45 = vmul.f32 %v1301_v36, %v1162_v30  ;;  %v1171_v48 = vmul.f32 %v1169_v35, %v1160_v10 }
 0x950   :  { %1209 = vrot.lane.b32.xlu0 %v1207_v26, %s2917_s14  ;;  %1189 = vrot.lane.b32.xlu1 %v1187_v27, %s2959_s28 }
 0x954   :  { %1229 = vrot.lane.b32.xlu0 %v1227_v31, %s2960_s29  ;;  %1244 = vperm.xlu1 %2772, %v3194_v19   ;;  %v1283_v19 = vmul.f32 %v1281_v32, %v1162_v30 }
 0x958   :  { %1255 = vrot.lane.b32.xlu0 %v1253_v33, %s2958_s8  ;;  %1219 = vrot.lane.b32.xlu1 %v1217_v34, %s2961_s30 }
 0x95c   :  { %1275 = vrot.lane.b32.xlu0 %v1273_v37, %s2957_s1  ;;  %1239 = vrot.lane.b32.xlu1 %v1237_v38, %s2962_s0 }
 0x960   :  { %1295 = vrot.lane.b32.xlu0 %v1293_v12, %s2961_s30  ;;  %1265 = vrot.lane.b32.xlu1 %v1263_v40, %s2959_s28 }
 0x964   :  { %1315 = vrot.lane.b32.xlu0 %v1313_v44, %s2962_s0  ;;  %1285 = vrot.lane.b32.xlu1 %v1283_v19, %s2917_s14 }
 0x968   :  { %1305 = vrot.lane.b32.xlu1 %v1303_v45, %s2960_s29 }
 0x9be   :  { %v1180_v46 = vpop.permute.xlu1 %1179  ;;  %v1200_v47 = vpop.permute.xlu0 %1199 }
 0x9bf   :  { %v1182_v50 = vadd.f32 %v1180_v46, %v1171_v48 }
 0x9c2   :  { %v1190_v49 = vpop.permute.xlu1 %1189  ;;  %v1210_v52 = vpop.permute.xlu0 %1209 }
 0x9c3   :  { %v1192_v53 = vadd.f32 %v1190_v49, %v1182_v50 }
 0x9c5   :  { %v1202_v54 = vadd.f32 %v1200_v47, %v1192_v53 }
 0x9c6   :  { %v1230_v55 = vpop.permute.xlu0 %1229 }
 0x9c7   :  { %v1212_v56 = vadd.f32 %v1210_v52, %v1202_v54 }
 0x9ca   :  { %v1256_v58 = vpop.permute.xlu0 %1255 }
 0x9ce   :  { %v1276_v0 = vpop.permute.xlu0 %1275 }
 0x9d2   :  { %v1296_v8 = vpop.permute.xlu0 %1295 }
 0x9d3   :  { %v1245_v29 = vpop.permute.xlu1 %1244 }
 0x9d4   :  { %v1247_v61 = vmul.f32 %v1245_v29, %v1162_v30 }
 0x9d6   :  { %v1316_v17 = vpop.permute.xlu0 %1315 }
 0x9d7   :  { %v1220_v42 = vpop.permute.xlu1 %1219 }
 0x9d8   :  { %v1222_v57 = vadd.f32 %v1220_v42, %v1212_v56 }
 0x9da   :  { %v1232_v59 = vadd.f32 %v1230_v55, %v1222_v57 }
 0x9db   :  { %v1240_v60 = vpop.permute.xlu1 %1239 }
 0x9dc   :  { %v1242_v62 = vadd.f32 %v1240_v60, %v1232_v59 }
 0x9de   :  { %v1248_v63 = vadd.f32 %v1247_v61, %v1242_v62 }
 0x9df   :  { %v1266_v2 = vpop.permute.xlu1 %1265 }
 0x9e0   :  { %v1258_v4 = vadd.f32 %v1256_v58, %v1248_v63 }
 0x9e2   :  { %v1268_v5 = vadd.f32 %v1266_v2, %v1258_v4 }
 0x9e3   :  { %v1286_v6 = vpop.permute.xlu1 %1285 }
 0x9e4   :  { %v1278_v7 = vadd.f32 %v1276_v0, %v1268_v5 }
 0x9e6   :  { %v1288_v9 = vadd.f32 %v1286_v6, %v1278_v7 }
 0x9e7   :  { %v1306_v11 = vpop.permute.xlu1 %1305 }
 0x9e8   :  { %v1298_v10 = vadd.f32 %v1296_v8, %v1288_v9 }
 0x9ea   :  { %v1308_v15 = vadd.f32 %v1306_v11, %v1298_v10 }
 0x9ec   :  { %v1318_v18 = vadd.f32 %v1316_v17, %v1308_v15 }
 0x9ee   :  { %v1319_v20 = vpack.c.bf16 %v1318_v18, %v1318_v18 }
 0x9ef   :  { %2910 = dma.done.wait [#allocation8 + $0x5], 1024 }
 0x9f0   :  { %2911 = vsyncadd [#allocation8 + $0x5], 4294966272  ;;  %1368 = vmatprep.mubr.bf16.mxu1 %v2939_v3  ;;  %v1325_v21 = vld [vmem:[#allocation7 + $0x8] sm:$0xff]  ;;  %v1324_v23 = vld [vmem:[#allocation7] sm:$0xff]  ;;  %vm1332_vm2 = vcmask 130048   ;;  %vm1541_vm3 = vcmask 1043456   ;;  %v1500_v52 = vpack.c.bf16 %v3117_v1, %v3117_v1 }
 0x9f1   :  { %v1327_v24 = vld [vmem:[#allocation7 + $0x18] sm:$0xff]  ;;  %1336 = vmatprep.subr.bf16.mxu1 %v1325_v21  ;;  %v1326_v26 = vld [vmem:[#allocation7 + $0x10] sm:$0xff]  ;;  %v1329_v27 = vld [vmem:[#allocation7 + $0x28] sm:$0xff]  ;;  %vm1537_vm4 = vcmask 195584   ;;  %s2963_s14 = smov [#allocation14]   ;;  %vm2345_vm5 = vcmask 25600  }
 0x9f2   :  { %1337 = vmatpush1.bf16.msra.mxu1 %v1324_v23  ;;  %v1675_v28 = vld [vmem:[#allocation4 + $0x188] sm:$0xff]  ;;  %v1674_v30 = vld [vmem:[#allocation4 + $0x180] sm:$0xff]  ;;  %v1677_v32 = vld [vmem:[#allocation4 + $0x198] sm:$0xff]  ;;  %s2353_s5 = sshll.u32 %s2963_s14, 4  ;;  %s2354_s5 = int_to_ptr.vmem [resolvable:$true] %s2353_s5 }
 0x9f3   :  { %1377 = vmatprep.subr.bf16.mxu1 %v1327_v24  ;;  %v1678_v31 = vld [vmem:[#allocation4 + $0x1a0] sm:$0xff]  ;;  %1770 = vmatprep.subr.bf16.mxu0 %v1675_v28  ;;  %v1681_v33 = vld [vmem:[#allocation4 + $0x1b8] sm:$0xff]  ;;  %v1680_v36 = vld [vmem:[#allocation4 + $0x1b0] sm:$0xff]  ;;  %s2874_s13 = scalar_lea.vmem %s2354_s5, 32  ;;  %p2879_p5 = scmp.lt.s32.totalorder %s2354_s5, %s2354_s5 }
 0x9f4   :  { %1771 = vmatpush1.bf16.msra.mxu0 %v1674_v30  ;;  %v1328_v34 = vld [vmem:[#allocation7 + $0x20] sm:$0xff]  ;;  %v1331_v41 = vld [vmem:[#allocation7 + $0x38] sm:$0xff]  ;;  %v1684_v37 = vld [vmem:[#allocation4 + $0x1d0] sm:$0xff]  ;;  %p2875_p4 = scmp.ne.s32.totalorder %s2354_s5, %s2874_s13  ;;  %p2880_p6 = scmp.lt.s32.totalorder %s2874_s13, %s2874_s13 }
 0x9f5   :  { %2424 = vmatmul.mubr.msk.bf16.vlgmr.msra.gmra.mrb[28].mxu1 %vm1332_vm2, %v1319_v20  ;;  %1772 = vmatprep.subr.bf16.mxu0 %v1678_v31  ;;  %v1683_v38 = vld [vmem:[#allocation4 + $0x1c8] sm:$0xff]  ;;  %v1330_v12 = vld [vmem:[#allocation7 + $0x30] sm:$0xff]  ;;  %v1686_v43 = vld [vmem:[#allocation4 + $0x1e0] sm:$0xff] }
 0x9f6   :  { %1378 = vmatpush1.bf16.msra.mxu1 %v1326_v26  ;;  %1409 = vmatprep.mubr.bf16.mxu1 %v2939_v3  ;;  %v1687_v39 = vld [vmem:[#allocation4 + $0x1e8] sm:$0xff]  ;;  %v2776_v40 = vld [vmem:[#allocation2 + $0x44] ss:$16 sps:$4 sm:$0xff]   ;;  %v1689_v45 = vld [vmem:[#allocation4 + $0x1f8] sm:$0xff]  ;;  %p2881_p7 = por %p2880_p6, %p2879_p5 }
 0x9f7   :  { %1418 = vmatprep.subr.bf16.mxu1 %v1329_v27  ;;  %v1690_v44 = vld [vmem:[#allocation4 + $0x200] sm:$0xff]  ;;  %v1505_v19 = vld [vmem:[#allocation2 + $0x60] sm:$0xff]  ;;  %v2781_v49 = vld [vmem:[#allocation2 + $0x4c] ss:$16 sps:$4 sm:$0xff]  }
 0x9f8   :  { %1773 = vmatpush1.bf16.msra.mxu0 %v1677_v32  ;;  %v2774_v35 = vld [vmem:[#allocation2 + $0x40] ss:$16 sps:$4 sm:$0xff]   ;;  %v2433_v46 = vcombine.high %v1505_v19, %v1505_v19  ;;  %v2432_v47 = vcombine.low %v1505_v19, %v1505_v19  ;;  %v1506_v50 = vld [vmem:[#allocation2 + $0x68] sm:$0xff]  ;;  %v1723_v56 = vld [vmem:[#allocation4 + $0x308] sm:$0xff]  ;;  %p2882_p8 = pnand %p2881_p7, %p2875_p4 }
 0x9f9   :  { %1774 = vmatprep.subr.bf16.mxu0 %v1681_v33  ;;  %v2779_v53 = vld [vmem:[#allocation2 + $0x48] ss:$16 sps:$4 sm:$0xff]   ;;  %v2435_v54 = vcombine.high %v1506_v50, %v1506_v50  ;;  %v2434_v55 = vcombine.low %v1506_v50, %v1506_v50  ;;  %v1722_v42 = vld [vmem:[#allocation4 + $0x300] sm:$0xff]  ;;  %v1728_v59 = vld [vmem:[#allocation4 + $0x330] sm:$0xff] }
 0x9fa   :  { %v1543_v48 = vsel %vm1541_vm3, %v2432_v47, 0  ;;  %v1726_v57 = vld [vmem:[#allocation4 + $0x320] sm:$0xff]  ;;  %v1725_v1 = vld [vmem:[#allocation4 + $0x318] sm:$0xff]  ;;  %v1732_v60 = vld [vmem:[#allocation4 + $0x350] sm:$0xff] }
 0x9fb   :  { %v1549_v29 = vsel %vm1541_vm3, %v2434_v55, 0  ;;  %v1729_v58 = vld [vmem:[#allocation4 + $0x338] sm:$0xff]  ;;  %v1731_v61 = vld [vmem:[#allocation4 + $0x348] sm:$0xff]  ;;  %v1692_v0 = vld [vmem:[#allocation4 + $0x210] sm:$0xff] }
 0x9fc   :  { %1775 = vmatpush1.bf16.msra.mxu0 %v1680_v36  ;;  %v1693_v62 = vld [vmem:[#allocation4 + $0x218] sm:$0xff]  ;;  %v1735_v63 = vld [vmem:[#allocation4 + $0x368] sm:$0xff]  ;;  %v1734_v2 = vld [vmem:[#allocation4 + $0x360] sm:$0xff] }
 0x9fd   :  { %2425 = vmatmul.mubr.msk.bf16.vlgmr.msra.gmra.mrb[32].mxu1 %vm1332_vm2, %v1319_v20  ;;  %1776 = vmatprep.subr.bf16.mxu0 %v1684_v37  ;;  %v1696_v4 = vld [vmem:[#allocation4 + $0x230] sm:$0xff]  ;;  %v1738_v5 = vld [vmem:[#allocation4 + $0x380] sm:$0xff]  ;;  %v1695_v6 = vld [vmem:[#allocation4 + $0x228] sm:$0xff] }
 0x9fe   :  { %1419 = vmatpush1.bf16.msra.mxu1 %v1328_v34  ;;  %1450 = vmatprep.mubr.bf16.mxu1 %v2939_v3  ;;  %v1737_v7 = vld [vmem:[#allocation4 + $0x378] sm:$0xff]  ;;  %v1699_v8 = vld [vmem:[#allocation4 + $0x248] sm:$0xff]  ;;  %v1698_v10 = vld [vmem:[#allocation4 + $0x240] sm:$0xff] }
 0x9ff   :  { %1459 = vmatprep.subr.bf16.mxu1 %v1331_v41  ;;  %v1741_v9 = vld [vmem:[#allocation4 + $0x398] sm:$0xff]  ;;  %v1740_v11 = vld [vmem:[#allocation4 + $0x390] sm:$0xff]  ;;  %v1702_v15 = vld [vmem:[#allocation4 + $0x260] sm:$0xff] }
 0xa00   :  { %1777 = vmatpush1.bf16.msra.mxu0 %v1683_v38  ;;  %v1744_v17 = vld [vmem:[#allocation4 + $0x3b0] sm:$0xff]  ;;  %v1701_v18 = vld [vmem:[#allocation4 + $0x258] sm:$0xff]  ;;  %v1747_v23 = vld [vmem:[#allocation4 + $0x3c8] sm:$0xff] }
 0xa01   :  { %1778 = vmatprep.subr.bf16.mxu0 %v1687_v39  ;;  %v1705_v21 = vld [vmem:[#allocation4 + $0x278] sm:$0xff]  ;;  %v1704_v24 = vld [vmem:[#allocation4 + $0x270] sm:$0xff]  ;;  %v1746_v26 = vld [vmem:[#allocation4 + $0x3c0] sm:$0xff] }
 0xa02   :  { %v1708_v27 = vld [vmem:[#allocation4 + $0x290] sm:$0xff]  ;;  %v1750_v28 = vld [vmem:[#allocation4 + $0x3e0] sm:$0xff]  ;;  %v1707_v30 = vld [vmem:[#allocation4 + $0x288] sm:$0xff] }
 0xa03   :  { %v1749_v31 = vld [vmem:[#allocation4 + $0x3d8] sm:$0xff]  ;;  %v1711_v32 = vld [vmem:[#allocation4 + $0x2a8] sm:$0xff]  ;;  %v1710_v34 = vld [vmem:[#allocation4 + $0x2a0] sm:$0xff] }
 0xa04   :  { %1779 = vmatpush1.bf16.msra.mxu0 %v1686_v43  ;;  %v1753_v33 = vld [vmem:[#allocation4 + $0x3f8] sm:$0xff]  ;;  %v1752_v41 = vld [vmem:[#allocation4 + $0x3f0] sm:$0xff]  ;;  %v1714_v36 = vld [vmem:[#allocation4 + $0x2c0] sm:$0xff] }
 0xa05   :  { %2426 = vmatmul.mubr.msk.bf16.vlgmr.msra.gmra.mrb[36].mxu1 %vm1332_vm2, %v1319_v20  ;;  %1780 = vmatprep.subr.bf16.mxu0 %v1690_v44  ;;  %v1756_v37 = vld [vmem:[#allocation4 + $0x410] sm:$0xff]  ;;  %v1713_v38 = vld [vmem:[#allocation4 + $0x2b8] sm:$0xff]  ;;  %v1755_v39 = vld [vmem:[#allocation4 + $0x408] sm:$0xff] }
 0xa06   :  { %1460 = vmatpush1.bf16.msra.mxu1 %v1330_v12  ;;  %1491 = vmatprep.mubr.bf16.mxu1 %v2939_v3  ;;  %v1717_v12 = vld [vmem:[#allocation4 + $0x2d8] sm:$0xff]  ;;  %v1716_v43 = vld [vmem:[#allocation4 + $0x2d0] sm:$0xff]  ;;  %v1758_v44 = vld [vmem:[#allocation4 + $0x420] sm:$0xff] }
 0xa07   :  { %1554 = vmatprep.subr.bf16.mxu1 %v2776_v40  ;;  %v1759_v40 = vld [vmem:[#allocation4 + $0x428] sm:$0xff]  ;;  %v1720_v19 = vld [vmem:[#allocation4 + $0x2f0] sm:$0xff]  ;;  %v1765_v47 = vld [vmem:[#allocation4 + $0x458] sm:$0xff] }
 0xa08   :  { %1781 = vmatpush1.bf16.msra.mxu0 %v1689_v45  ;;  %v1762_v45 = vld [vmem:[#allocation4 + $0x440] sm:$0xff]  ;;  %v1768_v50 = vld [vmem:[#allocation4 + $0x470] sm:$0xff]  ;;  %v1679_v13 = vld [vmem:[#allocation4 + $0x1a8] sm:$0xff] }
 0xa09   :  { %1782 = vmatprep.subr.bf16.mxu0 %v1693_v62 }
 0xa0c   :  { %1783 = vmatpush1.bf16.msra.mxu0 %v1692_v0 }
 0xa0d   :  { %2427 = vmatmul.mubr.msk.bf16.vlgmr.msra.gmra.mrb[40].mxu1 %vm1332_vm2, %v1319_v20  ;;  %1784 = vmatprep.subr.bf16.mxu0 %v1696_v4  ;;  %v1743_v20 = vld [vmem:[#allocation4 + $0x3a8] sm:$0xff] }
 0xa0e   :  { %1555 = vmatpush1.bf16.msra.mxu1 %v2774_v35  ;;  %1586 = vmatprep.mubr.bf16.mxu1 %v2939_v3  ;;  %v1719_v35 = vld [vmem:[#allocation4 + $0x2e8] sm:$0xff] }
 0xa0f   :  { %2436 = vmatprep.subr.msk.bf16.mxu1 %vm1541_vm3, %v2433_v46  ;;  %v1761_v46 = vld [vmem:[#allocation4 + $0x438] sm:$0xff] }
 0xa10   :  { %1785 = vmatpush1.bf16.msra.mxu0 %v1695_v6 }
 0xa11   :  { %1786 = vmatprep.subr.bf16.mxu0 %v1699_v8 }
 0xa12   :  { %1557 = vmatpush1.bf16.msra.mxu1 %v1543_v48  ;;  %v1700_v48 = vld [vmem:[#allocation4 + $0x250] sm:$0xff] }
 0xa13   :  { %1595 = vmatprep.subr.bf16.mxu1 %v2781_v49  ;;  %v1764_v49 = vld [vmem:[#allocation4 + $0x450] sm:$0xff] }
 0xa14   :  { %1787 = vmatpush1.bf16.msra.mxu0 %v1698_v10 }
 0xa15   :  { %2437 = vmatmul.mubr.msk.bf16.vlgmr.msra.gmra.mrb[44].mxu1 %vm1537_vm4, %v1500_v52  ;;  %1788 = vmatprep.subr.bf16.mxu0 %v1702_v15 }
 0xa16   :  { %1596 = vmatpush1.bf16.msra.mxu1 %v2779_v53  ;;  %1627 = vmatprep.mubr.bf16.mxu1 %v2939_v3  ;;  %v1748_v53 = vld [vmem:[#allocation4 + $0x3d0] sm:$0xff] }
 0xa17   :  { %2438 = vmatprep.subr.msk.bf16.mxu1 %vm1541_vm3, %v2435_v54 }
 0xa18   :  { %1789 = vmatpush1.bf16.msra.mxu0 %v1701_v18 }
 0xa19   :  { %1790 = vmatprep.subr.bf16.mxu0 %v1705_v21 }
 0xa1a   :  { %1598 = vmatpush1.bf16.msra.mxu1 %v1549_v29 }
 0xa1b   :  { %1811 = vmatprep.subr.bf16.mxu1 %v1723_v56 }
 0xa1c   :  { %1791 = vmatpush1.bf16.msra.mxu0 %v1704_v24 }
 0xa1d   :  { %2439 = vmatmul.mubr.msk.bf16.vlgmr.msra.gmra.mrb[48].mxu1 %vm1537_vm4, %v1500_v52  ;;  %1792 = vmatprep.subr.bf16.mxu0 %v1708_v27  ;;  %v1767_v52 = vld [vmem:[#allocation4 + $0x468] sm:$0xff] }
 0xa1e   :  { %1812 = vmatpush1.bf16.msra.mxu1 %v1722_v42 }
 0xa1f   :  { %1813 = vmatprep.subr.bf16.mxu1 %v1726_v57 }
 0xa20   :  { %1793 = vmatpush1.bf16.msra.mxu0 %v1707_v30 }
 0xa21   :  { %1794 = vmatprep.subr.bf16.mxu0 %v1711_v32 }
 0xa22   :  { %1814 = vmatpush1.bf16.msra.mxu1 %v1725_v1 }
 0xa23   :  { %1815 = vmatprep.subr.bf16.mxu1 %v1729_v58 }
 0xa24   :  { %1795 = vmatpush1.bf16.msra.mxu0 %v1710_v34 }
 0xa25   :  { %1796 = vmatprep.subr.bf16.mxu0 %v1714_v36  ;;  %v1703_v36 = vld [vmem:[#allocation4 + $0x268] sm:$0xff] }
 0xa26   :  { %1816 = vmatpush1.bf16.msra.mxu1 %v1728_v59 }
 0xa27   :  { %1817 = vmatprep.subr.bf16.mxu1 %v1732_v60 }
 0xa28   :  { %1797 = vmatpush1.bf16.msra.mxu0 %v1713_v38 }
 0xa29   :  { %1798 = vmatprep.subr.bf16.mxu0 %v1717_v12 }
 0xa2a   :  { %1818 = vmatpush1.bf16.msra.mxu1 %v1731_v61 }
 0xa2b   :  { %1819 = vmatprep.subr.bf16.mxu1 %v1735_v63 }
 0xa2c   :  { %1799 = vmatpush1.bf16.msra.mxu0 %v1716_v43 }
 0xa2d   :  { %1800 = vmatprep.subr.bf16.mxu0 %v1720_v19  ;;  %v1682_v19 = vld [vmem:[#allocation4 + $0x1c0] sm:$0xff] }
 0xa2e   :  { %1820 = vmatpush1.bf16.msra.mxu1 %v1734_v2 }
 0xa2f   :  { %1821 = vmatprep.subr.bf16.mxu1 %v1738_v5  ;;  %v1640_v5 = vld [vmem:[#allocation12 + $0x13] sm:$0xf] }
 0xa30   :  { %1801 = vmatpush1.bf16.msra.mxu0 %v1719_v35  ;;  %v1645_v6 = vrot.slane %v1640_v5, %v3124_v14  ;;  %v1649_v8 = vrot.slane %v1640_v5, %v3127_v16  ;;  %v1653_v24 = vrot.slane %v1640_v5, %v3132_v22  ;;  %v1657_v27 = vrot.slane %v1640_v5, %v235_v25  ;;  %v1709_v35 = vld [vmem:[#allocation4 + $0x298] sm:$0xff]  ;;  %v1766_v5 = vld [vmem:[#allocation4 + $0x460] sm:$0xff] }
 0xa31   :  { %2490 = vmatprep.subr.bf16.mxu0 %v1700_v48  ;;  %v1727_v48 = vld [vmem:[#allocation4 + $0x328] sm:$0xff] }
 0xa32   :  { %1822 = vmatpush1.bf16.msra.mxu1 %v1737_v7 }
 0xa33   :  { %1823 = vmatprep.subr.bf16.mxu1 %v1741_v9 }
 0xa36   :  { %1824 = vmatpush1.bf16.msra.mxu1 %v1740_v11 }
 0xa37   :  { %1825 = vmatprep.subr.bf16.mxu1 %v1744_v17 }
 0xa3a   :  { %1826 = vmatpush1.bf16.msra.mxu1 %v1743_v20 }
 0xa3b   :  { %1827 = vmatprep.subr.bf16.mxu1 %v1747_v23 }
 0xa3e   :  { %1828 = vmatpush1.bf16.msra.mxu1 %v1746_v26 }
 0xa3f   :  { %1829 = vmatprep.subr.bf16.mxu1 %v1750_v28 }
 0xa42   :  { %1830 = vmatpush1.bf16.msra.mxu1 %v1749_v31 }
 0xa43   :  { %1831 = vmatprep.subr.bf16.mxu1 %v1753_v33  ;;  %v1676_v33 = vld [vmem:[#allocation4 + $0x190] sm:$0xff] }
 0xa46   :  { %1832 = vmatpush1.bf16.msra.mxu1 %v1752_v41 }
 0xa47   :  { %1833 = vmatprep.subr.bf16.mxu1 %v1756_v37 }
 0xa4a   :  { %1834 = vmatpush1.bf16.msra.mxu1 %v1755_v39 }
 0xa4b   :  { %1835 = vmatprep.subr.bf16.mxu1 %v1759_v40  ;;  %v1706_v40 = vld [vmem:[#allocation4 + $0x280] sm:$0xff] }
 0xa4e   :  { %1836 = vmatpush1.bf16.msra.mxu1 %v1758_v44 }
 0xa4f   :  { %1837 = vmatprep.subr.bf16.mxu1 %v1762_v45  ;;  %v1724_v45 = vld [vmem:[#allocation4 + $0x310] sm:$0xff] }
 0xa52   :  { %1838 = vmatpush1.bf16.msra.mxu1 %v1761_v46  ;;  %v1751_v46 = vld [vmem:[#allocation4 + $0x3e8] sm:$0xff] }
 0xa53   :  { %1839 = vmatprep.subr.bf16.mxu1 %v1765_v47  ;;  %v1685_v47 = vld [vmem:[#allocation4 + $0x1d8] sm:$0xff] }
 0xa56   :  { %1840 = vmatpush1.bf16.msra.mxu1 %v1764_v49  ;;  %v1712_v49 = vld [vmem:[#allocation4 + $0x2b0] sm:$0xff] }
 0xa57   :  { %1841 = vmatprep.subr.bf16.mxu1 %v1768_v50  ;;  %v1754_v50 = vld [vmem:[#allocation4 + $0x400] sm:$0xff] }
 0xa5a   :  { %1842 = vmatpush1.bf16.msra.mxu1 %v1767_v52  ;;  %v1688_v52 = vld [vmem:[#allocation4 + $0x1f0] sm:$0xff] }
 0xa5b   :  { %2512 = vmatprep.subr.bf16.mxu1 %v1748_v53  ;;  %v1730_v53 = vld [vmem:[#allocation4 + $0x340] sm:$0xff] }
 0xac8   :  { %v1370_v54 = vpop.f32.mrb[28].mxu1 }
 0xac9   :  { %v1372_v55 = vpop.f32.mrb[29].mxu1 }
 0xaca   :  { %v1374_v29 = vpop.f32.mrb[30].mxu1 }
 0xacb   :  { %v1375_v56 = vpop.f32.mrb[31].mxu1  ;;  %v1691_v29 = vld [vmem:[#allocation4 + $0x208] sm:$0xff] }
 0xacc   :  { %v1733_v56 = vld [vmem:[#allocation4 + $0x358] sm:$0xff] }
 0xad0   :  { %v1411_v42 = vpop.f32.mrb[32].mxu1 }
 0xad1   :  { %v1413_v57 = vpop.f32.mrb[33].mxu1 }
 0xad2   :  { %v1415_v1 = vpop.f32.mrb[34].mxu1 }
 0xad3   :  { %v1416_v58 = vpop.f32.mrb[35].mxu1  ;;  %v1694_v1 = vld [vmem:[#allocation4 + $0x220] sm:$0xff] }
 0xad4   :  { %v1736_v58 = vld [vmem:[#allocation4 + $0x370] sm:$0xff] }
 0xad8   :  { %v3236_v59 = vpop.f32.mrb[36].mxu1 }
 0xad9   :  { %v3238_v60 = vpop.f32.mrb[37].mxu1 }
 0xada   :  { %v1456_v61 = vpop.f32.mrb[38].mxu1 }
 0xadb   :  { %v1457_v62 = vpop.f32.mrb[39].mxu1  ;;  %v1721_v61 = vld [vmem:[#allocation4 + $0x2f8] sm:$0xff] }
 0xadc   :  { %v1763_v62 = vld [vmem:[#allocation4 + $0x448] sm:$0xff] }
 0xae0   :  { %v3240_v63 = vpop.f32.mrb[40].mxu1 }
 0xae1   :  { %v3242_v0 = vpop.f32.mrb[41].mxu1 }
 0xae2   :  { %v1497_v2 = vpop.f32.mrb[42].mxu1 }
 0xae3   :  { %v1498_v4 = vpop.f32.mrb[43].mxu1  ;;  %v1697_v2 = vld [vmem:[#allocation4 + $0x238] sm:$0xff] }
 0xae4   :  { %v1739_v4 = vld [vmem:[#allocation4 + $0x388] sm:$0xff] }
 0xae8   :  { %v1588_v7 = vpop.f32.mrb[44].mxu1 }
 0xae9   :  { %v1636_v9 = vadd.f32 %v1588_v7, %v1370_v54  ;;  %v1590_v10 = vpop.f32.mrb[45].mxu1  ;;  %v1715_v54 = vld [vmem:[#allocation4 + $0x2c8] sm:$0xff]  ;;  %v1742_v7 = vld [vmem:[#allocation4 + $0x3a0] sm:$0xff] }
 0xaea   :  { %v1637_v11 = vadd.f32 %v1590_v10, %v1372_v55  ;;  %v1592_v15 = vpop.f32.mrb[46].mxu1  ;;  %v1757_v55 = vld [vmem:[#allocation4 + $0x418] sm:$0xff] }
 0xaeb   :  { %v1662_v17 = vadd.f32 %v1645_v6, %v1636_v9  ;;  %v1593_v18 = vpop.f32.mrb[47].mxu1  ;;  %v1962_v6 = vld [vmem:[#allocation6 + $0x208] sm:$0xff]  ;;  %v1769_v9 = vld [vmem:[#allocation4 + $0x478] sm:$0xff]  ;;  %v1963_v15 = vld [vmem:[#allocation6 + $0x210] sm:$0xff] }
 0xaec   :  { %v1663_v20 = vadd.f32 %v1649_v8, %v1637_v11  ;;  %v1961_v8 = vld [vmem:[#allocation6 + $0x200] sm:$0xff]  ;;  %v1964_v10 = vld [vmem:[#allocation6 + $0x218] sm:$0xff] }
 0xaed   :  { %v1666_v21 = vmax.f32 %v1662_v17, 0.0  ;;  %v1745_v11 = vld [vmem:[#allocation4 + $0x3b8] sm:$0xff]  ;;  %v1966_v17 = vld [vmem:[#allocation6 + $0x228] sm:$0xff]  ;;  %v1965_v18 = vld [vmem:[#allocation6 + $0x220] sm:$0xff] }
 0xaee   :  { %v1667_v23 = vmax.f32 %v1663_v20, 0.0  ;;  %v1968_v20 = vld [vmem:[#allocation6 + $0x238] sm:$0xff] }
 0xaef   :  { %v3249_v30 = vpack.c.bf16 %v1666_v21, %v1666_v21  ;;  %v1967_v21 = vld [vmem:[#allocation6 + $0x230] sm:$0xff] }
 0xaf0   :  { %v1629_v26 = vpop.f32.mrb[48].mxu1  ;;  %v1671_v28 = vpack.c.bf16 %v1667_v23, %v1667_v23  ;;  %v1970_v23 = vld [vmem:[#allocation6 + $0x248] sm:$0xff] }
 0xaf1   :  { %v1638_v31 = vadd.f32 %v1629_v26, %v1411_v42  ;;  %v1631_v32 = vpop.f32.mrb[49].mxu1  ;;  %v1718_v42 = vld [vmem:[#allocation4 + $0x2e0] sm:$0xff]  ;;  %v1972_v26 = vld [vmem:[#allocation6 + $0x258] sm:$0xff] }
 0xaf2   :  { %v1639_v34 = vadd.f32 %v1631_v32, %v1413_v57  ;;  %v1633_v41 = vpop.f32.mrb[50].mxu1  ;;  %1802 = vmatprep.mubr.bf16.mxu0 %v1671_v28  ;;  %v1760_v57 = vld [vmem:[#allocation4 + $0x430] sm:$0xff] }
 0xaf3   :  { %v1664_v37 = vadd.f32 %v1653_v24, %v1638_v31  ;;  %v1634_v38 = vpop.f32.mrb[51].mxu1  ;;  %1803 = vmatmul.mubr.bf16.vlgmr.msra.gmra.mrb[16].mxu0 %v3249_v30  ;;  %v1969_v24 = vld [vmem:[#allocation6 + $0x240] sm:$0xff]  ;;  %v1976_v31 = vld [vmem:[#allocation6 + $0x278] sm:$0xff]  ;;  %v1975_v32 = vld [vmem:[#allocation6 + $0x270] sm:$0xff] }
 0xaf4   :  { %v1665_v39 = vadd.f32 %v1657_v27, %v1639_v34  ;;  %2491 = vmatpush3.bf16.msra.mxu0 %v1676_v33  ;;  %1884 = vmatprep.mubr.bf16.mxu0 %v1671_v28  ;;  %v1971_v27 = vld [vmem:[#allocation6 + $0x250] sm:$0xff]  ;;  %v1974_v28 = vld [vmem:[#allocation6 + $0x268] sm:$0xff]  ;;  %v1977_v34 = vld [vmem:[#allocation6 + $0x280] sm:$0xff] }
 0xaf5   :  { %v1668_v12 = vmax.f32 %v1664_v37, 0.0  ;;  %2492 = vmatprep.subr.bf16.mxu0 %v1703_v36  ;;  %v1978_v33 = vld [vmem:[#allocation6 + $0x288] sm:$0xff]  ;;  %v1980_v41 = vld [vmem:[#allocation6 + $0x298] sm:$0xff]  ;;  %v1979_v36 = vld [vmem:[#allocation6 + $0x290] sm:$0xff] }
 0xaf6   :  { %v1669_v25 = vmax.f32 %v1665_v39, 0.0  ;;  %v1982_v37 = vld [vmem:[#allocation6 + $0x2a8] sm:$0xff]  ;;  %v1981_v38 = vld [vmem:[#allocation6 + $0x2a0] sm:$0xff]  ;;  %v1984_v39 = vld [vmem:[#allocation6 + $0x2b8] sm:$0xff] }
 0xaf7   :  { %v3252_v44 = vpack.c.bf16 %v1668_v12, %v1668_v12  ;;  %v1983_v12 = vld [vmem:[#allocation6 + $0x2b0] sm:$0xff] }
 0xaf8   :  { %v1673_v43 = vpack.c.bf16 %v1669_v25, %v1669_v25  ;;  %2493 = vmatpush3.bf16.msra.mxu0 %v1679_v13  ;;  %v1986_v13 = vld [vmem:[#allocation6 + $0x2c8] sm:$0xff]  ;;  %v1985_v25 = vld [vmem:[#allocation6 + $0x2c0] sm:$0xff] }
 0xaf9   :  { %2494 = vmatprep.subr.bf16.mxu0 %v1706_v40  ;;  %v1988_v40 = vld [vmem:[#allocation6 + $0x2d8] sm:$0xff] }
 0xafa   :  { %1843 = vmatprep.mubr.bf16.mxu1 %v1673_v43 }
 0xafb   :  { %1844 = vmatmul.mubr.bf16.vlgmr.msra.gmra.mrb[52].mxu1 %v3252_v44 }
 0xafc   :  { %2495 = vmatpush3.bf16.msra.mxu0 %v1682_v19  ;;  %2513 = vmatpush3.bf16.msra.mxu1 %v1724_v45  ;;  %v1989_v19 = vld [vmem:[#allocation6 + $0x2e0] sm:$0xff]  ;;  %v1992_v45 = vld [vmem:[#allocation6 + $0x2f8] sm:$0xff] }
 0xafd   :  { %1924 = vmatprep.mubr.bf16.mxu1 %v1673_v43  ;;  %2496 = vmatprep.subr.bf16.mxu0 %v1709_v35  ;;  %v1987_v43 = vld [vmem:[#allocation6 + $0x2d0] sm:$0xff] }
 0xafe   :  { %2514 = vmatprep.subr.bf16.mxu1 %v1751_v46  ;;  %v1991_v35 = vld [vmem:[#allocation6 + $0x2f0] sm:$0xff]  ;;  %v1994_v46 = vld [vmem:[#allocation6 + $0x308] sm:$0xff] }
 0xb00   :  { %2497 = vmatpush3.bf16.msra.mxu0 %v1685_v47  ;;  %2515 = vmatpush3.bf16.msra.mxu1 %v1727_v48  ;;  %v2115_v47 = vld [vmem:[#allocation5 + $0xc0] sm:$0xff] }
 0xb01   :  { %2498 = vmatprep.subr.bf16.mxu0 %v1712_v49  ;;  %2516 = vmatprep.subr.bf16.mxu1 %v1754_v50  ;;  %v2107_v48 = vld [vmem:[#allocation5 + $0x80] sm:$0xff]  ;;  %v2116_v49 = vld [vmem:[#allocation5 + $0xc8] sm:$0xff] }
 0xb02   :  { %v2108_v50 = vld [vmem:[#allocation5 + $0x88] sm:$0xff] }
 0xb04   :  { %2499 = vmatpush3.bf16.msra.mxu0 %v1688_v52  ;;  %2517 = vmatpush3.bf16.msra.mxu1 %v1730_v53  ;;  %v2117_v52 = vld [vmem:[#allocation5 + $0xd0] sm:$0xff] }
 0xb05   :  { %2500 = vmatprep.subr.bf16.mxu0 %v1715_v54  ;;  %2518 = vmatprep.subr.bf16.mxu1 %v1757_v55  ;;  %v2109_v53 = vld [vmem:[#allocation5 + $0x90] sm:$0xff]  ;;  %v2118_v54 = vld [vmem:[#allocation5 + $0xd8] sm:$0xff] }
 0xb06   :  { %v2110_v55 = vld [vmem:[#allocation5 + $0x98] sm:$0xff] }
 0xb08   :  { %2501 = vmatpush3.bf16.msra.mxu0 %v1691_v29  ;;  %2519 = vmatpush3.bf16.msra.mxu1 %v1733_v56  ;;  %v2119_v29 = vld [vmem:[#allocation5 + $0xe0] sm:$0xff] }
 0xb09   :  { %2502 = vmatprep.subr.bf16.mxu0 %v1718_v42  ;;  %2520 = vmatprep.subr.bf16.mxu1 %v1760_v57  ;;  %v2111_v56 = vld [vmem:[#allocation5 + $0xa0] sm:$0xff]  ;;  %v2120_v42 = vld [vmem:[#allocation5 + $0xe8] sm:$0xff] }
 0xb0a   :  { %v2112_v57 = vld [vmem:[#allocation5 + $0xa8] sm:$0xff] }
 0xb0c   :  { %2503 = vmatpush3.bf16.msra.mxu0 %v1694_v1  ;;  %2521 = vmatpush3.bf16.msra.mxu1 %v1736_v58 }
 0xb0d   :  { %2504 = vmatprep.subr.bf16.mxu0 %v1721_v61  ;;  %2522 = vmatprep.subr.bf16.mxu1 %v1763_v62 }
 0xb10   :  { %2505 = vmatpush3.bf16.msra.mxu0 %v1697_v2  ;;  %2523 = vmatpush3.bf16.msra.mxu1 %v1739_v4  ;;  %v3257_v2 = vld [vmem:[#allocation12 + $0x17] sm:$0x7] }
 0xb11   :  { %2524 = vmatprep.subr.bf16.mxu1 %v1766_v5  ;;  %2021 = vmatprep.subr.bf16.mxu0 %v1962_v6  ;;  %v1940_v6 = vrot.slane %v3257_v2, %v3124_v14 }
 0xb13   :  { %1885 = vmatmul.mubr.bf16.vlgmr.msra.gmra.mrb[20].mxu0 %v3249_v30  ;;  %v1973_v30 = vld [vmem:[#allocation6 + $0x260] sm:$0xff] }
 0xb14   :  { %2525 = vmatpush3.bf16.msra.mxu1 %v1742_v7  ;;  %2022 = vmatpush1.bf16.msra.mxu0 %v1961_v8 }
 0xb15   :  { %2526 = vmatprep.subr.bf16.mxu1 %v1769_v9  ;;  %2023 = vmatprep.subr.bf16.mxu0 %v1964_v10  ;;  %v1944_v9 = vrot.slane %v3257_v2, %v3127_v16 }
 0xb18   :  { %2527 = vmatpush3.bf16.msra.mxu1 %v1745_v11  ;;  %2024 = vmatpush1.bf16.msra.mxu0 %v1963_v15 }
 0xb19   :  { %2025 = vmatprep.subr.bf16.mxu0 %v1966_v17  ;;  %2534 = vmatprep.subr.bf16.mxu1 %v2115_v47  ;;  %v2008_v47 = vld [vmem:[#allocation6 + $0x378] sm:$0xff] }
 0xb1b   :  { %1925 = vmatmul.mubr.bf16.vlgmr.msra.gmra.mrb[56].mxu1 %v3252_v44  ;;  %v1990_v44 = vld [vmem:[#allocation6 + $0x2e8] sm:$0xff] }
 0xb1c   :  { %2026 = vmatpush1.bf16.msra.mxu0 %v1965_v18  ;;  %2535 = vmatpush3.bf16.msra.mxu1 %v2107_v48 }
 0xb1d   :  { %2027 = vmatprep.subr.bf16.mxu0 %v1968_v20  ;;  %2536 = vmatprep.subr.bf16.mxu1 %v2116_v49  ;;  %v2007_v49 = vld [vmem:[#allocation6 + $0x370] sm:$0xff] }
 0xb20   :  { %2028 = vmatpush1.bf16.msra.mxu0 %v1967_v21  ;;  %2537 = vmatpush3.bf16.msra.mxu1 %v2108_v50 }
 0xb21   :  { %2029 = vmatprep.subr.bf16.mxu0 %v1970_v23  ;;  %2538 = vmatprep.subr.bf16.mxu1 %v2117_v52 }
 0xb24   :  { %2030 = vmatpush1.bf16.msra.mxu0 %v1969_v24  ;;  %2539 = vmatpush3.bf16.msra.mxu1 %v2109_v53 }
 0xb25   :  { %2031 = vmatprep.subr.bf16.mxu0 %v1972_v26  ;;  %2540 = vmatprep.subr.bf16.mxu1 %v2118_v54  ;;  %v2121_v54 = vld [vmem:[#allocation5 + $0xf0] sm:$0xff] }
 0xb28   :  { %2032 = vmatpush1.bf16.msra.mxu0 %v1971_v27  ;;  %2541 = vmatpush3.bf16.msra.mxu1 %v2110_v55  ;;  %v1993_v27 = vld [vmem:[#allocation6 + $0x300] sm:$0xff]  ;;  %v2113_v55 = vld [vmem:[#allocation5 + $0xb0] sm:$0xff] }
 0xb29   :  { %2033 = vmatprep.subr.bf16.mxu0 %v1974_v28  ;;  %2542 = vmatprep.subr.bf16.mxu1 %v2119_v29  ;;  %v1996_v28 = vld [vmem:[#allocation6 + $0x318] sm:$0xff] }
 0xb2a   :  { %v2009_v29 = vld [vmem:[#allocation12 + $0x1a] sm:$0x3] }
 0xb2c   :  { %2034 = vmatpush1.bf16.msra.mxu0 %v1973_v30  ;;  %2543 = vmatpush3.bf16.msra.mxu1 %v2111_v56  ;;  %v1995_v30 = vld [vmem:[#allocation6 + $0x310] sm:$0xff]  ;;  %v2014_v56 = vrot.slane %v2009_v29, %v3124_v14  ;;  %v2175_v14 = vld [vmem:[#allocation5 + $0x108] sm:$0xff] }
 0xb2d   :  { %2035 = vmatprep.subr.bf16.mxu0 %v1976_v31  ;;  %2544 = vmatprep.subr.bf16.mxu1 %v2120_v42  ;;  %v1998_v31 = vld [vmem:[#allocation6 + $0x328] sm:$0xff]  ;;  %v2018_v42 = vrot.slane %v2009_v29, %v3127_v16  ;;  %v2176_v16 = vld [vmem:[#allocation5 + $0x110] sm:$0xff]  ;;  %v2443_v29 = vld [vmem:[#allocation12 + $0x1f] ss:$0 sm:$0xff] }
 0xb30   :  { %2036 = vmatpush1.bf16.msra.mxu0 %v1975_v32  ;;  %2545 = vmatpush3.bf16.msra.mxu1 %v2112_v57  ;;  %v1999_v32 = vld [vmem:[#allocation6 + $0x330] sm:$0xff] }
 0xb31   :  { %2037 = vmatprep.subr.bf16.mxu0 %v1978_v33  ;;  %2546 = vmatprep.subr.bf16.mxu1 %v2121_v54 }
 0xb34   :  { %2038 = vmatpush1.bf16.msra.mxu0 %v1977_v34  ;;  %v2002_v34 = vld [vmem:[#allocation6 + $0x348] sm:$0xff]  ;;  %2547 = vmatpush3.bf16.msra.mxu1 %v2113_v55 }
 0xb35   :  { %2039 = vmatprep.subr.bf16.mxu0 %v1980_v41 }
 0xb38   :  { %2040 = vmatpush1.bf16.msra.mxu0 %v1979_v36 }
 0xb39   :  { %2041 = vmatprep.subr.bf16.mxu0 %v1982_v37 }
 0xb3c   :  { %2042 = vmatpush1.bf16.msra.mxu0 %v1981_v38 }
 0xb3d   :  { %2043 = vmatprep.subr.bf16.mxu0 %v1984_v39  ;;  %v2001_v39 = vld [vmem:[#allocation6 + $0x340] sm:$0xff] }
 0xb40   :  { %2044 = vmatpush1.bf16.msra.mxu0 %v1983_v12  ;;  %v2003_v12 = vld [vmem:[#allocation6 + $0x350] sm:$0xff] }
 0xb41   :  { %2045 = vmatprep.subr.bf16.mxu0 %v1986_v13 }
 0xb44   :  { %2046 = vmatpush1.bf16.msra.mxu0 %v1985_v25  ;;  %v2006_v25 = vld [vmem:[#allocation6 + $0x368] sm:$0xff] }
 0xb45   :  { %2047 = vmatprep.subr.bf16.mxu0 %v1988_v40 }
 0xb48   :  { %2048 = vmatpush1.bf16.msra.mxu0 %v1987_v43 }
 0xb49   :  { %2049 = vmatprep.subr.bf16.mxu0 %v1990_v44 }
 0xb4c   :  { %2050 = vmatpush1.bf16.msra.mxu0 %v1989_v19 }
 0xb4d   :  { %2051 = vmatprep.subr.bf16.mxu0 %v1992_v45  ;;  %v2005_v45 = vld [vmem:[#allocation6 + $0x360] sm:$0xff] }
 0xb50   :  { %2052 = vmatpush1.bf16.msra.mxu0 %v1991_v35 }
 0xb51   :  { %2062 = vmatprep.subr.bf16.mxu0 %v1994_v46  ;;  %v1948_v46 = vrot.slane %v3257_v2, %v3132_v22  ;;  %v2122_v22 = vld [vmem:[#allocation5 + $0xf8] sm:$0xff] }
 0xb52   :  { %2548 = vmatprep.subr.bf16.mxu1 %v2122_v22 }
 0xbc6   :  { %v1804_v1 = vpop.f32.mrb[16].mxu0 }
 0xbc7   :  { %v1806_v58 = vpop.f32.mrb[17].mxu0 }
 0xbc8   :  { %v1808_v61 = vpop.f32.mrb[18].mxu0 }
 0xbc9   :  { %v1809_v62 = vpop.f32.mrb[19].mxu0 }
 0xbce   :  { %v1845_v4 = vpop.f32.mrb[52].mxu1 }
 0xbcf   :  { %v1846_v5 = vadd.f32 %v1845_v4, %v1804_v1  ;;  %v1847_v7 = vpop.f32.mrb[53].mxu1 }
 0xbd0   :  { %v1848_v8 = vadd.f32 %v1847_v7, %v1806_v58  ;;  %v1849_v10 = vpop.f32.mrb[54].mxu1 }
 0xbd1   :  { %v1932_v11 = vadd.f32 %v1846_v5, %v3236_v59  ;;  %v1850_v15 = vpop.f32.mrb[55].mxu1  ;;  %v1997_v59 = vld [vmem:[#allocation6 + $0x320] sm:$0xff] }
 0xbd2   :  { %v1933_v17 = vadd.f32 %v1848_v8, %v3238_v60  ;;  %v2000_v60 = vld [vmem:[#allocation6 + $0x338] sm:$0xff]  ;;  %v2174_v8 = vld [vmem:[#allocation5 + $0x100] sm:$0xff]  ;;  %v2180_v15 = vld [vmem:[#allocation5 + $0x130] sm:$0xff] }
 0xbd3   :  { %v1952_v18 = vadd.f32 %v1940_v6, %v1932_v11  ;;  %v2178_v10 = vld [vmem:[#allocation5 + $0x120] sm:$0xff]  ;;  %v2179_v11 = vld [vmem:[#allocation5 + $0x128] sm:$0xff] }
 0xbd4   :  { %v1953_v20 = vadd.f32 %v1944_v9, %v1933_v17  ;;  %v2177_v9 = vld [vmem:[#allocation5 + $0x118] sm:$0xff] }
 0xbd5   :  { %v1955_v21 = vmax.f32 %v1952_v18, 0.0  ;;  %v2181_v17 = vld [vmem:[#allocation5 + $0x138] sm:$0xff] }
 0xbd6   :  { %v1956_v23 = vmax.f32 %v1953_v20, 0.0 }
 0xbd7   :  { %v1958_v26 = vpack.c.bf16 %v1955_v21, %v1955_v21 }
 0xbd8   :  { %v1959_v24 = vpack.c.bf16 %v1956_v23, %v1956_v23 }
 0xbda   :  { %2053 = vmatprep.mubr.bf16.mxu0 %v1959_v24  ;;  %v2440_v24 = vld [vmem:[#allocation12 + $0x1c] ss:$0 sm:$0xff] }
 0xbdb   :  { %2054 = vmatmul.mubr.bf16.vlgmr.msra.gmra.mrb[24].mxu0 %v1958_v26 }
 0xbdc   :  { %2063 = vmatpush1.bf16.msra.mxu0 %v1993_v27  ;;  %2094 = vmatprep.mubr.bf16.mxu0 %v2939_v3  ;;  %v2004_v3 = vld [vmem:[#allocation6 + $0x358] sm:$0xff] }
 0xbdd   :  { %2064 = vmatprep.subr.bf16.mxu0 %v1996_v28 }
 0xbe0   :  { %2065 = vmatpush1.bf16.msra.mxu0 %v1995_v30 }
 0xbe1   :  { %2066 = vmatprep.subr.bf16.mxu0 %v1998_v31 }
 0xbe4   :  { %2067 = vmatpush1.bf16.msra.mxu0 %v1997_v59  ;;  %v2231_v59 = vld [vmem:[#allocation5 + $0x140] sm:$0xff] }
 0xbe5   :  { %2068 = vmatprep.subr.bf16.mxu0 %v2000_v60  ;;  %v2232_v60 = vld [vmem:[#allocation5 + $0x148] sm:$0xff] }
 0xbe6   :  { %v2506_v33 = vpop.f32.mrb[20].mxu0 }
 0xbe7   :  { %v2507_v41 = vpop.f32.mrb[21].mxu0 }
 0xbe8   :  { %v2508_v36 = vadd.f32 %v2507_v41, %v2506_v33  ;;  %v2509_v37 = vpop.f32.mrb[22].mxu0  ;;  %2069 = vmatpush1.bf16.msra.mxu0 %v1999_v32  ;;  %v2233_v32 = vld [vmem:[#allocation5 + $0x150] sm:$0xff]  ;;  %v2235_v33 = vld [vmem:[#allocation5 + $0x160] sm:$0xff] }
 0xbe9   :  { %v2510_v38 = vpop.f32.mrb[23].mxu0  ;;  %2070 = vmatprep.subr.bf16.mxu0 %v2002_v34  ;;  %v2236_v34 = vld [vmem:[#allocation5 + $0x168] sm:$0xff]  ;;  %v2237_v41 = vld [vmem:[#allocation5 + $0x170] sm:$0xff]  ;;  %v2288_v37 = vld [vmem:[#allocation5 + $0x180] sm:$0xff] }
 0xbea   :  { %v2289_v38 = vld [vmem:[#allocation5 + $0x188] sm:$0xff] }
 0xbec   :  { %2071 = vmatpush1.bf16.msra.mxu0 %v2001_v39  ;;  %v2290_v39 = vld [vmem:[#allocation5 + $0x190] sm:$0xff] }
 0xbed   :  { %2072 = vmatprep.subr.bf16.mxu0 %v2004_v3  ;;  %v2291_v3 = vld [vmem:[#allocation5 + $0x198] sm:$0xff] }
 0xbee   :  { %v2528_v13 = vpop.f32.mrb[56].mxu1 }
 0xbef   :  { %v2529_v40 = vpop.f32.mrb[57].mxu1 }
 0xbf0   :  { %v2530_v43 = vadd.f32 %v2529_v40, %v2528_v13  ;;  %v2531_v44 = vpop.f32.mrb[58].mxu1  ;;  %2073 = vmatpush1.bf16.msra.mxu0 %v2003_v12  ;;  %v2292_v12 = vld [vmem:[#allocation5 + $0x1a0] sm:$0xff]  ;;  %v2293_v13 = vld [vmem:[#allocation5 + $0x1a8] sm:$0xff] }
 0xbf1   :  { %v2532_v19 = vpop.f32.mrb[59].mxu1  ;;  %2074 = vmatprep.subr.bf16.mxu0 %v2006_v25  ;;  %v2441_v25 = vld [vmem:[#allocation12 + $0x1d] ss:$0 sm:$0xff] }
 0xbf2   :  { %v1927_v35 = vadd.f32 %v2530_v43, %v2508_v36  ;;  %v2238_v36 = vld [vmem:[#allocation5 + $0x178] sm:$0xff] }
 0xbf4   :  { %v1934_v48 = vadd.f32 %v1927_v35, %v3240_v63  ;;  %2075 = vmatpush1.bf16.msra.mxu0 %v2005_v45  ;;  %v2114_v63 = vld [vmem:[#allocation5 + $0xb8] sm:$0xff] }
 0xbf5   :  { %2076 = vmatprep.subr.bf16.mxu0 %v2008_v47  ;;  %2549 = vmatpush3.bf16.msra.mxu1 %v2114_v63  ;;  %v2294_v47 = vld [vmem:[#allocation5 + $0x1b0] sm:$0xff] }
 0xbf6   :  { %v1954_v50 = vadd.f32 %v1948_v46, %v1934_v48  ;;  %2623 = vmatprep.subr.bf16.mxu1 %v2940_v51  ;;  %v2295_v48 = vld [vmem:[#allocation5 + $0x1b8] sm:$0xff] }
 0xbf8   :  { %v1957_v52 = vmax.f32 %v1954_v50, 0.0  ;;  %2077 = vmatpush1.bf16.msra.mxu0 %v2007_v49  ;;  %v2442_v49 = vld [vmem:[#allocation12 + $0x1e] ss:$0 sm:$0xff] }
 0xbf9   :  { %2663 = vmatprep.subr.bf16.mxu0 %v2940_v51 }
 0xbfa   :  { %v1960_v53 = vpack.c.bf16 %v1957_v52, %v1957_v52 }
 0xbfc   :  { %2095 = vmatmul.mubr.bf16.vlgmr.msra.gmra.mrb[24].mxu0 %v1960_v53 }
 0xbfd   :  { %2679 = vmatprep.mubr.msk.bf16.mxu0 %vm2941_vm1, %v2940_v51  ;;  %2664 = vmatpush3.bf16.msra.mxu0 %v2288_v37 }
 0xbfe   :  { %2665 = vmatprep.subr.bf16.mxu0 %v2940_v51 }
 0xc01   :  { %2666 = vmatpush3.bf16.msra.mxu0 %v2289_v38 }
 0xc02   :  { %2667 = vmatprep.subr.bf16.mxu0 %v2940_v51 }
 0xc05   :  { %2668 = vmatpush3.bf16.msra.mxu0 %v2290_v39 }
 0xc06   :  { %2669 = vmatprep.subr.bf16.mxu0 %v2940_v51 }
 0xc09   :  { %2670 = vmatpush3.bf16.msra.mxu0 %v2291_v3 }
 0xc0a   :  { %2671 = vmatprep.subr.bf16.mxu0 %v2940_v51 }
 0xc0d   :  { %2672 = vmatpush3.bf16.msra.mxu0 %v2292_v12 }
 0xc0e   :  { %2673 = vmatprep.subr.bf16.mxu0 %v2940_v51 }
 0xc11   :  { %2674 = vmatpush3.bf16.msra.mxu0 %v2293_v13 }
 0xc12   :  { %2675 = vmatprep.subr.bf16.mxu0 %v2940_v51 }
 0xc15   :  { %2676 = vmatpush3.bf16.msra.mxu0 %v2294_v47 }
 0xc16   :  { %2677 = vmatprep.subr.bf16.mxu0 %v2940_v51 }
 0xc19   :  { %2678 = vmatpush3.bf16.msra.mxu0 %v2295_v48 }
 0xccf   :  { %v2096_v57 = vpop.f32.mrb[24].mxu0 }
 0xcd0   :  { %v2685_v1 = vadd.f32 %v2096_v57, %v2014_v56  ;;  %v2098_v58 = vpop.f32.mrb[25].mxu0 }
 0xcd1   :  { %v2686_v61 = vadd.f32 %v2098_v58, %v2018_v42  ;;  %v2100_v62 = vpop.f32.mrb[26].mxu0 }
 0xcd2   :  { %v2103_v2 = vmax.f32 %v2685_v1, 0.0  ;;  %v2101_v4 = vpop.f32.mrb[27].mxu0 }
 0xcd3   :  { %v2104_v5 = vmax.f32 %v2686_v61, 0.0 }
 0xcd4   :  { %v2105_v7 = vpack.c.bf16 %v2103_v2, %v2103_v2 }
 0xcd5   :  { %v2106_v6 = vpack.c.bf16 %v2104_v5, %v2104_v5 }
 0xcd7   :  { %2155 = vmatprep.mubr.bf16.mxu1 %v2106_v6 }
 0xcd8   :  { %2156 = vmatmul.mubr.bf16.vlgmr.msra.gmra.mrb[60].mxu1 %v2105_v7 }
 0xcd9   :  { %2624 = vmatpush3.bf16.msra.mxu1 %v2174_v8  ;;  %2639 = vmatprep.mubr.msk.bf16.mxu1 %vm2941_vm1, %v2940_v51 }
 0xcda   :  { %2625 = vmatprep.subr.bf16.mxu1 %v2940_v51 }
 0xcdd   :  { %2626 = vmatpush3.bf16.msra.mxu1 %v2175_v14 }
 0xcde   :  { %2627 = vmatprep.subr.bf16.mxu1 %v2940_v51 }
 0xce1   :  { %2628 = vmatpush3.bf16.msra.mxu1 %v2176_v16 }
 0xce2   :  { %2629 = vmatprep.subr.bf16.mxu1 %v2940_v51 }
 0xce5   :  { %2630 = vmatpush3.bf16.msra.mxu1 %v2177_v9 }
 0xce6   :  { %2631 = vmatprep.subr.bf16.mxu1 %v2940_v51 }
 0xce9   :  { %2632 = vmatpush3.bf16.msra.mxu1 %v2178_v10 }
 0xcea   :  { %2633 = vmatprep.subr.bf16.mxu1 %v2940_v51 }
 0xced   :  { %2634 = vmatpush3.bf16.msra.mxu1 %v2179_v11 }
 0xcee   :  { %2635 = vmatprep.subr.bf16.mxu1 %v2940_v51 }
 0xcf1   :  { %2636 = vmatpush3.bf16.msra.mxu1 %v2180_v15 }
 0xcf2   :  { %2637 = vmatprep.subr.bf16.mxu1 %v2940_v51 }
 0xcf5   :  { %2638 = vmatpush3.bf16.msra.mxu1 %v2181_v17 }
 0xcf6   :  { %2643 = vmatprep.subr.bf16.mxu1 %v2940_v51 }
 0xdab   :  { %v2550_v18 = vpop.f32.mrb[60].mxu1 }
 0xdac   :  { %v2551_v20 = vpop.f32.mrb[61].mxu1 }
 0xdad   :  { %v2552_v21 = vadd.f32 %v2551_v20, %v2550_v18  ;;  %v2553_v23 = vpop.f32.mrb[62].mxu1 }
 0xdae   :  { %v2554_v26 = vpop.f32.mrb[63].mxu1 }
 0xdaf   :  { %v2163_v27 = vadd.f32 %v2552_v21, %v3242_v0  ;;  %v2234_v0 = vld [vmem:[#allocation5 + $0x158] sm:$0xff] }
 0xdb1   :  { %v2171_v28 = vadd.f32 %v2440_v24, %v2163_v27 }
 0xdb3   :  { %v2172_v30 = vmax.f32 %v2171_v28, 0.0 }
 0xdb5   :  { %v2173_v31 = vpack.c.bf16 %v2172_v30, %v2172_v30 }
 0xdb7   :  { %2640 = vmatmul.mubr.bf16.vlgmr.msra.gmra.mrb[64].mxu1 %v2173_v31 }
 0xdb8   :  { %2644 = vmatpush3.bf16.msra.mxu1 %v2231_v59  ;;  %2659 = vmatprep.mubr.msk.bf16.mxu1 %vm2941_vm1, %v2940_v51 }
 0xdb9   :  { %2645 = vmatprep.subr.bf16.mxu1 %v2940_v51 }
 0xdbc   :  { %2646 = vmatpush3.bf16.msra.mxu1 %v2232_v60 }
 0xdbd   :  { %2647 = vmatprep.subr.bf16.mxu1 %v2940_v51 }
 0xdc0   :  { %2648 = vmatpush3.bf16.msra.mxu1 %v2233_v32 }
 0xdc1   :  { %2649 = vmatprep.subr.bf16.mxu1 %v2940_v51 }
 0xdc4   :  { %2650 = vmatpush3.bf16.msra.mxu1 %v2234_v0 }
 0xdc5   :  { %2651 = vmatprep.subr.bf16.mxu1 %v2940_v51 }
 0xdc8   :  { %2652 = vmatpush3.bf16.msra.mxu1 %v2235_v33 }
 0xdc9   :  { %2653 = vmatprep.subr.bf16.mxu1 %v2940_v51 }
 0xdcc   :  { %2654 = vmatpush3.bf16.msra.mxu1 %v2236_v34 }
 0xdcd   :  { %2655 = vmatprep.subr.bf16.mxu1 %v2940_v51 }
 0xdd0   :  { %2656 = vmatpush3.bf16.msra.mxu1 %v2237_v41 }
 0xdd1   :  { %2657 = vmatprep.subr.bf16.mxu1 %v2940_v51 }
 0xdd4   :  { %2658 = vmatpush3.bf16.msra.mxu1 %v2238_v36 }
 0xe8a   :  { %v2223_v40 = vpop.f32.mrb[64].mxu1 }
 0xe8b   :  { %v2224_v43 = vadd.f32 %v2441_v25, %v2223_v40  ;;  %v2641_v44 = vpop.f32.mrb[65].mxu1 }
 0xe8c   :  { %v2226_v19 = vpop.f32.mrb[66].mxu1 }
 0xe8d   :  { %v2229_v45 = vmax.f32 %v2224_v43, 0.0  ;;  %v2642_v35 = vpop.f32.mrb[67].mxu1 }
 0xe8f   :  { %v2230_v46 = vpack.c.bf16 %v2229_v45, %v2229_v45 }
 0xe91   :  { %2660 = vmatmul.mubr.bf16.vlgmr.msra.gmra.mrb[68].mxu1 %v2230_v46 }
 0xf64   :  { %v2280_v50 = vpop.f32.mrb[68].mxu1 }
 0xf65   :  { %v2281_v52 = vadd.f32 %v2442_v49, %v2280_v50  ;;  %v2661_v53 = vpop.f32.mrb[69].mxu1 }
 0xf66   :  { %v2283_v54 = vpop.f32.mrb[70].mxu1 }
 0xf67   :  { %v2286_v55 = vmax.f32 %v2281_v52, 0.0  ;;  %v2662_v22 = vpop.f32.mrb[71].mxu1 }
 0xf69   :  { %v2287_v63 = vpack.c.bf16 %v2286_v55, %v2286_v55 }
 0xf6b   :  { %2680 = vmatmul.mubr.bf16.vlgmr.msra.gmra.mrb[28].mxu0 %v2287_v63 }
0x103e   :  { %v2337_v56 = vpop.f32.mrb[28].mxu0 }
0x103f   :  { %v2338_v42 = vadd.f32 %v2443_v29, %v2337_v56  ;;  %v2681_v57 = vpop.f32.mrb[29].mxu0 }
0x1040   :  { %v2340_v1 = vpop.f32.mrb[30].mxu0 }
0x1041   :  { %2784 = vtanh.f32 %v2338_v42  ;;  %v2682_v58 = vpop.f32.mrb[31].mxu0 }
0x104b   :  { %v2785_v51 = vpop.eup %2784 }
0x104c   :  { %v2344_v61 = vmul.f32 2.0, %v2785_v51 }
0x104e   :  { %2346 = vst.msk [vmem:[#allocation14] sm:$0x3] %vm2345_vm5, %v2344_v61 }
0x104f   :  { %2885 = shalt.err (!%p2882_p8)
}
0x1050   :  { %s2886_s3 = scalar_lea.hbm %s3323_s9, 32 }
0x1051   :  { %p2887_p9 = scmp.ne.s32.totalorder %s3323_s9, %s2886_s3  ;;  %p2890_p10 = scmp.lt.u32.totalorder %s2886_s3, %s3323_s9 }
0x1053   :  { %p2892_p11 = pnand %p2890_p10, %p2887_p9 }
0x1055   :  { %2895 = shalt.err (!%p2892_p11)
}
0x1056   :  { %2356 = dma.vmem_to_hbm [thread:$0]  %s2354_s5, 32, %s3323_s9, [#allocation11]  }
0x1057   :  { %2912 = dma.done.wait [#allocation11], 32  }
0x1058   :  { %2913 = vsyncadd [#allocation11], 4294967264 }
0x1059   :  { %2360 = vsyncpa [#allocation10], 1 }
0x105a   :  { %2361 = vsyncpa [#allocation13], 1 }
0x105b   :  { %2362 = vsyncpa [#allocation11], 1 }
0x105c   :  { %2363 = vsyncmov [#allocation8] }
0x105f   :  { %s2364_s12 = vpop.sfrf %2363 }
0x1060   :  { %p2444_p12 = scmp.ne.s32.totalorder %s2364_s12, 0 }
0x1062   :  { %2368 = shalt.err (%p2444_p12)  }
0x1063   :  { %2370 = vsyncmov [#allocation8 + $0x1] }
0x1066   :  { %s2371_s18 = vpop.sfrf %2370 }
0x1067   :  { %p2445_p13 = scmp.ne.s32.totalorder %s2371_s18, 0 }
0x1069   :  { %2375 = shalt.err (%p2445_p13)  }
0x106a   :  { %2377 = vsyncmov [#allocation8 + $0x2] }
0x106d   :  { %s2378_s4 = vpop.sfrf %2377 }
0x106e   :  { %p2446_p0 = scmp.ne.s32.totalorder %s2378_s4, 0 }
0x1070   :  { %2382 = shalt.err (%p2446_p0)  }
0x1071   :  { %2384 = vsyncmov [#allocation8 + $0x3] }
0x1074   :  { %s2385_s19 = vpop.sfrf %2384 }
0x1075   :  { %p2447_p1 = scmp.ne.s32.totalorder %s2385_s19, 0 }
0x1077   :  { %2389 = shalt.err (%p2447_p1)  }
0x1078   :  { %2391 = vsyncmov [#allocation8 + $0x4] }
0x107b   :  { %s2392_s9 = vpop.sfrf %2391 }
0x107c   :  { %p2448_p2 = scmp.ne.s32.totalorder %s2392_s9, 0 }
0x107e   :  { %2396 = shalt.err (%p2448_p2)  }
0x107f   :  { %2398 = vsyncmov [#allocation8 + $0x5] }
0x1082   :  { %s2399_s20 = vpop.sfrf %2398 }
0x1083   :  { %p2449_p3 = scmp.ne.s32.totalorder %s2399_s20, 0 }
0x1085   :  { %2403 = shalt.err (%p2449_p3)  }

</bundles_post_ra>
